<compile_context>
chip_gen: v7x
topology: tpu7x:2x2x1
jax: 0.10.0
libtpu: 0.0.40
codegen_flags: <defaults>
</compile_context>

<pallas_src>
import functools

import jax
import jax.numpy as jnp
import numpy as np
from jax import lax
from jax.experimental import pallas as pl
from jax.experimental.pallas import tpu as pltpu


def _round_up(x, m):
    return (x + m - 1) // m * m


# --------------------------------------------------------------------------
# Kernel 1: conv1 matmul + bias + ReLU + MaxPool(3, 2), fully fused.
#   a_ref : (1, 4*hr*wc, Kp) bf16 im2col patches of ONE image, rows ordered
#           [ee | eo | oe | oo] x (hr, wc) (row-parity / col-parity groups),
#           tap-major channel-fastest K, zero-padded to Kp and to the parity
#           grid.
#   w_ref : (Kp, 128) bf16 (Cout padded 64->128 with zero cols), resident.
#   b_ref : (1, 128) f32.
#   o_ref : (1, hp*wc, 128) bf16 pooled output (cols >= Wp are discarded
#           later by the wrapper).
# --------------------------------------------------------------------------
def _conv1_pool_kernel(a_ref, w_ref, b_ref, o_ref, *, hr, wc, hp):
    acc = jnp.dot(a_ref[0], w_ref[...],
                  preferred_element_type=jnp.float32)        # (4*hr*wc, 128) f32
    g = hr * wc
    m_rows = hp * wc

    def win(off):                                             # contiguous slice
        return acc[off:off + m_rows]

    # 3x3 window over conv1 pixels (2p+dr, 2q+dc); in the parity layout every
    # tap is a contiguous, statically-offset slice of acc (pure VPU max tree).
    m = win(0)                                                # ee[p,   q  ]
    m = jnp.maximum(m, win(1))                                # ee[p,   q+1]
    m = jnp.maximum(m, win(wc))                               # ee[p+1, q  ]
    m = jnp.maximum(m, win(wc + 1))                           # ee[p+1, q+1]
    m = jnp.maximum(m, win(g))                                # eo[p,   q  ]
    m = jnp.maximum(m, win(g + wc))                           # eo[p+1, q  ]
    m = jnp.maximum(m, win(2 * g))                            # oe[p,   q  ]
    m = jnp.maximum(m, win(2 * g + 1))                        # oe[p,   q+1]
    m = jnp.maximum(m, win(3 * g))                            # oo[p,   q  ]
    # bias/ReLU commute with the max (per-channel constant, monotone).
    o_ref[0] = jnp.maximum(m + b_ref[...], 0.0).astype(o_ref.dtype)


def conv1_relu_maxpool(a, w, b, *, hr, wc, hp):
    n, m1p, kp = a.shape
    kern = functools.partial(_conv1_pool_kernel, hr=hr, wc=wc, hp=hp)
    return pl.pallas_call(
        kern,
        out_shape=jax.ShapeDtypeStruct((n, hp * wc, 128), jnp.bfloat16),
        grid=(n,),
        in_specs=[
            pl.BlockSpec((1, m1p, kp), lambda i: (i, 0, 0)),   # per-image A tile
            pl.BlockSpec((kp, 128), lambda i: (0, 0)),         # weight, resident
            pl.BlockSpec((1, 128), lambda i: (0, 0)),          # bias, resident
        ],
        out_specs=pl.BlockSpec((1, hp * wc, 128), lambda i: (i, 0, 0)),
        compiler_params=pltpu.CompilerParams(
            dimension_semantics=("parallel",),
            vmem_limit_bytes=64 * 1024 * 1024),
    )(a, w, b)


# --------------------------------------------------------------------------
# Kernel 2: conv2 with the im2col fused in-kernel + bias + ReLU.
#   x_ref : (1, Rpad, 64) bf16 — pooled activations of ONE image, zero-padded
#           spatially to (Hp+5, Wp+4) and flattened row-major, so the patch
#           for tap (ki, kj) is the contiguous row slice starting at
#           ki*Wpad + kj.
#   w_ref : (25, 64, 256) bf16 per-tap weights (Cout padded 192->256).
#   b_ref : (1, 256) f32.
#   o_ref : (1, hp*Wpad, 256) f32 — columns >= Wp are garbage and sliced off
#           by the wrapper.
# --------------------------------------------------------------------------
def _conv2_fused_kernel(x_ref, w_ref, b_ref, o_ref, *, wpad):
    m2 = o_ref.shape[1]
    acc = None
    for ki in range(5):
        for kj in range(5):
            off = ki * wpad + kj
            a = x_ref[0, off:off + m2, :]                     # (m2, 64) bf16
            d = jnp.dot(a, w_ref[ki * 5 + kj],
                        preferred_element_type=jnp.float32)   # (m2, 256) f32
            acc = d if acc is None else acc + d
    o_ref[0] = jnp.maximum(acc + b_ref[...], 0.0)


def conv2_relu(x2, w2, b2, *, hp, wpad):
    n, rpad, cin = x2.shape
    m2 = hp * wpad
    kern = functools.partial(_conv2_fused_kernel, wpad=wpad)
    return pl.pallas_call(
        kern,
        out_shape=jax.ShapeDtypeStruct((n, m2, 256), jnp.float32),
        grid=(n,),
        in_specs=[
            pl.BlockSpec((1, rpad, cin), lambda i: (i, 0, 0)),  # per-image input
            pl.BlockSpec((25, 64, 256), lambda i: (0, 0, 0)),   # weights, resident
            pl.BlockSpec((1, 256), lambda i: (0, 0)),           # bias, resident
        ],
        out_specs=pl.BlockSpec((1, m2, 256), lambda i: (i, 0, 0)),
        compiler_params=pltpu.CompilerParams(
            dimension_semantics=("parallel",),
            vmem_limit_bytes=64 * 1024 * 1024),
    )(x2, w2, b2)


# ------------------------------ JAX glue ----------------------------------

def prefilter_forward(x, params):
    n, _, h_in, w_in = x.shape

    # conv1 / pool geometry (PyTorch semantics).
    h1 = (h_in + 4 - 11) // 4 + 1
    w1 = (w_in + 4 - 11) // 4 + 1
    hp = (h1 - 3) // 2 + 1
    wp = (w1 - 3) // 2 + 1
    hr = (h1 + 1) // 2                   # parity-grid height (even-row count)
    wc = _round_up((w1 + 1) // 2, 8)     # parity-grid width, 8-aligned sublanes
    kp = _round_up(11 * 11 * 3, 128)     # 363 -> 384

    # ---- parameters: im2col-ordered, lane-dense, bf16 ----
    w1p = params["w1"].transpose(2, 3, 1, 0).reshape(11 * 11 * 3, 64)
    w1p = jnp.pad(w1p, ((0, kp - 363), (0, 64))).astype(jnp.bfloat16)   # (384, 128)
    b1p = jnp.pad(params["b1"], (0, 64)).reshape(1, 128).astype(jnp.float32)
    w2p = params["w2"].transpose(2, 3, 1, 0)                            # (5,5,64,192)
    w2p = jnp.pad(w2p, ((0, 0), (0, 0), (0, 0), (0, 64)))               # Cout -> 256
    w2p = w2p.reshape(25, 64, 256).astype(jnp.bfloat16)
    b2p = jnp.pad(params["b2"], (0, 64)).reshape(1, 256).astype(jnp.float32)

    # ---- conv1 im2col (XLA side), parity-reordered so the fused in-kernel
    #      max pool only ever touches contiguous static slices ----
    x_nhwc = x.transpose(0, 2, 3, 1).astype(jnp.bfloat16)
    xp = jnp.pad(x_nhwc, ((0, 0), (2, 2), (2, 2), (0, 0)))
    taps = []
    for ki in range(11):
        for kj in range(11):
            taps.append(xp[:, ki:ki + 4 * (h1 - 1) + 1:4,
                              kj:kj + 4 * (w1 - 1) + 1:4, :])
    t = jnp.stack(taps, axis=3).reshape(n, h1, w1, 363)          # tap-major, ch-fastest
    t = jnp.pad(t, ((0, 0), (0, 2 * hr - h1), (0, 2 * wc - w1), (0, kp - 363)))
    t = t.reshape(n, hr, 2, wc, 2, kp).transpose(0, 2, 4, 1, 3, 5)   # (n, rp, cp, hr, wc, K)
    a1 = t.reshape(n, 4 * hr * wc, kp)

    # ---- Kernel 1: conv1 + bias + ReLU + MaxPool(3, 2), fused ----
    pooled = conv1_relu_maxpool(a1, w1p, b1p, hr=hr, wc=wc, hp=hp)   # (n, hp*wc, 128) bf16
    pooled = pooled.reshape(n, hp, wc, 128)[:, :, :wp, :64]          # drop pads, Cin=64

    # ---- conv2 input: zero-pad (2 top / 3 bottom / 2 left / 2 right) and
    #      flatten spatially so each 5x5 tap is a contiguous row slice in the
    #      kernel (the extra bottom row absorbs the tap-offset overrun) ----
    wpad = wp + 4
    x2 = jnp.pad(pooled, ((0, 0), (2, 3), (2, 2), (0, 0)))           # (n, hp+5, wpad, 64)
    x2 = x2.reshape(n, (hp + 5) * wpad, 64)

    # ---- Kernel 2: conv2 (fused im2col) + bias + ReLU ----
    y2 = conv2_relu(x2, w2p, b2p, hp=hp, wpad=wpad)                  # (n, hp*wpad, 256) f32
    y2 = y2.reshape(n, hp, wpad, 256)[:, :, :wp, :192]
    return y2.transpose(0, 3, 1, 2)                                  # NCHW out


def reference_forward(x, params):
    """Pure-JAX reference (lax.conv + reduce_window) with PyTorch semantics."""
    w1, b1, w2, b2 = params["w1"], params["b1"], params["w2"], params["b2"]
    dn = ("NCHW", "OIHW", "NCHW")
    y = lax.conv_general_dilated(x, w1, (4, 4), ((2, 2), (2, 2)),
                                 dimension_numbers=dn,
                                 precision=lax.Precision.HIGHEST)
    y = jnp.maximum(y + b1.reshape(1, -1, 1, 1), 0.0)
    y = lax.reduce_window(y, -jnp.inf, lax.max,
                          (1, 1, 3, 3), (1, 1, 2, 2), "VALID")
    y = lax.conv_general_dilated(y, w2, (1, 1), ((2, 2), (2, 2)),
                                 dimension_numbers=dn,
                                 precision=lax.Precision.HIGHEST)
    y = jnp.maximum(y + b2.reshape(1, -1, 1, 1), 0.0)
    return y


if __name__ == "__main__":
    key = jax.random.PRNGKey(0)
    kx, k1, k2, k3, k4 = jax.random.split(key, 5)

    # Small input consistent with the module: NCHW, 3 channels, 64x64 spatial.
    x = jax.random.normal(kx, (2, 3, 64, 64), dtype=jnp.float32)

    # Deterministic synthetic parameters (shapes from nn.Conv2d in __init__).
    params = {
        "w1": jax.random.normal(k1, (64, 3, 11, 11), jnp.float32)
              * (1.0 / np.sqrt(3 * 11 * 11)),
        "b1": jax.random.normal(k2, (64,), jnp.float32) * 0.05,
        "w2": jax.random.normal(k3, (192, 64, 5, 5), jnp.float32)
              * (1.0 / np.sqrt(64 * 5 * 5)),
        "b2": jax.random.normal(k4, (192,), jnp.float32) * 0.05,
    }

    out = jax.block_until_ready(jax.jit(prefilter_forward)(x, params))
    ref = jax.block_until_ready(reference_forward(x, params))
    assert out.shape == (2, 192, 7, 7), out.shape

    # bf16 MXU inputs vs. a Precision.HIGHEST f32 reference -> use a
    # bf16-appropriate tolerance (expected error is O(1e-3)).
    if not np.allclose(np.asarray(out), np.asarray(ref), atol=3e-2, rtol=2e-2):
        err = np.max(np.abs(np.asarray(out) - np.asarray(ref)))
        raise RuntimeError(
            f"Pallas PreFilter output mismatch vs reference (max abs err {err})")

    print("KERNEL_OK")
</pallas_src>

<mosaic_0001>
module attributes {stable_mosaic.version = 11 : i64} {
  func.func @_conv1_pool_kernel(%arg0: i32, %arg1: memref<1x256x384xbf16, #tpu.memory_space<vmem>>, %arg2: memref<384x128xbf16, #tpu.memory_space<vmem>>, %arg3: memref<1x128xf32, #tpu.memory_space<vmem>>, %arg4: memref<1x56x128xbf16, #tpu.memory_space<vmem>>) attributes {dimension_semantics = [#tpu.dimension_semantics<parallel>], iteration_bounds = array<i64: 2>, scalar_prefetch = 0 : i64, scratch_operands = 0 : i64, tpu.core_type = #tpu.core_type<tc>, window_params = [{transform_indices = @transform_0, window_bounds = array<i64: 1, 256, 384>}, {pipeline_mode = #tpu.pipeline_mode<synchronous>, transform_indices = @transform_1, window_bounds = array<i64: 384, 128>}, {pipeline_mode = #tpu.pipeline_mode<synchronous>, transform_indices = @transform_2, window_bounds = array<i64: 1, 128>}, {transform_indices = @transform_3, window_bounds = array<i64: 1, 56, 128>}]} {
    %c0 = arith.constant 0 : index
    %c0_0 = arith.constant 0 : index
    %c0_1 = arith.constant 0 : index
    %0 = vector.load %arg1[%c0, %c0_0, %c0_1] : memref<1x256x384xbf16, #tpu.memory_space<vmem>>, vector<1x256x384xbf16>
    %1 = vector.shape_cast %0 : vector<1x256x384xbf16> to vector<256x384xbf16>
    %c0_2 = arith.constant 0 : index
    %c0_3 = arith.constant 0 : index
    %2 = vector.load %arg2[%c0_2, %c0_3] : memref<384x128xbf16, #tpu.memory_space<vmem>>, vector<384x128xbf16>
    %cst = arith.constant dense<0.000000e+00> : vector<256x128xf32>
    %3 = tpu.matmul %1, %2, %cst {dimension_numbers = #tpu.dot_dimension_numbers<[1], [0], [0], [1], [0, 0, 1, 1], [], []>} : vector<256x384xbf16>, vector<384x128xbf16>, vector<256x128xf32> -> vector<256x128xf32>
    %4 = vector.extract_strided_slice %3 {offsets = [0, 0], sizes = [56, 128], strides = [1, 1]} : vector<256x128xf32> to vector<56x128xf32>
    %5 = vector.extract_strided_slice %3 {offsets = [1, 0], sizes = [56, 128], strides = [1, 1]} : vector<256x128xf32> to vector<56x128xf32>
    %6 = arith.maximumf %4, %5 : vector<56x128xf32>
    %7 = vector.extract_strided_slice %3 {offsets = [8, 0], sizes = [56, 128], strides = [1, 1]} : vector<256x128xf32> to vector<56x128xf32>
    %8 = arith.maximumf %6, %7 : vector<56x128xf32>
    %9 = vector.extract_strided_slice %3 {offsets = [9, 0], sizes = [56, 128], strides = [1, 1]} : vector<256x128xf32> to vector<56x128xf32>
    %10 = arith.maximumf %8, %9 : vector<56x128xf32>
    %11 = vector.extract_strided_slice %3 {offsets = [64, 0], sizes = [56, 128], strides = [1, 1]} : vector<256x128xf32> to vector<56x128xf32>
    %12 = arith.maximumf %10, %11 : vector<56x128xf32>
    %13 = vector.extract_strided_slice %3 {offsets = [72, 0], sizes = [56, 128], strides = [1, 1]} : vector<256x128xf32> to vector<56x128xf32>
    %14 = arith.maximumf %12, %13 : vector<56x128xf32>
    %15 = vector.extract_strided_slice %3 {offsets = [128, 0], sizes = [56, 128], strides = [1, 1]} : vector<256x128xf32> to vector<56x128xf32>
    %16 = arith.maximumf %14, %15 : vector<56x128xf32>
    %17 = vector.extract_strided_slice %3 {offsets = [129, 0], sizes = [56, 128], strides = [1, 1]} : vector<256x128xf32> to vector<56x128xf32>
    %18 = arith.maximumf %16, %17 : vector<56x128xf32>
    %19 = vector.extract_strided_slice %3 {offsets = [192, 0], sizes = [56, 128], strides = [1, 1]} : vector<256x128xf32> to vector<56x128xf32>
    %20 = arith.maximumf %18, %19 : vector<56x128xf32>
    %c0_4 = arith.constant 0 : index
    %c0_5 = arith.constant 0 : index
    %21 = vector.load %arg3[%c0_4, %c0_5] : memref<1x128xf32, #tpu.memory_space<vmem>>, vector<1x128xf32>
    %22 = vector.broadcast %21 : vector<1x128xf32> to vector<56x128xf32>
    %23 = arith.addf %20, %22 : vector<56x128xf32>
    %cst_6 = arith.constant 0.000000e+00 : f32
    %24 = vector.broadcast %cst_6 : f32 to vector<56x128xf32>
    %25 = arith.maximumf %23, %24 : vector<56x128xf32>
    %26 = arith.truncf %25 : vector<56x128xf32> to vector<56x128xbf16>
    %c0_7 = arith.constant 0 : index
    %c0_8 = arith.constant 0 : index
    %c0_9 = arith.constant 0 : index
    %27 = vector.load %arg4[%c0_7, %c0_8, %c0_9] : memref<1x56x128xbf16, #tpu.memory_space<vmem>>, vector<1x56x128xbf16>
    %28 = vector.shape_cast %27 : vector<1x56x128xbf16> to vector<56x128xbf16>
    %29 = vector.shape_cast %26 : vector<56x128xbf16> to vector<1x56x128xbf16>
    tpu.vector_store %arg4[%c0_7, %c0_8, %c0_9], %29 {strides = array<i32>} : memref<1x56x128xbf16, #tpu.memory_space<vmem>>, vector<1x56x128xbf16>,
    return
  }
  func.func @transform_0(%arg0: i32) -> (i32, i32, i32) {
    %c0_i32 = arith.constant 0 : i32
    %c0_i32_0 = arith.constant 0 : i32
    %c0_i32_1 = arith.constant 0 : i32
    return %arg0, %c0_i32, %c0_i32_0 : i32, i32, i32
  }
  func.func @transform_1(%arg0: i32) -> (i32, i32) {
    %c0_i32 = arith.constant 0 : i32
    %c0_i32_0 = arith.constant 0 : i32
    %c0_i32_1 = arith.constant 0 : i32
    return %c0_i32, %c0_i32_0 : i32, i32
  }
  func.func @transform_2(%arg0: i32) -> (i32, i32) {
    %c0_i32 = arith.constant 0 : i32
    %c0_i32_0 = arith.constant 0 : i32
    %c0_i32_1 = arith.constant 0 : i32
    return %c0_i32, %c0_i32_0 : i32, i32
  }
  func.func @transform_3(%arg0: i32) -> (i32, i32, i32) {
    %c0_i32 = arith.constant 0 : i32
    %c0_i32_0 = arith.constant 0 : i32
    %c0_i32_1 = arith.constant 0 : i32
    return %arg0, %c0_i32, %c0_i32_0 : i32, i32, i32
  }
}

module attributes {stable_mosaic.version = 11 : i64} {
  func.func @_conv2_fused_kernel(%arg0: i32, %arg1: memref<1x132x64xbf16, #tpu.memory_space<vmem>>, %arg2: memref<25x64x256xbf16, #tpu.memory_space<vmem>>, %arg3: memref<1x256xf32, #tpu.memory_space<vmem>>, %arg4: memref<1x77x256xf32, #tpu.memory_space<vmem>>) attributes {dimension_semantics = [#tpu.dimension_semantics<parallel>], iteration_bounds = array<i64: 2>, scalar_prefetch = 0 : i64, scratch_operands = 0 : i64, tpu.core_type = #tpu.core_type<tc>, window_params = [{transform_indices = @transform_0, window_bounds = array<i64: 1, 132, 64>}, {pipeline_mode = #tpu.pipeline_mode<synchronous>, transform_indices = @transform_1, window_bounds = array<i64: 25, 64, 256>}, {pipeline_mode = #tpu.pipeline_mode<synchronous>, transform_indices = @transform_2, window_bounds = array<i64: 1, 256>}, {transform_indices = @transform_3, window_bounds = array<i64: 1, 77, 256>}]} {
    %c0 = arith.constant 0 : index
    %c0_0 = arith.constant 0 : index
    %c0_1 = arith.constant 0 : index
    %0 = vector.load %arg1[%c0, %c0_0, %c0_1] : memref<1x132x64xbf16, #tpu.memory_space<vmem>>, vector<1x77x64xbf16>
    %1 = vector.shape_cast %0 : vector<1x77x64xbf16> to vector<77x64xbf16>
    %c0_2 = arith.constant 0 : index
    %c0_3 = arith.constant 0 : index
    %c0_4 = arith.constant 0 : index
    %2 = vector.load %arg2[%c0_2, %c0_3, %c0_4] : memref<25x64x256xbf16, #tpu.memory_space<vmem>>, vector<1x64x256xbf16>
    %3 = vector.shape_cast %2 : vector<1x64x256xbf16> to vector<64x256xbf16>
    %cst = arith.constant dense<0.000000e+00> : vector<77x256xf32>
    %4 = tpu.matmul %1, %3, %cst {dimension_numbers = #tpu.dot_dimension_numbers<[1], [0], [0], [1], [0, 0, 1, 1], [], []>} : vector<77x64xbf16>, vector<64x256xbf16>, vector<77x256xf32> -> vector<77x256xf32>
    %c0_5 = arith.constant 0 : index
    %c1 = arith.constant 1 : index
    %c0_6 = arith.constant 0 : index
    %5 = vector.load %arg1[%c0_5, %c1, %c0_6] : memref<1x132x64xbf16, #tpu.memory_space<vmem>>, vector<1x77x64xbf16>
    %6 = vector.shape_cast %5 : vector<1x77x64xbf16> to vector<77x64xbf16>
    %c1_7 = arith.constant 1 : index
    %c0_8 = arith.constant 0 : index
    %c0_9 = arith.constant 0 : index
    %7 = vector.load %arg2[%c1_7, %c0_8, %c0_9] : memref<25x64x256xbf16, #tpu.memory_space<vmem>>, vector<1x64x256xbf16>
    %8 = vector.shape_cast %7 : vector<1x64x256xbf16> to vector<64x256xbf16>
    %cst_10 = arith.constant dense<0.000000e+00> : vector<77x256xf32>
    %9 = tpu.matmul %6, %8, %cst_10 {dimension_numbers = #tpu.dot_dimension_numbers<[1], [0], [0], [1], [0, 0, 1, 1], [], []>} : vector<77x64xbf16>, vector<64x256xbf16>, vector<77x256xf32> -> vector<77x256xf32>
    %10 = arith.addf %4, %9 : vector<77x256xf32>
    %c0_11 = arith.constant 0 : index
    %c2 = arith.constant 2 : index
    %c0_12 = arith.constant 0 : index
    %11 = vector.load %arg1[%c0_11, %c2, %c0_12] : memref<1x132x64xbf16, #tpu.memory_space<vmem>>, vector<1x77x64xbf16>
    %12 = vector.shape_cast %11 : vector<1x77x64xbf16> to vector<77x64xbf16>
    %c2_13 = arith.constant 2 : index
    %c0_14 = arith.constant 0 : index
    %c0_15 = arith.constant 0 : index
    %13 = vector.load %arg2[%c2_13, %c0_14, %c0_15] : memref<25x64x256xbf16, #tpu.memory_space<vmem>>, vector<1x64x256xbf16>
    %14 = vector.shape_cast %13 : vector<1x64x256xbf16> to vector<64x256xbf16>
    %cst_16 = arith.constant dense<0.000000e+00> : vector<77x256xf32>
    %15 = tpu.matmul %12, %14, %cst_16 {dimension_numbers = #tpu.dot_dimension_numbers<[1], [0], [0], [1], [0, 0, 1, 1], [], []>} : vector<77x64xbf16>, vector<64x256xbf16>, vector<77x256xf32> -> vector<77x256xf32>
    %16 = arith.addf %10, %15 : vector<77x256xf32>
    %c0_17 = arith.constant 0 : index
    %c3 = arith.constant 3 : index
    %c0_18 = arith.constant 0 : index
    %17 = vector.load %arg1[%c0_17, %c3, %c0_18] : memref<1x132x64xbf16, #tpu.memory_space<vmem>>, vector<1x77x64xbf16>
    %18 = vector.shape_cast %17 : vector<1x77x64xbf16> to vector<77x64xbf16>
    %c3_19 = arith.constant 3 : index
    %c0_20 = arith.constant 0 : index
    %c0_21 = arith.constant 0 : index
    %19 = vector.load %arg2[%c3_19, %c0_20, %c0_21] : memref<25x64x256xbf16, #tpu.memory_space<vmem>>, vector<1x64x256xbf16>
    %20 = vector.shape_cast %19 : vector<1x64x256xbf16> to vector<64x256xbf16>
    %cst_22 = arith.constant dense<0.000000e+00> : vector<77x256xf32>
    %21 = tpu.matmul %18, %20, %cst_22 {dimension_numbers = #tpu.dot_dimension_numbers<[1], [0], [0], [1], [0, 0, 1, 1], [], []>} : vector<77x64xbf16>, vector<64x256xbf16>, vector<77x256xf32> -> vector<77x256xf32>
    %22 = arith.addf %16, %21 : vector<77x256xf32>
    %c0_23 = arith.constant 0 : index
    %c4 = arith.constant 4 : index
    %c0_24 = arith.constant 0 : index
    %23 = vector.load %arg1[%c0_23, %c4, %c0_24] : memref<1x132x64xbf16, #tpu.memory_space<vmem>>, vector<1x77x64xbf16>
    %24 = vector.shape_cast %23 : vector<1x77x64xbf16> to vector<77x64xbf16>
    %c4_25 = arith.constant 4 : index
    %c0_26 = arith.constant 0 : index
    %c0_27 = arith.constant 0 : index
    %25 = vector.load %arg2[%c4_25, %c0_26, %c0_27] : memref<25x64x256xbf16, #tpu.memory_space<vmem>>, vector<1x64x256xbf16>
    %26 = vector.shape_cast %25 : vector<1x64x256xbf16> to vector<64x256xbf16>
    %cst_28 = arith.constant dense<0.000000e+00> : vector<77x256xf32>
    %27 = tpu.matmul %24, %26, %cst_28 {dimension_numbers = #tpu.dot_dimension_numbers<[1], [0], [0], [1], [0, 0, 1, 1], [], []>} : vector<77x64xbf16>, vector<64x256xbf16>, vector<77x256xf32> -> vector<77x256xf32>
    %28 = arith.addf %22, %27 : vector<77x256xf32>
    %c0_29 = arith.constant 0 : index
    %c11 = arith.constant 11 : index
    %c0_30 = arith.constant 0 : index
    %29 = vector.load %arg1[%c0_29, %c11, %c0_30] : memref<1x132x64xbf16, #tpu.memory_space<vmem>>, vector<1x77x64xbf16>
    %30 = vector.shape_cast %29 : vector<1x77x64xbf16> to vector<77x64xbf16>
    %c5 = arith.constant 5 : index
    %c0_31 = arith.constant 0 : index
    %c0_32 = arith.constant 0 : index
    %31 = vector.load %arg2[%c5, %c0_31, %c0_32] : memref<25x64x256xbf16, #tpu.memory_space<vmem>>, vector<1x64x256xbf16>
    %32 = vector.shape_cast %31 : vector<1x64x256xbf16> to vector<64x256xbf16>
    %cst_33 = arith.constant dense<0.000000e+00> : vector<77x256xf32>
    %33 = tpu.matmul %30, %32, %cst_33 {dimension_numbers = #tpu.dot_dimension_numbers<[1], [0], [0], [1], [0, 0, 1, 1], [], []>} : vector<77x64xbf16>, vector<64x256xbf16>, vector<77x256xf32> -> vector<77x256xf32>
    %34 = arith.addf %28, %33 : vector<77x256xf32>
    %c0_34 = arith.constant 0 : index
    %c12 = arith.constant 12 : index
    %c0_35 = arith.constant 0 : index
    %35 = vector.load %arg1[%c0_34, %c12, %c0_35] : memref<1x132x64xbf16, #tpu.memory_space<vmem>>, vector<1x77x64xbf16>
    %36 = vector.shape_cast %35 : vector<1x77x64xbf16> to vector<77x64xbf16>
    %c6 = arith.constant 6 : index
    %c0_36 = arith.constant 0 : index
    %c0_37 = arith.constant 0 : index
    %37 = vector.load %arg2[%c6, %c0_36, %c0_37] : memref<25x64x256xbf16, #tpu.memory_space<vmem>>, vector<1x64x256xbf16>
    %38 = vector.shape_cast %37 : vector<1x64x256xbf16> to vector<64x256xbf16>
    %cst_38 = arith.constant dense<0.000000e+00> : vector<77x256xf32>
    %39 = tpu.matmul %36, %38, %cst_38 {dimension_numbers = #tpu.dot_dimension_numbers<[1], [0], [0], [1], [0, 0, 1, 1], [], []>} : vector<77x64xbf16>, vector<64x256xbf16>, vector<77x256xf32> -> vector<77x256xf32>
    %40 = arith.addf %34, %39 : vector<77x256xf32>
    %c0_39 = arith.constant 0 : index
    %c13 = arith.constant 13 : index
    %c0_40 = arith.constant 0 : index
    %41 = vector.load %arg1[%c0_39, %c13, %c0_40] : memref<1x132x64xbf16, #tpu.memory_space<vmem>>, vector<1x77x64xbf16>
    %42 = vector.shape_cast %41 : vector<1x77x64xbf16> to vector<77x64xbf16>
    %c7 = arith.constant 7 : index
    %c0_41 = arith.constant 0 : index
    %c0_42 = arith.constant 0 : index
    %43 = vector.load %arg2[%c7, %c0_41, %c0_42] : memref<25x64x256xbf16, #tpu.memory_space<vmem>>, vector<1x64x256xbf16>
    %44 = vector.shape_cast %43 : vector<1x64x256xbf16> to vector<64x256xbf16>
    %cst_43 = arith.constant dense<0.000000e+00> : vector<77x256xf32>
    %45 = tpu.matmul %42, %44, %cst_43 {dimension_numbers = #tpu.dot_dimension_numbers<[1], [0], [0], [1], [0, 0, 1, 1], [], []>} : vector<77x64xbf16>, vector<64x256xbf16>, vector<77x256xf32> -> vector<77x256xf32>
    %46 = arith.addf %40, %45 : vector<77x256xf32>
    %c0_44 = arith.constant 0 : index
    %c14 = arith.constant 14 : index
    %c0_45 = arith.constant 0 : index
    %47 = vector.load %arg1[%c0_44, %c14, %c0_45] : memref<1x132x64xbf16, #tpu.memory_space<vmem>>, vector<1x77x64xbf16>
    %48 = vector.shape_cast %47 : vector<1x77x64xbf16> to vector<77x64xbf16>
    %c8 = arith.constant 8 : index
    %c0_46 = arith.constant 0 : index
    %c0_47 = arith.constant 0 : index
    %49 = vector.load %arg2[%c8, %c0_46, %c0_47] : memref<25x64x256xbf16, #tpu.memory_space<vmem>>, vector<1x64x256xbf16>
    %50 = vector.shape_cast %49 : vector<1x64x256xbf16> to vector<64x256xbf16>
    %cst_48 = arith.constant dense<0.000000e+00> : vector<77x256xf32>
    %51 = tpu.matmul %48, %50, %cst_48 {dimension_numbers = #tpu.dot_dimension_numbers<[1], [0], [0], [1], [0, 0, 1, 1], [], []>} : vector<77x64xbf16>, vector<64x256xbf16>, vector<77x256xf32> -> vector<77x256xf32>
    %52 = arith.addf %46, %51 : vector<77x256xf32>
    %c0_49 = arith.constant 0 : index
    %c15 = arith.constant 15 : index
    %c0_50 = arith.constant 0 : index
    %53 = vector.load %arg1[%c0_49, %c15, %c0_50] : memref<1x132x64xbf16, #tpu.memory_space<vmem>>, vector<1x77x64xbf16>
    %54 = vector.shape_cast %53 : vector<1x77x64xbf16> to vector<77x64xbf16>
    %c9 = arith.constant 9 : index
    %c0_51 = arith.constant 0 : index
    %c0_52 = arith.constant 0 : index
    %55 = vector.load %arg2[%c9, %c0_51, %c0_52] : memref<25x64x256xbf16, #tpu.memory_space<vmem>>, vector<1x64x256xbf16>
    %56 = vector.shape_cast %55 : vector<1x64x256xbf16> to vector<64x256xbf16>
    %cst_53 = arith.constant dense<0.000000e+00> : vector<77x256xf32>
    %57 = tpu.matmul %54, %56, %cst_53 {dimension_numbers = #tpu.dot_dimension_numbers<[1], [0], [0], [1], [0, 0, 1, 1], [], []>} : vector<77x64xbf16>, vector<64x256xbf16>, vector<77x256xf32> -> vector<77x256xf32>
    %58 = arith.addf %52, %57 : vector<77x256xf32>
    %c0_54 = arith.constant 0 : index
    %c22 = arith.constant 22 : index
    %c0_55 = arith.constant 0 : index
    %59 = vector.load %arg1[%c0_54, %c22, %c0_55] : memref<1x132x64xbf16, #tpu.memory_space<vmem>>, vector<1x77x64xbf16>
    %60 = vector.shape_cast %59 : vector<1x77x64xbf16> to vector<77x64xbf16>
    %c10 = arith.constant 10 : index
    %c0_56 = arith.constant 0 : index
    %c0_57 = arith.constant 0 : index
    %61 = vector.load %arg2[%c10, %c0_56, %c0_57] : memref<25x64x256xbf16, #tpu.memory_space<vmem>>, vector<1x64x256xbf16>
    %62 = vector.shape_cast %61 : vector<1x64x256xbf16> to vector<64x256xbf16>
    %cst_58 = arith.constant dense<0.000000e+00> : vector<77x256xf32>
    %63 = tpu.matmul %60, %62, %cst_58 {dimension_numbers = #tpu.dot_dimension_numbers<[1], [0], [0], [1], [0, 0, 1, 1], [], []>} : vector<77x64xbf16>, vector<64x256xbf16>, vector<77x256xf32> -> vector<77x256xf32>
    %64 = arith.addf %58, %63 : vector<77x256xf32>
    %c0_59 = arith.constant 0 : index
    %c23 = arith.constant 23 : index
    %c0_60 = arith.constant 0 : index
    %65 = vector.load %arg1[%c0_59, %c23, %c0_60] : memref<1x132x64xbf16, #tpu.memory_space<vmem>>, vector<1x77x64xbf16>
    %66 = vector.shape_cast %65 : vector<1x77x64xbf16> to vector<77x64xbf16>
    %c11_61 = arith.constant 11 : index
    %c0_62 = arith.constant 0 : index
    %c0_63 = arith.constant 0 : index
    %67 = vector.load %arg2[%c11_61, %c0_62, %c0_63] : memref<25x64x256xbf16, #tpu.memory_space<vmem>>, vector<1x64x256xbf16>
    %68 = vector.shape_cast %67 : vector<1x64x256xbf16> to vector<64x256xbf16>
    %cst_64 = arith.constant dense<0.000000e+00> : vector<77x256xf32>
    %69 = tpu.matmul %66, %68, %cst_64 {dimension_numbers = #tpu.dot_dimension_numbers<[1], [0], [0], [1], [0, 0, 1, 1], [], []>} : vector<77x64xbf16>, vector<64x256xbf16>, vector<77x256xf32> -> vector<77x256xf32>
    %70 = arith.addf %64, %69 : vector<77x256xf32>
    %c0_65 = arith.constant 0 : index
    %c24 = arith.constant 24 : index
    %c0_66 = arith.constant 0 : index
    %71 = vector.load %arg1[%c0_65, %c24, %c0_66] : memref<1x132x64xbf16, #tpu.memory_space<vmem>>, vector<1x77x64xbf16>
    %72 = vector.shape_cast %71 : vector<1x77x64xbf16> to vector<77x64xbf16>
    %c12_67 = arith.constant 12 : index
    %c0_68 = arith.constant 0 : index
    %c0_69 = arith.constant 0 : index
    %73 = vector.load %arg2[%c12_67, %c0_68, %c0_69] : memref<25x64x256xbf16, #tpu.memory_space<vmem>>, vector<1x64x256xbf16>
    %74 = vector.shape_cast %73 : vector<1x64x256xbf16> to vector<64x256xbf16>
    %cst_70 = arith.constant dense<0.000000e+00> : vector<77x256xf32>
    %75 = tpu.matmul %72, %74, %cst_70 {dimension_numbers = #tpu.dot_dimension_numbers<[1], [0], [0], [1], [0, 0, 1, 1], [], []>} : vector<77x64xbf16>, vector<64x256xbf16>, vector<77x256xf32> -> vector<77x256xf32>
    %76 = arith.addf %70, %75 : vector<77x256xf32>
    %c0_71 = arith.constant 0 : index
    %c25 = arith.constant 25 : index
    %c0_72 = arith.constant 0 : index
    %77 = vector.load %arg1[%c0_71, %c25, %c0_72] : memref<1x132x64xbf16, #tpu.memory_space<vmem>>, vector<1x77x64xbf16>
    %78 = vector.shape_cast %77 : vector<1x77x64xbf16> to vector<77x64xbf16>
    %c13_73 = arith.constant 13 : index
    %c0_74 = arith.constant 0 : index
    %c0_75 = arith.constant 0 : index
    %79 = vector.load %arg2[%c13_73, %c0_74, %c0_75] : memref<25x64x256xbf16, #tpu.memory_space<vmem>>, vector<1x64x256xbf16>
    %80 = vector.shape_cast %79 : vector<1x64x256xbf16> to vector<64x256xbf16>
    %cst_76 = arith.constant dense<0.000000e+00> : vector<77x256xf32>
    %81 = tpu.matmul %78, %80, %cst_76 {dimension_numbers = #tpu.dot_dimension_numbers<[1], [0], [0], [1], [0, 0, 1, 1], [], []>} : vector<77x64xbf16>, vector<64x256xbf16>, vector<77x256xf32> -> vector<77x256xf32>
    %82 = arith.addf %76, %81 : vector<77x256xf32>
    %c0_77 = arith.constant 0 : index
    %c26 = arith.constant 26 : index
    %c0_78 = arith.constant 0 : index
    %83 = vector.load %arg1[%c0_77, %c26, %c0_78] : memref<1x132x64xbf16, #tpu.memory_space<vmem>>, vector<1x77x64xbf16>
    %84 = vector.shape_cast %83 : vector<1x77x64xbf16> to vector<77x64xbf16>
    %c14_79 = arith.constant 14 : index
    %c0_80 = arith.constant 0 : index
    %c0_81 = arith.constant 0 : index
    %85 = vector.load %arg2[%c14_79, %c0_80, %c0_81] : memref<25x64x256xbf16, #tpu.memory_space<vmem>>, vector<1x64x256xbf16>
    %86 = vector.shape_cast %85 : vector<1x64x256xbf16> to vector<64x256xbf16>
    %cst_82 = arith.constant dense<0.000000e+00> : vector<77x256xf32>
    %87 = tpu.matmul %84, %86, %cst_82 {dimension_numbers = #tpu.dot_dimension_numbers<[1], [0], [0], [1], [0, 0, 1, 1], [], []>} : vector<77x64xbf16>, vector<64x256xbf16>, vector<77x256xf32> -> vector<77x256xf32>
    %88 = arith.addf %82, %87 : vector<77x256xf32>
    %c0_83 = arith.constant 0 : index
    %c33 = arith.constant 33 : index
    %c0_84 = arith.constant 0 : index
    %89 = vector.load %arg1[%c0_83, %c33, %c0_84] : memref<1x132x64xbf16, #tpu.memory_space<vmem>>, vector<1x77x64xbf16>
    %90 = vector.shape_cast %89 : vector<1x77x64xbf16> to vector<77x64xbf16>
    %c15_85 = arith.constant 15 : index
    %c0_86 = arith.constant 0 : index
    %c0_87 = arith.constant 0 : index
    %91 = vector.load %arg2[%c15_85, %c0_86, %c0_87] : memref<25x64x256xbf16, #tpu.memory_space<vmem>>, vector<1x64x256xbf16>
    %92 = vector.shape_cast %91 : vector<1x64x256xbf16> to vector<64x256xbf16>
    %cst_88 = arith.constant dense<0.000000e+00> : vector<77x256xf32>
    %93 = tpu.matmul %90, %92, %cst_88 {dimension_numbers = #tpu.dot_dimension_numbers<[1], [0], [0], [1], [0, 0, 1, 1], [], []>} : vector<77x64xbf16>, vector<64x256xbf16>, vector<77x256xf32> -> vector<77x256xf32>
    %94 = arith.addf %88, %93 : vector<77x256xf32>
    %c0_89 = arith.constant 0 : index
    %c34 = arith.constant 34 : index
    %c0_90 = arith.constant 0 : index
    %95 = vector.load %arg1[%c0_89, %c34, %c0_90] : memref<1x132x64xbf16, #tpu.memory_space<vmem>>, vector<1x77x64xbf16>
    %96 = vector.shape_cast %95 : vector<1x77x64xbf16> to vector<77x64xbf16>
    %c16 = arith.constant 16 : index
    %c0_91 = arith.constant 0 : index
    %c0_92 = arith.constant 0 : index
    %97 = vector.load %arg2[%c16, %c0_91, %c0_92] : memref<25x64x256xbf16, #tpu.memory_space<vmem>>, vector<1x64x256xbf16>
    %98 = vector.shape_cast %97 : vector<1x64x256xbf16> to vector<64x256xbf16>
    %cst_93 = arith.constant dense<0.000000e+00> : vector<77x256xf32>
    %99 = tpu.matmul %96, %98, %cst_93 {dimension_numbers = #tpu.dot_dimension_numbers<[1], [0], [0], [1], [0, 0, 1, 1], [], []>} : vector<77x64xbf16>, vector<64x256xbf16>, vector<77x256xf32> -> vector<77x256xf32>
    %100 = arith.addf %94, %99 : vector<77x256xf32>
    %c0_94 = arith.constant 0 : index
    %c35 = arith.constant 35 : index
    %c0_95 = arith.constant 0 : index
    %101 = vector.load %arg1[%c0_94, %c35, %c0_95] : memref<1x132x64xbf16, #tpu.memory_space<vmem>>, vector<1x77x64xbf16>
    %102 = vector.shape_cast %101 : vector<1x77x64xbf16> to vector<77x64xbf16>
    %c17 = arith.constant 17 : index
    %c0_96 = arith.constant 0 : index
    %c0_97 = arith.constant 0 : index
    %103 = vector.load %arg2[%c17, %c0_96, %c0_97] : memref<25x64x256xbf16, #tpu.memory_space<vmem>>, vector<1x64x256xbf16>
    %104 = vector.shape_cast %103 : vector<1x64x256xbf16> to vector<64x256xbf16>
    %cst_98 = arith.constant dense<0.000000e+00> : vector<77x256xf32>
    %105 = tpu.matmul %102, %104, %cst_98 {dimension_numbers = #tpu.dot_dimension_numbers<[1], [0], [0], [1], [0, 0, 1, 1], [], []>} : vector<77x64xbf16>, vector<64x256xbf16>, vector<77x256xf32> -> vector<77x256xf32>
    %106 = arith.addf %100, %105 : vector<77x256xf32>
    %c0_99 = arith.constant 0 : index
    %c36 = arith.constant 36 : index
    %c0_100 = arith.constant 0 : index
    %107 = vector.load %arg1[%c0_99, %c36, %c0_100] : memref<1x132x64xbf16, #tpu.memory_space<vmem>>, vector<1x77x64xbf16>
    %108 = vector.shape_cast %107 : vector<1x77x64xbf16> to vector<77x64xbf16>
    %c18 = arith.constant 18 : index
    %c0_101 = arith.constant 0 : index
    %c0_102 = arith.constant 0 : index
    %109 = vector.load %arg2[%c18, %c0_101, %c0_102] : memref<25x64x256xbf16, #tpu.memory_space<vmem>>, vector<1x64x256xbf16>
    %110 = vector.shape_cast %109 : vector<1x64x256xbf16> to vector<64x256xbf16>
    %cst_103 = arith.constant dense<0.000000e+00> : vector<77x256xf32>
    %111 = tpu.matmul %108, %110, %cst_103 {dimension_numbers = #tpu.dot_dimension_numbers<[1], [0], [0], [1], [0, 0, 1, 1], [], []>} : vector<77x64xbf16>, vector<64x256xbf16>, vector<77x256xf32> -> vector<77x256xf32>
    %112 = arith.addf %106, %111 : vector<77x256xf32>
    %c0_104 = arith.constant 0 : index
    %c37 = arith.constant 37 : index
    %c0_105 = arith.constant 0 : index
    %113 = vector.load %arg1[%c0_104, %c37, %c0_105] : memref<1x132x64xbf16, #tpu.memory_space<vmem>>, vector<1x77x64xbf16>
    %114 = vector.shape_cast %113 : vector<1x77x64xbf16> to vector<77x64xbf16>
    %c19 = arith.constant 19 : index
    %c0_106 = arith.constant 0 : index
    %c0_107 = arith.constant 0 : index
    %115 = vector.load %arg2[%c19, %c0_106, %c0_107] : memref<25x64x256xbf16, #tpu.memory_space<vmem>>, vector<1x64x256xbf16>
    %116 = vector.shape_cast %115 : vector<1x64x256xbf16> to vector<64x256xbf16>
    %cst_108 = arith.constant dense<0.000000e+00> : vector<77x256xf32>
    %117 = tpu.matmul %114, %116, %cst_108 {dimension_numbers = #tpu.dot_dimension_numbers<[1], [0], [0], [1], [0, 0, 1, 1], [], []>} : vector<77x64xbf16>, vector<64x256xbf16>, vector<77x256xf32> -> vector<77x256xf32>
    %118 = arith.addf %112, %117 : vector<77x256xf32>
    %c0_109 = arith.constant 0 : index
    %c44 = arith.constant 44 : index
    %c0_110 = arith.constant 0 : index
    %119 = vector.load %arg1[%c0_109, %c44, %c0_110] : memref<1x132x64xbf16, #tpu.memory_space<vmem>>, vector<1x77x64xbf16>
    %120 = vector.shape_cast %119 : vector<1x77x64xbf16> to vector<77x64xbf16>
    %c20 = arith.constant 20 : index
    %c0_111 = arith.constant 0 : index
    %c0_112 = arith.constant 0 : index
    %121 = vector.load %arg2[%c20, %c0_111, %c0_112] : memref<25x64x256xbf16, #tpu.memory_space<vmem>>, vector<1x64x256xbf16>
    %122 = vector.shape_cast %121 : vector<1x64x256xbf16> to vector<64x256xbf16>
    %cst_113 = arith.constant dense<0.000000e+00> : vector<77x256xf32>
    %123 = tpu.matmul %120, %122, %cst_113 {dimension_numbers = #tpu.dot_dimension_numbers<[1], [0], [0], [1], [0, 0, 1, 1], [], []>} : vector<77x64xbf16>, vector<64x256xbf16>, vector<77x256xf32> -> vector<77x256xf32>
    %124 = arith.addf %118, %123 : vector<77x256xf32>
    %c0_114 = arith.constant 0 : index
    %c45 = arith.constant 45 : index
    %c0_115 = arith.constant 0 : index
    %125 = vector.load %arg1[%c0_114, %c45, %c0_115] : memref<1x132x64xbf16, #tpu.memory_space<vmem>>, vector<1x77x64xbf16>
    %126 = vector.shape_cast %125 : vector<1x77x64xbf16> to vector<77x64xbf16>
    %c21 = arith.constant 21 : index
    %c0_116 = arith.constant 0 : index
    %c0_117 = arith.constant 0 : index
    %127 = vector.load %arg2[%c21, %c0_116, %c0_117] : memref<25x64x256xbf16, #tpu.memory_space<vmem>>, vector<1x64x256xbf16>
    %128 = vector.shape_cast %127 : vector<1x64x256xbf16> to vector<64x256xbf16>
    %cst_118 = arith.constant dense<0.000000e+00> : vector<77x256xf32>
    %129 = tpu.matmul %126, %128, %cst_118 {dimension_numbers = #tpu.dot_dimension_numbers<[1], [0], [0], [1], [0, 0, 1, 1], [], []>} : vector<77x64xbf16>, vector<64x256xbf16>, vector<77x256xf32> -> vector<77x256xf32>
    %130 = arith.addf %124, %129 : vector<77x256xf32>
    %c0_119 = arith.constant 0 : index
    %c46 = arith.constant 46 : index
    %c0_120 = arith.constant 0 : index
    %131 = vector.load %arg1[%c0_119, %c46, %c0_120] : memref<1x132x64xbf16, #tpu.memory_space<vmem>>, vector<1x77x64xbf16>
    %132 = vector.shape_cast %131 : vector<1x77x64xbf16> to vector<77x64xbf16>
    %c22_121 = arith.constant 22 : index
    %c0_122 = arith.constant 0 : index
    %c0_123 = arith.constant 0 : index
    %133 = vector.load %arg2[%c22_121, %c0_122, %c0_123] : memref<25x64x256xbf16, #tpu.memory_space<vmem>>, vector<1x64x256xbf16>
    %134 = vector.shape_cast %133 : vector<1x64x256xbf16> to vector<64x256xbf16>
    %cst_124 = arith.constant dense<0.000000e+00> : vector<77x256xf32>
    %135 = tpu.matmul %132, %134, %cst_124 {dimension_numbers = #tpu.dot_dimension_numbers<[1], [0], [0], [1], [0, 0, 1, 1], [], []>} : vector<77x64xbf16>, vector<64x256xbf16>, vector<77x256xf32> -> vector<77x256xf32>
    %136 = arith.addf %130, %135 : vector<77x256xf32>
    %c0_125 = arith.constant 0 : index
    %c47 = arith.constant 47 : index
    %c0_126 = arith.constant 0 : index
    %137 = vector.load %arg1[%c0_125, %c47, %c0_126] : memref<1x132x64xbf16, #tpu.memory_space<vmem>>, vector<1x77x64xbf16>
    %138 = vector.shape_cast %137 : vector<1x77x64xbf16> to vector<77x64xbf16>
    %c23_127 = arith.constant 23 : index
    %c0_128 = arith.constant 0 : index
    %c0_129 = arith.constant 0 : index
    %139 = vector.load %arg2[%c23_127, %c0_128, %c0_129] : memref<25x64x256xbf16, #tpu.memory_space<vmem>>, vector<1x64x256xbf16>
    %140 = vector.shape_cast %139 : vector<1x64x256xbf16> to vector<64x256xbf16>
    %cst_130 = arith.constant dense<0.000000e+00> : vector<77x256xf32>
    %141 = tpu.matmul %138, %140, %cst_130 {dimension_numbers = #tpu.dot_dimension_numbers<[1], [0], [0], [1], [0, 0, 1, 1], [], []>} : vector<77x64xbf16>, vector<64x256xbf16>, vector<77x256xf32> -> vector<77x256xf32>
    %142 = arith.addf %136, %141 : vector<77x256xf32>
    %c0_131 = arith.constant 0 : index
    %c48 = arith.constant 48 : index
    %c0_132 = arith.constant 0 : index
    %143 = vector.load %arg1[%c0_131, %c48, %c0_132] : memref<1x132x64xbf16, #tpu.memory_space<vmem>>, vector<1x77x64xbf16>
    %144 = vector.shape_cast %143 : vector<1x77x64xbf16> to vector<77x64xbf16>
    %c24_133 = arith.constant 24 : index
    %c0_134 = arith.constant 0 : index
    %c0_135 = arith.constant 0 : index
    %145 = vector.load %arg2[%c24_133, %c0_134, %c0_135] : memref<25x64x256xbf16, #tpu.memory_space<vmem>>, vector<1x64x256xbf16>
    %146 = vector.shape_cast %145 : vector<1x64x256xbf16> to vector<64x256xbf16>
    %cst_136 = arith.constant dense<0.000000e+00> : vector<77x256xf32>
    %147 = tpu.matmul %144, %146, %cst_136 {dimension_numbers = #tpu.dot_dimension_numbers<[1], [0], [0], [1], [0, 0, 1, 1], [], []>} : vector<77x64xbf16>, vector<64x256xbf16>, vector<77x256xf32> -> vector<77x256xf32>
    %148 = arith.addf %142, %147 : vector<77x256xf32>
    %c0_137 = arith.constant 0 : index
    %c0_138 = arith.constant 0 : index
    %149 = vector.load %arg3[%c0_137, %c0_138] : memref<1x256xf32, #tpu.memory_space<vmem>>, vector<1x256xf32>
    %150 = vector.broadcast %149 : vector<1x256xf32> to vector<77x256xf32>
    %151 = arith.addf %148, %150 : vector<77x256xf32>
    %cst_139 = arith.constant 0.000000e+00 : f32
    %152 = vector.broadcast %cst_139 : f32 to vector<77x256xf32>
    %153 = arith.maximumf %151, %152 : vector<77x256xf32>
    %c0_140 = arith.constant 0 : index
    %c0_141 = arith.constant 0 : index
    %c0_142 = arith.constant 0 : index
    %154 = vector.load %arg4[%c0_140, %c0_141, %c0_142] : memref<1x77x256xf32, #tpu.memory_space<vmem>>, vector<1x77x256xf32>
    %155 = vector.shape_cast %154 : vector<1x77x256xf32> to vector<77x256xf32>
    %156 = vector.shape_cast %153 : vector<77x256xf32> to vector<1x77x256xf32>
    tpu.vector_store %arg4[%c0_140, %c0_141, %c0_142], %156 {strides = array<i32>} : memref<1x77x256xf32, #tpu.memory_space<vmem>>, vector<1x77x256xf32>,
    return
  }
  func.func @transform_0(%arg0: i32) -> (i32, i32, i32) {
    %c0_i32 = arith.constant 0 : i32
    %c0_i32_0 = arith.constant 0 : i32
    %c0_i32_1 = arith.constant 0 : i32
    return %arg0, %c0_i32, %c0_i32_0 : i32, i32, i32
  }
  func.func @transform_1(%arg0: i32) -> (i32, i32, i32) {
    %c0_i32 = arith.constant 0 : i32
    %c0_i32_0 = arith.constant 0 : i32
    %c0_i32_1 = arith.constant 0 : i32
    %c0_i32_2 = arith.constant 0 : i32
    return %c0_i32, %c0_i32_0, %c0_i32_1 : i32, i32, i32
  }
  func.func @transform_2(%arg0: i32) -> (i32, i32) {
    %c0_i32 = arith.constant 0 : i32
    %c0_i32_0 = arith.constant 0 : i32
    %c0_i32_1 = arith.constant 0 : i32
    return %c0_i32, %c0_i32_0 : i32, i32
  }
  func.func @transform_3(%arg0: i32) -> (i32, i32, i32) {
    %c0_i32 = arith.constant 0 : i32
    %c0_i32_0 = arith.constant 0 : i32
    %c0_i32_1 = arith.constant 0 : i32
    return %arg0, %c0_i32, %c0_i32_0 : i32, i32, i32
  }
}

</mosaic_0001>

<bundles_post_ra>
// kernel: prefilter_forward.2
= control target key start
LH: loop header
LB: loop body
LE: loop exit
PB: predicated region body
PF: predicated region fallthrough
CT: control target
= control target key end

     0   :  { %8 = vsyncpa [#allocation3], 0  ;;  %s2380_s0 = inlined_call_operand.hbm [shape: bf16[2,256,384], index: 0, kind: input, shape index: {}]   ;;  %s2381_s1 = inlined_call_operand.hbm [shape: bf16[384,128], index: 1, kind: input, shape index: {}]   ;;  %s2382_s2 = inlined_call_operand.hbm [shape: f32[1,128], index: 2, kind: input, shape index: {}]   ;;  %s2383_s3 = inlined_call_operand.hbm [shape: bf16[2,56,128], index: 3, kind: output, shape index: {}]  }
   0x1   :  { %10 = vsyncpa [#allocation3 + $0x1], 0 }
   0x2   :  { %11 = vsyncpa [#allocation6], 0 }
   0x3   :  { %12 = vsyncpa [#allocation4], 0 }
   0x4   :  { %14 = vsyncpa [#allocation4 + $0x1], 0  ;;  %s2003_s12 = smov 0   ;;  %s2005_s13 = smov 0  }
   0x5   :  { %s2007_s14 = smov 0   ;;  %s2009_s15 = smov 0  }
   0x6 LB: > { %s2024_s16 = sadd.s32 4294967295, %s1971_s15   ;;  %s1333_s17 = sadd.s32 4294967294, %s1971_s15   ;;  %s1971_s15 = sphi %s2009_s15, %s2403_s15   ;;  %s1967_s14 = sphi %s2007_s14, %s2402_s14   ;;  %s1963_s13 = sphi %s2005_s13, %s2401_s13   ;;  %s1959_s12 = sphi %s2003_s12, %s2400_s12  }
   0x7   : > { %p40_p0 = scmp.ne.s32.totalorder %s1963_s13, %s1959_s12  ;;  %p2384_p1 = scmp.eq.s32.totalorder %s2024_s16, 0 }
   0x8   : > { %p112_p3 = scmp.eq.s32.totalorder %s1333_s17, 1  ;;  %p1334_p5 = scmp.ge.s32.totalorder %s1971_s15, 1 }
   0x9   : > { %p2033_p4 = por %p2384_p1, %p40_p0  ;;  %p119_p7 = scmp.lt.s32.totalorder %s1971_s15, 3 }
   0xa   : > { %p2038_p6 = por %p112_p3, %p40_p0  ;;  %s1973_s21 = smov [#allocation5]  }
   0xb   : > { %s2387_s18 = scalar_select %p2033_p4, 1, 0 }
   0xc   : > { %s2388_s19 = scalar_select %p2038_p6, 1, 0 }
   0xd   : > { %p2043_p8 = pnand %p1334_p5, %p119_p7  ;;  %s131_s22 = sshll.u32 %s1973_s21, 4  ;;  %s2047_s22 = int_to_ptr.vmem [resolvable:$true] %s131_s22 }
   0xe   : > { %s1974_s24 = smov [#allocation7]   ;;  %s1815_s28 = scalar_lea.hbm %s2381_s1, 3072 }
   0xf   : > { %p1666_p9 = pneg %p2043_p8  ;;  %s145_s25 = sshll.u32 %s1974_s24, 4  ;;  %s2058_s25 = int_to_ptr.vmem [resolvable:$true] %s145_s25 }
  0x10   : > { %p1816_p12 = scmp.ne.s32.totalorder %s2381_s1, %s1815_s28  ;;  %p1822_p5 = scmp.lt.u32.totalorder %s1815_s28, %s2381_s1 }
  0x11   : > { %p2054_p11 = pnand %p1666_p9, %p2384_p1 }
  0x13   : > { %p1817_p13 = pneg %p2054_p11 }
  0x15   : > { %p1818_p0 = pnand %p1817_p13, %p1816_p12 }
  0x17   : > { %p1819_p3 = pneg %p1818_p0 }
  0x19   : > { %p1824_p7 = pnand %p1822_p5, %p1819_p3 }
  0x1b   : > { %1827 = shalt.err (!%p1824_p7)
}
  0x1c   : > { %s1828_s6 = scalar_lea.vmem %s2047_s22, 3072  ;;  %p1836_p2 = scmp.lt.s32.totalorder %s2047_s22, %s2047_s22 }
  0x1d   : > { %p1829_p9 = scmp.ne.s32.totalorder %s2047_s22, %s1828_s6  ;;  %p1837_p12 = scmp.lt.s32.totalorder %s1828_s6, %s1828_s6 }
  0x1f   : > { %p1831_p10 = pnand %p1829_p9, %p1817_p13  ;;  %p1838_p0 = por %p1837_p12, %p1836_p2 }
  0x21   : > { %p1832_p1 = pneg %p1831_p10 }
  0x23   : > { %p1839_p6 = pnand %p1838_p0, %p1832_p1 }
  0x25   : > { %1842 = shalt.err (!%p1839_p6)
}
  0x26   : > { %s1975_s7 = smov 64   ;;  %s1976_s8 = smov 4  }
  0x27   : > { %1669 = dma.hbm_to_vmem [thread:$0]  (!%p2054_p11), %s2381_s1, 3072, %s2047_s22, [#allocation6], %s1975_s7, %s1975_s7, %s1976_s8  }
  0x28   : > { %s1843_s21 = scalar_lea.hbm %s2382_s2, 16 }
  0x29   : > { %p1844_p2 = scmp.ne.s32.totalorder %s2382_s2, %s1843_s21  ;;  %p1850_p10 = scmp.lt.u32.totalorder %s1843_s21, %s2382_s2 }
  0x2b   : > { %p1846_p1 = pnand %p1844_p2, %p1817_p13 }
  0x2d   : > { %p1847_p6 = pneg %p1846_p1 }
  0x2f   : > { %p1852_p3 = pnand %p1850_p10, %p1847_p6 }
  0x31   : > { %1855 = shalt.err (!%p1852_p3)
}
  0x32   : > { %s1856_s22 = scalar_lea.vmem %s2058_s25, 16  ;;  %s1863_s29 = scalar_lea.vmem %s2058_s25, 32 }
  0x33   : > { %p1857_p5 = scmp.ne.s32.totalorder %s2058_s25, %s1856_s22  ;;  %p1864_p12 = scmp.lt.s32.totalorder %s2058_s25, %s2058_s25 }
  0x34   : > { %p1865_p0 = scmp.lt.s32.totalorder %s1863_s29, %s1856_s22 }
  0x35   : > { %p1859_p7 = pnand %p1857_p5, %p1817_p13 }
  0x36   : > { %p1866_p2 = por %p1865_p0, %p1864_p12 }
  0x37   : > { %p1860_p9 = pneg %p1859_p7 }
  0x39   : > { %p1867_p1 = pnand %p1866_p2, %p1860_p9 }
  0x3b   : > { %1870 = shalt.err (!%p1867_p1)
}
  0x3c   : > { %1672 = dma.hbm_to_vmem [thread:$0]  (!%p2054_p11), %s2382_s2, 16, %s2058_s25, [#allocation6]  }
  0x3d   : > { %s2114_s5 = sadd.s32 1, %s1971_s15   ;;  %s27_s23 = sadd.s32 1, %s1967_s14 }
  0x3e   : > { %s24_s6 = ssub.s32 %s1971_s15, %s2114_s5  ;;  %p34_p13 = scmp.ne.s32.totalorder %s1967_s14, %s1963_s13 }
  0x3f   : > { %p25_p6 = scmp.eq.s32.totalorder %s24_s6, 0  ;;  %p35_p10 = scmp.eq.s32.totalorder %s1971_s15, 0 }
  0x40   : > { %p2391_p3 = scmp.eq.s32.totalorder %s2024_s16, 1  ;;  %p1683_p7 = scmp.lt.s32.totalorder %s1971_s15, 2 }
  0x41   : > { %s2130_s8 = scalar_select %p25_p6, %s1967_s14, %s27_s23  }
  0x42   : > { %p2124_p5 = por %p2391_p3, %p34_p13  ;;  %p36_p9 = por %p35_p10, %p34_p13 }
  0x43   : > { %s156_s9 = sand.u32 1, %s1967_s14   ;;  %s1650_s25 = smul.u32 6144, %s1971_s15 }
  0x44   : > { %s2392_s7 = scalar_select %p2124_p5, 1, 0 }
  0x45   : > { %s1649_s10 = smul.u32 384, %s156_s9  ;;  %p2134_p11 = pnand %p1683_p7, %p36_p9 }
  0x46   : > { %s2141_s24 = scalar_lea.hbm %s2380_s0, %s1650_s25  ;;  %s2145_s28 = scalar_lea.sflag [#allocation3], %s156_s9 }
  0x47   : > { %s160_s26 = scalar_lea.vmem [#allocation2], %s1649_s10  ;;  %s1871_s22 = scalar_lea.hbm %s2141_s24, 6144 }
  0x48   : > { %s167_s27 = sshll.u32 %s160_s26, 4  ;;  %p1872_p12 = scmp.ne.s32.totalorder %s2141_s24, %s1871_s22  ;;  %s2143_s27 = int_to_ptr.vmem [resolvable:$true] %s167_s27 }
  0x49   : > { %p1873_p0 = pneg %p2134_p11  ;;  %s1876_s4 = scalar_lea.hbm %s2380_s0, 12288 }
  0x4a   : > { %p1877_p13 = scmp.lt.u32.totalorder %s2141_s24, %s2380_s0  ;;  %p1878_p6 = scmp.lt.u32.totalorder %s1876_s4, %s1871_s22 }
  0x4b   : > { %p1874_p2 = pnand %p1873_p0, %p1872_p12  ;;  %p1880_p3 = scmp.lt.u32.totalorder %s1871_s22, %s2141_s24 }
  0x4c   : > { %p1879_p10 = por %p1878_p6, %p1877_p13 }
  0x4d   : > { %p1875_p1 = pneg %p1874_p2 }
  0x4e   : > { %p1881_p7 = por %p1880_p3, %p1879_p10 }
  0x50   : > { %p1882_p9 = pnand %p1881_p7, %p1875_p1 }
  0x52   : > { %1885 = shalt.err (!%p1882_p9)
}
  0x53   : > { %s1886_s9 = scalar_lea.vmem %s2143_s27, 6144  ;;  %s1977_s10 = smov [#allocation2]  }
  0x54   : > { %p1887_p12 = scmp.ne.s32.totalorder %s2143_s27, %s1886_s9  ;;  %s1891_s25 = sshll.u32 %s1977_s10, 4  ;;  %s1892_s25 = int_to_ptr.vmem [resolvable:$false] %s1891_s25 }
  0x55   : > { %s1893_s17 = scalar_lea.vmem %s1892_s25, 12288  ;;  %p1894_p4 = scmp.lt.s32.totalorder %s2143_s27, %s1892_s25 }
  0x56   : > { %p1889_p2 = pnand %p1887_p12, %p1873_p0  ;;  %p1895_p13 = scmp.lt.s32.totalorder %s1893_s17, %s1886_s9 }
  0x58   : > { %p1890_p5 = pneg %p1889_p2  ;;  %p1896_p6 = por %p1895_p13, %p1894_p4 }
  0x5a   : > { %p1897_p10 = pnand %p1896_p6, %p1890_p5 }
  0x5c   : > { %1900 = shalt.err (!%p1897_p10)
}
  0x5d   : > { %s1978_s21 = smov 192   ;;  %s1979_s26 = smov 12  }
  0x5e   : > { %1676 = dma.hbm_to_vmem [thread:$0]  (!%p2134_p11), %s2141_s24, 6144, %s2143_s27, %s2145_s28, %s1978_s21, %s1978_s21, %s1979_s26  }
  0x5f   : > { %179 = sbr.rel (%p2043_p8) target bundleno = 474 (0x1da), region = 32  ;;  %s2176_s22 = sand.u32 (!%p2043_p8), 1, %s1963_s13  }
  0x60   : > { %s1651_s29 = smul.u32 (!%p2043_p8), 384, %s2176_s22  ;;  %s182_s30 = scalar_lea.sflag (!%p2043_p8), [#allocation3], %s2176_s22 }
  0x61   : > { %p2394_p4 = scmp.ne.s32.totalorder (!%p2043_p8), %s2387_s18, 0 }
  0x62   : > { %s2180_s4 = scalar_lea.vmem (!%p2043_p8), [#allocation2], %s1651_s29 }
  0x66   : > { %1946 = dma.done.wait (%p2394_p4), %s182_s30, 6144  }
  0x67   : > { %1948 = vsyncadd (%p2394_p4), %s182_s30, 4294961152  ;;  %p2395_p5 = scmp.eq.s32.totalorder %s2024_s16, 0 }
  0x69   : > { %1950 = dma.done.wait (%p2395_p5), [#allocation6], 3088   ;;  %p2396_p8 = pmov %p2395_p5 }
  0x6a   : > { %v1727_v0 = vld [vmem:[#allocation5 + $0x40] sm:$0xff]   ;;  %v1729_v2 = vld [vmem:[#allocation5 + $0x48] sm:$0xff]   ;;  %v1731_v4 = vld [vmem:[#allocation5 + $0x50] sm:$0xff]   ;;  %vm1057_vm0 = vcmask 1046528   ;;  %s1652_s18 = smul.u32 28, %s2176_s22  ;;  %s1228_s6 = scalar_lea.sflag [#allocation4], %s2176_s22 }
  0x6b   : > { %1952 = vsyncadd (%p2396_p8), [#allocation6], 4294964208  ;;  %v1728_v1 = vld [vmem:[#allocation5] sm:$0xff]   ;;  %1449 = vmatprep.subr.bf16.mxu0 %v1727_v0  ;;  %1633 = vmatprep.subr.bf16.mxu1 %v1727_v0  ;;  %v1730_v3 = vld [vmem:[#allocation5 + $0x8] sm:$0xff]   ;;  %s1653_s24 = smul.u32 448, %s2024_s16  ;;  %p2397_p0 = scmp.ne.s32.totalorder %s2392_s7, 0 }
  0x6c   : > { %1450 = vmatpush3.bf16.msra.mxu0 %v1728_v1  ;;  %1641 = vmatpush3.bf16.msra.mxu1 %v1728_v1  ;;  %v1732_v5 = vld [vmem:[#allocation5 + $0x10] sm:$0xff]   ;;  %v1733_v6 = vld [vmem:[#allocation5 + $0x58] sm:$0xff]   ;;  %v1735_v8 = vld [vmem:[#allocation5 + $0x60] sm:$0xff]   ;;  %s215_s20 = scalar_lea.vmem [#allocation8], %s1652_s18  ;;  %s1980_s16 = smov [#allocation8]  }
  0x6d   : > { %1451 = vmatprep.subr.bf16.mxu0 %v1729_v2  ;;  %1634 = vmatprep.subr.bf16.mxu1 %v1729_v2  ;;  %v1734_v7 = vld [vmem:[#allocation5 + $0x18] sm:$0xff]   ;;  %v1736_v9 = vld [vmem:[#allocation5 + $0x20] sm:$0xff]   ;;  %v1737_v10 = vld [vmem:[#allocation5 + $0x68] sm:$0xff]   ;;  %s1241_s11 = sshll.u32 %s215_s20, 4  ;;  %s2336_s23 = scalar_lea.hbm %s2383_s3, %s1653_s24  ;;  %s2331_s11 = int_to_ptr.vmem [resolvable:$true] %s1241_s11 }
  0x6e   : > { %v1745_v11 = vld [vmem:[%s2180_s4 + $0x4] ss:$12 sps:$4 sm:$0xff]   ;;  %v1738_v13 = vld [vmem:[#allocation5 + $0x28] sm:$0xff]   ;;  %v1741_v16 = vld [vmem:[#allocation5 + $0x78] sm:$0xff]   ;;  %s1901_s9 = scalar_lea.vmem %s2331_s11, 448  ;;  %s1905_s10 = sshll.u32 %s1980_s16, 4  ;;  %s1906_s10 = int_to_ptr.vmem [resolvable:$false] %s1905_s10 }
  0x6f   : > { %v1748_v12 = vld [vmem:[%s2180_s4 + $0x124] ss:$12 sps:$4 sm:$0xff]   ;;  %761 = vmatprep.mubr.bf16.mxu0 %v1745_v11  ;;  %v1742_v17 = vld [vmem:[#allocation5 + $0x38] sm:$0xff]   ;;  %v1743_v19 = vld [vmem:[%s2180_s4] ss:$12 sps:$4 sm:$0xff]   ;;  %p1902_p11 = scmp.ne.s32.totalorder %s2331_s11, %s1901_s9  ;;  %s1907_s25 = scalar_lea.vmem %s1906_s10, 896 }
  0x70   : > { %1452 = vmatpush3.bf16.msra.mxu0 %v1730_v3  ;;  %1642 = vmatpush3.bf16.msra.mxu1 %v1730_v3  ;;  %v1739_v14 = vld [vmem:[#allocation5 + $0x70] sm:$0xff]   ;;  %v1749_v18 = vld [vmem:[#allocation5 + $0x80] sm:$0xff]   ;;  %v1751_v21 = vld [vmem:[%s2180_s4 + $0x1c] ss:$12 sps:$4 sm:$0xff]   ;;  %p1908_p7 = scmp.lt.s32.totalorder %s2331_s11, %s1906_s10  ;;  %p1909_p9 = scmp.lt.s32.totalorder %s1907_s25, %s1901_s9 }
  0x71   : > { %1453 = vmatprep.subr.bf16.mxu0 %v1731_v4  ;;  %1635 = vmatprep.subr.bf16.mxu1 %v1731_v4  ;;  %v1740_v15 = vld [vmem:[#allocation5 + $0x30] sm:$0xff]   ;;  %v1746_v20 = vld [vmem:[%s2180_s4 + $0x120] ss:$12 sps:$4 sm:$0xff]   ;;  %v1753_v23 = vld [vmem:[%s2180_s4 + $0x13c] ss:$12 sps:$4 sm:$0xff]   ;;  %p1903_p1 = pnand %p1902_p11, %p2397_p0 }
  0x72   : > { %857 = vmatprep.mubr.bf16.mxu1 %v1748_v12  ;;  %v1750_v22 = vld [vmem:[#allocation5 + $0x88] sm:$0xff]   ;;  %v1755_v24 = vld [vmem:[%s2180_s4 + $0x18] ss:$12 sps:$4 sm:$0xff]   ;;  %v1757_v25 = vld [vmem:[#allocation5 + $0x90] sm:$0xff]   ;;  %p1910_p12 = por %p1909_p9, %p1908_p7 }
  0x73   : > { %v1756_v26 = vld [vmem:[%s2180_s4 + $0x138] ss:$12 sps:$4 sm:$0xff]   ;;  %v1759_v28 = vld [vmem:[%s2180_s4 + $0x34] ss:$12 sps:$4 sm:$0xff]   ;;  %v1763_v31 = vld [vmem:[%s2180_s4 + $0x30] ss:$12 sps:$4 sm:$0xff]   ;;  %p1904_p3 = pneg %p1903_p1 }
  0x74   : > { %1454 = vmatpush3.bf16.msra.mxu0 %v1732_v5  ;;  %1643 = vmatpush3.bf16.msra.mxu1 %v1732_v5  ;;  %v1758_v27 = vld [vmem:[#allocation5 + $0x98] sm:$0xff]   ;;  %v1761_v29 = vld [vmem:[%s2180_s4 + $0x154] ss:$12 sps:$4 sm:$0xff]   ;;  %v1766_v33 = vld [vmem:[#allocation5 + $0xa8] sm:$0xff]  }
  0x75   : > { %1455 = vmatprep.subr.bf16.mxu0 %v1733_v6  ;;  %1636 = vmatprep.subr.bf16.mxu1 %v1733_v6  ;;  %v1765_v30 = vld [vmem:[#allocation5 + $0xa0] sm:$0xff]   ;;  %v1764_v32 = vld [vmem:[%s2180_s4 + $0x150] ss:$12 sps:$4 sm:$0xff]   ;;  %v1767_v34 = vld [vmem:[%s2180_s4 + $0x4c] ss:$12 sps:$4 sm:$0xff]   ;;  %p1911_p2 = pnand %p1910_p12, %p1904_p3 }
  0x76   : > { %v1769_v35 = vld [vmem:[%s2180_s4 + $0x16c] ss:$12 sps:$4 sm:$0xff]   ;;  %v1773_v36 = vld [vmem:[#allocation5 + $0xb0] sm:$0xff]   ;;  %v1780_v44 = vld [vmem:[%s2180_s4 + $0x7c] ss:$12 sps:$4 sm:$0xff]  }
  0x77   : > { %v1771_v37 = vld [vmem:[%s2180_s4 + $0x48] ss:$12 sps:$4 sm:$0xff]   ;;  %v1775_v39 = vld [vmem:[%s2180_s4 + $0x64] ss:$12 sps:$4 sm:$0xff]   ;;  %v1774_v40 = vld [vmem:[#allocation5 + $0xb8] sm:$0xff]  }
  0x78   : > { %1456 = vmatpush3.bf16.msra.mxu0 %v1734_v7  ;;  %1644 = vmatpush3.bf16.msra.mxu1 %v1734_v7  ;;  %v1772_v38 = vld [vmem:[%s2180_s4 + $0x168] ss:$12 sps:$4 sm:$0xff]   ;;  %v1778_v42 = vld [vmem:[%s2180_s4 + $0x60] ss:$12 sps:$4 sm:$0xff]   ;;  %v1782_v45 = vld [vmem:[%s2180_s4 + $0x38] ss:$12 sps:$4 sm:$0xff]  }
  0x79   : > { %1457 = vmatprep.subr.bf16.mxu0 %v1735_v8  ;;  %1637 = vmatprep.subr.bf16.mxu1 %v1735_v8  ;;  %v1777_v41 = vld [vmem:[%s2180_s4 + $0x8] ss:$12 sps:$4 sm:$0xff]   ;;  %v1779_v43 = vld [vmem:[%s2180_s4 + $0x20] ss:$12 sps:$4 sm:$0xff]   ;;  %v1783_v46 = vld [vmem:[%s2180_s4 + $0x78] ss:$12 sps:$4 sm:$0xff]  }
  0x7a   : > { %v1784_v47 = vld [vmem:[%s2180_s4 + $0x50] ss:$12 sps:$4 sm:$0xff]   ;;  %v1785_v48 = vld [vmem:[%s2180_s4 + $0x94] ss:$12 sps:$4 sm:$0xff]   ;;  %v1790_v52 = vld [vmem:[%s2180_s4 + $0xac] ss:$12 sps:$4 sm:$0xff]  }
  0x7b   : > { %v1787_v49 = vld [vmem:[%s2180_s4 + $0x68] ss:$12 sps:$4 sm:$0xff]   ;;  %v1788_v50 = vld [vmem:[%s2180_s4 + $0x90] ss:$12 sps:$4 sm:$0xff]   ;;  %v1789_v51 = vld [vmem:[%s2180_s4 + $0x80] ss:$12 sps:$4 sm:$0xff]  }
  0x7c   : > { %1458 = vmatpush3.bf16.msra.mxu0 %v1736_v9  ;;  %1645 = vmatpush3.bf16.msra.mxu1 %v1736_v9  ;;  %v1792_v53 = vld [vmem:[%s2180_s4 + $0x98] ss:$12 sps:$4 sm:$0xff]   ;;  %v1793_v54 = vld [vmem:[%s2180_s4 + $0xa8] ss:$12 sps:$4 sm:$0xff]   ;;  %v1794_v55 = vld [vmem:[%s2180_s4 + $0xb0] ss:$12 sps:$4 sm:$0xff]  }
  0x7d   : > { %1459 = vmatprep.subr.bf16.mxu0 %v1737_v10  ;;  %1638 = vmatprep.subr.bf16.mxu1 %v1737_v10  ;;  %v1795_v56 = vld [vmem:[%s2180_s4 + $0xc4] ss:$12 sps:$4 sm:$0xff]   ;;  %v1797_v57 = vld [vmem:[%s2180_s4 + $0xc8] ss:$12 sps:$4 sm:$0xff]   ;;  %v1798_v58 = vld [vmem:[%s2180_s4 + $0xc0] ss:$12 sps:$4 sm:$0xff]  }
  0x7e   : > { %v1799_v59 = vld [vmem:[%s2180_s4 + $0xe0] ss:$12 sps:$4 sm:$0xff]   ;;  %v1800_v60 = vld [vmem:[%s2180_s4 + $0xdc] ss:$12 sps:$4 sm:$0xff]   ;;  %v1802_v61 = vld [vmem:[%s2180_s4 + $0xf8] ss:$12 sps:$4 sm:$0xff]  }
  0x7f   : > { %v1803_v62 = vld [vmem:[%s2180_s4 + $0xd8] ss:$12 sps:$4 sm:$0xff]   ;;  %v1804_v63 = vld [vmem:[%s2180_s4 + $0x110] ss:$12 sps:$4 sm:$0xff]   ;;  %v1805_v0 = vld [vmem:[%s2180_s4 + $0xf4] ss:$12 sps:$4 sm:$0xff]  }
  0x80   : > { %1460 = vmatpush3.bf16.msra.mxu0 %v1738_v13  ;;  %1646 = vmatpush3.bf16.msra.mxu1 %v1738_v13  ;;  %v1807_v1 = vld [vmem:[%s2180_s4 + $0x128] ss:$12 sps:$4 sm:$0xff]   ;;  %v1808_v2 = vld [vmem:[%s2180_s4 + $0xf0] ss:$12 sps:$4 sm:$0xff]   ;;  %v1809_v3 = vld [vmem:[%s2180_s4 + $0x140] ss:$12 sps:$4 sm:$0xff]  }
  0x81   : > { %1461 = vmatprep.subr.bf16.mxu0 %v1739_v14  ;;  %1639 = vmatprep.subr.bf16.mxu1 %v1739_v14  ;;  %v1810_v4 = vld [vmem:[%s2180_s4 + $0x10c] ss:$12 sps:$4 sm:$0xff]   ;;  %v1813_v6 = vld [vmem:[%s2180_s4 + $0x108] ss:$12 sps:$4 sm:$0xff]   ;;  %v1814_v7 = vld [vmem:[%s2180_s4 + $0x170] ss:$12 sps:$4 sm:$0xff]  }
  0x82   : > { %v1812_v5 = vld [vmem:[%s2180_s4 + $0x158] ss:$12 sps:$4 sm:$0xff]  }
  0x84   : > { %1462 = vmatpush3.bf16.msra.mxu0 %v1740_v15  ;;  %1647 = vmatpush3.bf16.msra.mxu1 %v1740_v15 }
  0x85   : > { %1463 = vmatprep.subr.bf16.mxu0 %v1741_v16  ;;  %1640 = vmatprep.subr.bf16.mxu1 %v1741_v16 }
  0x88   : > { %1464 = vmatpush3.bf16.msra.mxu0 %v1742_v17  ;;  %1648 = vmatpush3.bf16.msra.mxu1 %v1742_v17 }
  0x89   : > { %1585 = vmatprep.subr.bf16.mxu1 %v1749_v18 }
  0x8b   : > { %762 = vmatmul.mubr.bf16.vlgmr.msra.gmra.mrb[0].mxu0 %v1743_v19  ;;  %858 = vmatmul.mubr.bf16.vlgmr.msra.gmra.mrb[0].mxu1 %v1746_v20 }
  0x8c   : > { %1586 = vmatpush3.bf16.msra.mxu1 %v1749_v18  ;;  %769 = vmatprep.mubr.bf16.mxu0 %v1751_v21 }
  0x8d   : > { %1587 = vmatprep.subr.bf16.mxu1 %v1750_v22  ;;  %865 = vmatprep.mubr.bf16.mxu1 %v1753_v23 }
  0x90   : > { %1588 = vmatpush3.bf16.msra.mxu1 %v1750_v22 }
  0x91   : > { %1589 = vmatprep.subr.bf16.mxu1 %v1757_v25 }
  0x93   : > { %770 = vmatmul.mubr.bf16.gmra.mrb[4].mxu0 %v1755_v24  ;;  %866 = vmatmul.mubr.bf16.gmra.mrb[4].mxu1 %v1756_v26 }
  0x94   : > { %1590 = vmatpush3.bf16.msra.mxu1 %v1757_v25  ;;  %777 = vmatprep.mubr.bf16.mxu0 %v1759_v28 }
  0x95   : > { %1591 = vmatprep.subr.bf16.mxu1 %v1758_v27  ;;  %873 = vmatprep.mubr.bf16.mxu1 %v1761_v29 }
  0x98   : > { %1592 = vmatpush3.bf16.msra.mxu1 %v1758_v27 }
  0x99   : > { %1593 = vmatprep.subr.bf16.mxu1 %v1765_v30 }
  0x9b   : > { %778 = vmatmul.mubr.bf16.gmra.mrb[8].mxu0 %v1763_v31  ;;  %874 = vmatmul.mubr.bf16.gmra.mrb[8].mxu1 %v1764_v32 }
  0x9c   : > { %1594 = vmatpush3.bf16.msra.mxu1 %v1765_v30  ;;  %785 = vmatprep.mubr.bf16.mxu0 %v1767_v34 }
  0x9d   : > { %1595 = vmatprep.subr.bf16.mxu1 %v1766_v33  ;;  %881 = vmatprep.mubr.bf16.mxu1 %v1769_v35 }
  0xa0   : > { %1596 = vmatpush3.bf16.msra.mxu1 %v1766_v33 }
  0xa1   : > { %1597 = vmatprep.subr.bf16.mxu1 %v1773_v36 }
  0xa3   : > { %786 = vmatmul.mubr.bf16.gmra.mrb[12].mxu0 %v1771_v37  ;;  %882 = vmatmul.mubr.bf16.gmra.mrb[12].mxu1 %v1772_v38 }
  0xa4   : > { %1598 = vmatpush3.bf16.msra.mxu1 %v1773_v36  ;;  %793 = vmatprep.mubr.bf16.mxu0 %v1775_v39 }
  0xa5   : > { %1599 = vmatprep.subr.bf16.mxu1 %v1774_v40  ;;  %1601 = vmatprep.mubr.bf16.mxu1 %v1777_v41 }
  0xa8   : > { %1600 = vmatpush3.bf16.msra.mxu1 %v1774_v40 }
  0xab   : > { %794 = vmatmul.mubr.bf16.gmra.mrb[16].mxu0 %v1778_v42  ;;  %1602 = vmatmul.mubr.bf16.vlgmr.msra.gmra.mrb[16].mxu1 %v1779_v43 }
  0xac   : > { %801 = vmatprep.mubr.bf16.mxu0 %v1780_v44  ;;  %1605 = vmatprep.mubr.bf16.mxu1 %v1782_v45 }
  0xb3   : > { %802 = vmatmul.mubr.bf16.gmra.mrb[20].mxu0 %v1783_v46  ;;  %1606 = vmatmul.mubr.bf16.gmra.mrb[20].mxu1 %v1784_v47 }
  0xb4   : > { %809 = vmatprep.mubr.bf16.mxu0 %v1785_v48  ;;  %1609 = vmatprep.mubr.bf16.mxu1 %v1787_v49 }
  0xbb   : > { %810 = vmatmul.mubr.bf16.gmra.mrb[24].mxu0 %v1788_v50  ;;  %1610 = vmatmul.mubr.bf16.gmra.mrb[24].mxu1 %v1789_v51 }
  0xbc   : > { %817 = vmatprep.mubr.bf16.mxu0 %v1790_v52  ;;  %1613 = vmatprep.mubr.bf16.mxu1 %v1792_v53 }
  0xc3   : > { %818 = vmatmul.mubr.bf16.gmra.mrb[28].mxu0 %v1793_v54  ;;  %1614 = vmatmul.mubr.bf16.gmra.mrb[28].mxu1 %v1794_v55 }
  0xc4   : > { %825 = vmatprep.mubr.bf16.mxu0 %v1795_v56  ;;  %1617 = vmatprep.mubr.bf16.mxu1 %v1797_v57 }
  0xcb   : > { %826 = vmatmul.mubr.bf16.gmra.mrb[32].mxu0 %v1798_v58  ;;  %1618 = vmatmul.mubr.bf16.gmra.mrb[32].mxu1 %v1799_v59 }
  0xcc   : > { %833 = vmatprep.mubr.bf16.mxu0 %v1800_v60  ;;  %1621 = vmatprep.mubr.bf16.mxu1 %v1802_v61 }
  0xd3   : > { %834 = vmatmul.mubr.bf16.gmra.mrb[36].mxu0 %v1803_v62  ;;  %1622 = vmatmul.mubr.bf16.gmra.mrb[36].mxu1 %v1804_v63 }
  0xd4   : > { %841 = vmatprep.mubr.bf16.mxu0 %v1805_v0  ;;  %1625 = vmatprep.mubr.bf16.mxu1 %v1807_v1 }
  0xdb   : > { %842 = vmatmul.mubr.bf16.gmra.mrb[40].mxu0 %v1808_v2  ;;  %1626 = vmatmul.mubr.bf16.gmra.mrb[40].mxu1 %v1809_v3 }
  0xdc   : > { %849 = vmatprep.mubr.bf16.mxu0 %v1810_v4  ;;  %1629 = vmatprep.mubr.bf16.mxu1 %v1812_v5 }
  0xe3   : > { %850 = vmatmul.mubr.bf16.gmra.mrb[44].mxu0 %v1813_v6  ;;  %1630 = vmatmul.mubr.bf16.gmra.mrb[44].mxu1 %v1814_v7 }
 0x15e   : > { %v1465_v8 = vpop.f32.mrb[0].mxu0  ;;  %v1537_v9 = vpop.f32.mrb[0].mxu1 }
 0x15f   : > { %v1466_v10 = vpop.f32.mrb[1].mxu0  ;;  %v1538_v11 = vpop.f32.mrb[1].mxu1 }
 0x160   : > { %v1467_v12 = vadd.f32 %v1466_v10, %v1465_v8  ;;  %v1468_v13 = vpop.f32.mrb[2].mxu0  ;;  %v2238_v14 = vadd.f32 %v1538_v11, %v1537_v9  ;;  %v1540_v15 = vpop.f32.mrb[2].mxu1 }
 0x161   : > { %v1469_v16 = vpop.f32.mrb[3].mxu0  ;;  %v1541_v17 = vpop.f32.mrb[3].mxu1 }
 0x162   : > { %v1470_v18 = vadd.f32 %v1469_v16, %v1468_v13  ;;  %v2240_v19 = vadd.f32 %v1541_v17, %v1540_v15 }
 0x166   : > { %v1471_v20 = vpop.f32.mrb[4].mxu0  ;;  %v1543_v21 = vpop.f32.mrb[4].mxu1 }
 0x167   : > { %v1472_v22 = vpop.f32.mrb[5].mxu0  ;;  %v1544_v23 = vpop.f32.mrb[5].mxu1 }
 0x168   : > { %v1473_v24 = vadd.f32 %v1472_v22, %v1471_v20  ;;  %v1474_v25 = vpop.f32.mrb[6].mxu0  ;;  %v2242_v26 = vadd.f32 %v1544_v23, %v1543_v21  ;;  %v1546_v27 = vpop.f32.mrb[6].mxu1 }
 0x169   : > { %v1475_v28 = vpop.f32.mrb[7].mxu0  ;;  %v1547_v29 = vpop.f32.mrb[7].mxu1 }
 0x16a   : > { %v1476_v30 = vadd.f32 %v1475_v28, %v1474_v25  ;;  %v2244_v31 = vadd.f32 %v1547_v29, %v1546_v27 }
 0x16e   : > { %v1477_v32 = vpop.f32.mrb[8].mxu0  ;;  %v1549_v33 = vpop.f32.mrb[8].mxu1 }
 0x16f   : > { %v1478_v34 = vpop.f32.mrb[9].mxu0  ;;  %v1550_v35 = vpop.f32.mrb[9].mxu1 }
 0x170   : > { %v1479_v36 = vadd.f32 %v1478_v34, %v1477_v32  ;;  %v1480_v37 = vpop.f32.mrb[10].mxu0  ;;  %v2246_v38 = vadd.f32 %v1550_v35, %v1549_v33  ;;  %v1552_v39 = vpop.f32.mrb[10].mxu1 }
 0x171   : > { %v1481_v40 = vpop.f32.mrb[11].mxu0  ;;  %v1553_v41 = vpop.f32.mrb[11].mxu1 }
 0x172   : > { %v1482_v42 = vadd.f32 %v1481_v40, %v1480_v37  ;;  %v2248_v43 = vadd.f32 %v1553_v41, %v1552_v39 }
 0x176   : > { %v1483_v44 = vpop.f32.mrb[12].mxu0  ;;  %v1555_v45 = vpop.f32.mrb[12].mxu1 }
 0x177   : > { %v1484_v46 = vpop.f32.mrb[13].mxu0  ;;  %v1556_v47 = vpop.f32.mrb[13].mxu1 }
 0x178   : > { %v1485_v48 = vadd.f32 %v1484_v46, %v1483_v44  ;;  %v1486_v49 = vpop.f32.mrb[14].mxu0  ;;  %v2250_v50 = vadd.f32 %v1556_v47, %v1555_v45  ;;  %v1558_v51 = vpop.f32.mrb[14].mxu1 }
 0x179   : > { %v1487_v52 = vpop.f32.mrb[15].mxu0  ;;  %v1559_v53 = vpop.f32.mrb[15].mxu1 }
 0x17a   : > { %v1488_v54 = vadd.f32 %v1487_v52, %v1486_v49 }
 0x17e   : > { %v1489_v55 = vpop.f32.mrb[16].mxu0  ;;  %v1603_v56 = vpop.f32.mrb[16].mxu1 }
 0x17f   : > { %v932_v57 = vadd.f32 %v1603_v56, %v1473_v24  ;;  %v1490_v58 = vpop.f32.mrb[17].mxu0  ;;  %v923_v59 = vpop.f32.mrb[17].mxu1 }
 0x180   : > { %v1491_v60 = vadd.f32 %v1490_v58, %v1489_v55  ;;  %v924_v61 = vadd.f32 %v1467_v12, %v923_v59  ;;  %v1492_v62 = vpop.f32.mrb[18].mxu0  ;;  %v1604_v63 = vpop.f32.mrb[18].mxu1 }
 0x181   : > { %v935_v0 = vadd.f32 %v1604_v63, %v1476_v30  ;;  %v1493_v1 = vpop.f32.mrb[19].mxu0  ;;  %v926_v2 = vpop.f32.mrb[19].mxu1  ;;  %v1061_v5 = vrot.slane %v932_v57, 1 }
 0x182   : > { %v2252_v3 = vadd.f32 %v1493_v1, %v1492_v62  ;;  %v927_v4 = vadd.f32 %v1470_v18, %v926_v2  ;;  %v1058_v7 = vrot.slane %v924_v61, 1 }
 0x183   : > { %v1063_v6 = vrot.slane %v935_v0, 1 }
 0x184   : > { %v1059_v8 = vrot.slane %v927_v4, 1 }
 0x185   : > { %v2255_v9 = vsel %vm1057_vm0, %v1061_v5, %v1063_v6 }
 0x186   : > { %v1082_v10 = vmax.f32 %v932_v57, %v2255_v9  ;;  %v1060_v11 = vsel %vm1057_vm0, %v1058_v7, %v1059_v8  ;;  %v1062_v12 = vsel %vm1057_vm0, %v1059_v8, %v1061_v5  ;;  %v1495_v13 = vpop.f32.mrb[20].mxu0  ;;  %v1607_v15 = vpop.f32.mrb[20].mxu1 }
 0x187   : > { %v1080_v16 = vmax.f32 %v924_v61, %v1060_v11  ;;  %v1081_v17 = vmax.f32 %v927_v4, %v1062_v12  ;;  %v948_v20 = vadd.f32 %v1607_v15, %v1485_v48  ;;  %v1496_v21 = vpop.f32.mrb[21].mxu0  ;;  %v939_v18 = vpop.f32.mrb[21].mxu1 }
 0x188   : > { %v1089_v22 = vmax.f32 %v1082_v10, %v935_v0  ;;  %v1497_v23 = vadd.f32 %v1496_v21, %v1495_v13  ;;  %v940_v24 = vadd.f32 %v1479_v36, %v939_v18  ;;  %v1498_v25 = vpop.f32.mrb[22].mxu0  ;;  %v1608_v27 = vpop.f32.mrb[22].mxu1 }
 0x189   : > { %v1087_v28 = vmax.f32 %v1080_v16, %v927_v4  ;;  %v951_v29 = vadd.f32 %v1608_v27, %v1488_v54  ;;  %v1499_v30 = vpop.f32.mrb[23].mxu0  ;;  %v942_v32 = vpop.f32.mrb[23].mxu1  ;;  %v1088_v33 = vmax.f32 %v1081_v17, %v932_v57  ;;  %v1069_v39 = vrot.slane %v948_v20, 1 }
 0x18a   : > { %v1065_v34 = vrot.slane %v940_v24, 1  ;;  %v1500_v35 = vadd.f32 %v1499_v30, %v1498_v25  ;;  %v943_v37 = vadd.f32 %v1482_v42, %v942_v32 }
 0x18b   : > { %v1071_v40 = vrot.slane %v951_v29, 1  ;;  %v1098_v41 = vmax.f32 %v1087_v28, %v1062_v12  ;;  %v1099_v44 = vmax.f32 %v1088_v33, %v2255_v9 }
 0x18c   : > { %v1066_v45 = vsel %vm1057_vm0, %v1063_v6, %v1065_v34  ;;  %v1067_v46 = vrot.slane %v943_v37, 1 }
 0x18d   : > { %v1083_v47 = vmax.f32 %v935_v0, %v1066_v45  ;;  %v1072_v36 = vsel %vm1057_vm0, %v1069_v39, %v1071_v40  ;;  %v1100_v48 = vmax.f32 %v1089_v22, %v1066_v45 }
 0x18e   : > { %v1086_v49 = vmax.f32 %v948_v20, %v1072_v36  ;;  %v1068_v51 = vsel %vm1057_vm0, %v1065_v34, %v1067_v46  ;;  %v1070_v52 = vsel %vm1057_vm0, %v1067_v46, %v1069_v39  ;;  %v1501_v53 = vpop.f32.mrb[24].mxu0  ;;  %v1611_v54 = vpop.f32.mrb[24].mxu1 }
 0x18f   : > { %v1090_v42 = vmax.f32 %v1083_v47, %v940_v24  ;;  %v1084_v55 = vmax.f32 %v940_v24, %v1068_v51  ;;  %v1085_v56 = vmax.f32 %v943_v37, %v1070_v52  ;;  %v2265_v57 = vadd.f32 %v1611_v54, %v1497_v23  ;;  %v1502_v58 = vpop.f32.mrb[25].mxu0  ;;  %v955_v59 = vpop.f32.mrb[25].mxu1 }
 0x190   : > { %v1093_v61 = vmax.f32 %v1086_v49, %v951_v29  ;;  %v1503_v62 = vadd.f32 %v1502_v58, %v1501_v53  ;;  %v956_v63 = vadd.f32 %v1491_v60, %v955_v59  ;;  %v1504_v0 = vpop.f32.mrb[26].mxu0  ;;  %v1612_v1 = vpop.f32.mrb[26].mxu1 }
 0x191   : > { %v1091_v2 = vmax.f32 %v1084_v55, %v943_v37  ;;  %v2268_v4 = vmax.f32 %v1100_v48, %v2265_v57  ;;  %v2270_v5 = vadd.f32 %v1612_v1, %v1500_v35  ;;  %v1101_v6 = vmax.f32 %v1090_v42, %v1068_v51  ;;  %v1505_v7 = vpop.f32.mrb[27].mxu0  ;;  %v958_v8 = vpop.f32.mrb[27].mxu1 }
 0x192   : > { %v1095_v9 = vrot.slane %v956_v63, 1  ;;  %v1105_v10 = vmax.f32 %v1098_v41, %v956_v63  ;;  %v1506_v11 = vadd.f32 %v1505_v7, %v1504_v0  ;;  %v959_v12 = vadd.f32 %v2252_v3, %v958_v8 }
 0x193   : > { %v2274_v13 = vmax.f32 %v1101_v6, %v2270_v5  ;;  %v1114_v60 = vmax.f32 %v2268_v4, %v2270_v5  ;;  %v1102_v15 = vmax.f32 %v1091_v2, %v1070_v52  ;;  %v1092_v16 = vmax.f32 %v1085_v56, %v948_v20 }
 0x194   : > { %v1096_v17 = vsel %vm1057_vm0, %v1071_v40, %v1095_v9  ;;  %v1106_v21 = vmax.f32 %v1099_v44, %v959_v12  ;;  %v1112_v18 = vmax.f32 %v1105_v10, %v959_v12 }
 0x195   : > { %v1104_v22 = vmax.f32 %v1093_v61, %v1096_v17  ;;  %v1103_v23 = vmax.f32 %v1092_v16, %v1072_v36 }
 0x196   : > { %v1507_v24 = vpop.f32.mrb[28].mxu0  ;;  %v1615_v25 = vpop.f32.mrb[28].mxu1  ;;  %v1113_v27 = vmax.f32 %v1106_v21, %v2265_v57 }
 0x197   : > { %v1508_v28 = vpop.f32.mrb[29].mxu0  ;;  %v971_v3 = vpop.f32.mrb[29].mxu1 }
 0x198   : > { %v1509_v29 = vadd.f32 %v1508_v28, %v1507_v24  ;;  %v972_v30 = vadd.f32 %v1503_v62, %v971_v3  ;;  %v1510_v32 = vpop.f32.mrb[30].mxu0  ;;  %v1616_v33 = vpop.f32.mrb[30].mxu1 }
 0x199   : > { %v1511_v34 = vpop.f32.mrb[31].mxu0  ;;  %v974_v35 = vpop.f32.mrb[31].mxu1 }
 0x19a   : > { %v2280_v37 = vadd.f32 %v1615_v25, %v1509_v29  ;;  %v2282_v20 = vmax.f32 %v1102_v15, %v972_v30  ;;  %v1115_v39 = vmax.f32 %v2274_v13, %v972_v30  ;;  %v1512_v40 = vadd.f32 %v1511_v34, %v1510_v32 }
 0x19b   : > { %v2285_v41 = vadd.f32 %v1506_v11, %v974_v35 }
 0x19c   : > { %v2288_v44 = vmax.f32 %v1104_v22, %v2280_v37  ;;  %v2290_v45 = vadd.f32 %v1616_v33, %v1512_v40 }
 0x19d   : > { %v2293_v46 = vmax.f32 %v1103_v23, %v2285_v41  ;;  %v1116_v47 = vmax.f32 %v2282_v20, %v2285_v41 }
 0x19e   : > { %v1118_v36 = vmax.f32 %v2288_v44, %v2290_v45  ;;  %v1513_v48 = vpop.f32.mrb[32].mxu0  ;;  %v1619_v49 = vpop.f32.mrb[32].mxu1 }
 0x19f   : > { %v1117_v51 = vmax.f32 %v2293_v46, %v2280_v37  ;;  %v1514_v52 = vpop.f32.mrb[33].mxu0  ;;  %v987_v53 = vpop.f32.mrb[33].mxu1 }
 0x1a0   : > { %v1515_v54 = vadd.f32 %v1514_v52, %v1513_v48  ;;  %v1516_v42 = vpop.f32.mrb[34].mxu0  ;;  %v1620_v55 = vpop.f32.mrb[34].mxu1  ;;  %v1414_v48 = vld [vmem:[#allocation7] ss:$0 sm:$0xff] }
 0x1a1   : > { %v1517_v56 = vpop.f32.mrb[35].mxu0  ;;  %v990_v57 = vpop.f32.mrb[35].mxu1 }
 0x1a2   : > { %v1518_v58 = vadd.f32 %v1517_v56, %v1516_v42  ;;  %v988_v59 = vadd.f32 %v1515_v54, %v987_v53 }
 0x1a4   : > { %v1119_v61 = vmax.f32 %v1112_v18, %v988_v59  ;;  %v991_v62 = vadd.f32 %v1518_v58, %v990_v57  ;;  %v1134_v63 = vrot.slane %v988_v59, 1 }
 0x1a6   : > { %v1120_v0 = vmax.f32 %v1113_v27, %v991_v62  ;;  %v1135_v1 = vrot.slane %v991_v62, 1  ;;  %v1519_v2 = vpop.f32.mrb[36].mxu0  ;;  %v2301_v4 = vpop.f32.mrb[36].mxu1 }
 0x1a7   : > { %v1520_v5 = vpop.f32.mrb[37].mxu0  ;;  %v1003_v6 = vpop.f32.mrb[37].mxu1 }
 0x1a8   : > { %v1521_v7 = vadd.f32 %v1520_v5, %v1519_v2  ;;  %v1522_v8 = vpop.f32.mrb[38].mxu0  ;;  %v2303_v9 = vpop.f32.mrb[38].mxu1  ;;  %v1136_v10 = vsel %vm1057_vm0, %v1134_v63, %v1135_v1 }
 0x1a9   : > { %v1523_v11 = vpop.f32.mrb[39].mxu0  ;;  %v1006_v12 = vpop.f32.mrb[39].mxu1  ;;  %v1156_v13 = vmax.f32 %v1119_v61, %v1136_v10 }
 0x1aa   : > { %v996_v15 = vadd.f32 %v1619_v49, %v1521_v7  ;;  %v1524_v16 = vadd.f32 %v1523_v11, %v1522_v8 }
 0x1ac   : > { %v1121_v17 = vmax.f32 %v1114_v60, %v996_v15  ;;  %v1137_v21 = vrot.slane %v996_v15, 1  ;;  %v999_v18 = vadd.f32 %v1620_v55, %v1524_v16 }
 0x1ae   : > { %v1122_v22 = vmax.f32 %v1115_v39, %v999_v18  ;;  %v1139_v23 = vrot.slane %v999_v18, 1  ;;  %v1525_v24 = vpop.f32.mrb[40].mxu0  ;;  %v1627_v25 = vpop.f32.mrb[40].mxu1  ;;  %v1138_v27 = vsel %vm1057_vm0, %v1135_v1, %v1137_v21 }
 0x1af   : > { %v1028_v28 = vadd.f32 %v1627_v25, %v2242_v26  ;;  %v1526_v3 = vpop.f32.mrb[41].mxu0  ;;  %v1019_v29 = vpop.f32.mrb[41].mxu1  ;;  %v1157_v30 = vmax.f32 %v1120_v0, %v1138_v27 }
 0x1b0   : > { %v1140_v32 = vsel %vm1057_vm0, %v1137_v21, %v1139_v23  ;;  %v1527_v33 = vadd.f32 %v1526_v3, %v1525_v24  ;;  %v1020_v34 = vadd.f32 %v2238_v14, %v1019_v29  ;;  %v1528_v35 = vpop.f32.mrb[42].mxu0  ;;  %v1628_v60 = vpop.f32.mrb[42].mxu1 }
 0x1b1   : > { %v1158_v20 = vmax.f32 %v1121_v17, %v1140_v32  ;;  %v1031_v39 = vadd.f32 %v1628_v60, %v2244_v31  ;;  %v1529_v40 = vpop.f32.mrb[43].mxu0  ;;  %v1022_v41 = vpop.f32.mrb[43].mxu1 }
 0x1b2   : > { %v1004_v49 = vadd.f32 %v1527_v33, %v1003_v6  ;;  %v1163_v52 = vmax.f32 %v1156_v13, %v1020_v34  ;;  %v1530_v26 = vadd.f32 %v1529_v40, %v1528_v35  ;;  %v1023_v53 = vadd.f32 %v2240_v19, %v1022_v41 }
 0x1b3   : > { %v1165_v54 = vmax.f32 %v1158_v20, %v1028_v28 }
 0x1b4   : > { %v1123_v42 = vmax.f32 %v1116_v47, %v1004_v49  ;;  %v1141_v55 = vrot.slane %v1004_v49, 1  ;;  %v1007_v56 = vadd.f32 %v1530_v26, %v1006_v12  ;;  %v1177_v57 = vadd.f32 %v1414_v48, %v1163_v52 }
 0x1b5   : > { %v1164_v14 = vmax.f32 %v1157_v30, %v1023_v53  ;;  %v1179_v2 = vadd.f32 %v1414_v48, %v1165_v54 }
 0x1b6   : > { %v1142_v58 = vsel %vm1057_vm0, %v1139_v23, %v1141_v55  ;;  %v1124_v31 = vmax.f32 %v1117_v51, %v1007_v56  ;;  %v1143_v59 = vrot.slane %v1007_v56, 1  ;;  %v1531_v61 = vpop.f32.mrb[44].mxu0  ;;  %v1631_v62 = vpop.f32.mrb[44].mxu1  ;;  %v1184_v11 = vmax.f32 %v1177_v57, 0.0 }
 0x1b7   : > { %v1159_v63 = vmax.f32 %v1122_v22, %v1142_v58  ;;  %v1178_v0 = vadd.f32 %v1414_v48, %v1164_v14  ;;  %v1044_v19 = vadd.f32 %v1631_v62, %v2250_v50  ;;  %v1532_v1 = vpop.f32.mrb[45].mxu0  ;;  %v1035_v47 = vpop.f32.mrb[45].mxu1  ;;  %v1186_v24 = vmax.f32 %v1179_v2, 0.0 }
 0x1b8   : > { %v1533_v5 = vadd.f32 %v1532_v1, %v1531_v61  ;;  %v1036_v6 = vadd.f32 %v2246_v38, %v1035_v47  ;;  %v1144_v7 = vsel %vm1057_vm0, %v1141_v55, %v1143_v59  ;;  %v1534_v8 = vpop.f32.mrb[46].mxu0  ;;  %v1632_v10 = vpop.f32.mrb[46].mxu1 }
 0x1b9   : > { %v1166_v37 = vmax.f32 %v1159_v63, %v1031_v39  ;;  %v1185_v46 = vmax.f32 %v1178_v0, 0.0  ;;  %v1160_v51 = vmax.f32 %v1123_v42, %v1144_v7  ;;  %v1535_v12 = vpop.f32.mrb[47].mxu0  ;;  %v1038_v13 = vpop.f32.mrb[47].mxu1 }
 0x1ba   : > { %v1012_v15 = vadd.f32 %v2301_v4, %v1533_v5  ;;  %v1536_v50 = vadd.f32 %v1535_v12, %v1534_v8  ;;  %v1039_v16 = vadd.f32 %v2248_v43, %v1038_v13 }
 0x1bb   : > { %v1180_v17 = vadd.f32 %v1414_v48, %v1166_v37  ;;  %v1435_v21 = vpack.c.bf16 %v1185_v46, %v1184_v11  ;;  %v1167_v18 = vmax.f32 %v1160_v51, %v1036_v6 }
 0x1bc   : > { %v1125_v38 = vmax.f32 %v1118_v36, %v1012_v15  ;;  %v1145_v22 = vrot.slane %v1012_v15, 1  ;;  %v1015_v23 = vadd.f32 %v2303_v9, %v1536_v50 }
 0x1bd   : > { %v1187_v25 = vmax.f32 %v1180_v17, 0.0  ;;  %1436 = vst [vmem:[%s215_s20] sm:$0xff] %v1435_v21   ;;  %v1181_v29 = vadd.f32 %v1414_v48, %v1167_v18 }
 0x1be   : > { %v1147_v4 = vrot.slane %v1015_v23, 1  ;;  %v1146_v27 = vsel %vm1057_vm0, %v1143_v59, %v1145_v22 }
 0x1bf   : > { %v1440_v43 = vpack.c.bf16 %v1187_v25, %v1186_v24  ;;  %v1161_v28 = vmax.f32 %v1124_v31, %v1146_v27  ;;  %v1188_v30 = vmax.f32 %v1181_v29, 0.0 }
 0x1c0   : > { %v1148_v3 = vsel %vm1057_vm0, %v1145_v22, %v1147_v4 }
 0x1c1   : > { %1447 = vst [vmem:[%s215_s20 + $0x8] sm:$0xff] %v1440_v43   ;;  %v1162_v44 = vmax.f32 %v1125_v38, %v1148_v3  ;;  %v1168_v45 = vmax.f32 %v1161_v28, %v1039_v16 }
 0x1c3   : > { %v1169_v36 = vmax.f32 %v1162_v44, %v1044_v19  ;;  %v1182_v9 = vadd.f32 %v1414_v48, %v1168_v45 }
 0x1c5   : > { %v1183_v32 = vadd.f32 %v1414_v48, %v1169_v36  ;;  %v1189_v33 = vmax.f32 %v1182_v9, 0.0 }
 0x1c7   : > { %v1190_v34 = vmax.f32 %v1183_v32, 0.0  ;;  %v1445_v35 = vpack.c.bf16 %v1189_v33, %v1188_v30 }
 0x1c9   : > { %v1431_v60 = vpack.c.bf16 %v1190_v34, %v1190_v34  ;;  %1448 = vst [vmem:[%s215_s20 + $0x10] sm:$0xff] %v1445_v35  }
 0x1cb   : > { %1226 = vst [vmem:[%s215_s20 + $0x18] sm:$0xf] %v1431_v60 }
 0x1cc   : > { %1914 = shalt.err (!%p1911_p2)
}
 0x1cd   : > { %s1915_s17 = scalar_lea.hbm %s2336_s23, 448  ;;  %s1919_s29 = scalar_lea.hbm %s2383_s3, 896 }
 0x1ce   : > { %p1916_p13 = scmp.ne.s32.totalorder %s2336_s23, %s1915_s17  ;;  %p1920_p4 = scmp.lt.u32.totalorder %s2336_s23, %s2383_s3 }
 0x1cf   : > { %p1921_p5 = scmp.lt.u32.totalorder %s1919_s29, %s1915_s17  ;;  %p1923_p11 = scmp.lt.u32.totalorder %s1915_s17, %s2336_s23 }
 0x1d0   : > { %p1917_p6 = pnand %p1916_p13, %p2397_p0 }
 0x1d1   : > { %p1922_p8 = por %p1921_p5, %p1920_p4 }
 0x1d2   : > { %p1918_p10 = pneg %p1917_p6 }
 0x1d3   : > { %p1924_p1 = por %p1923_p11, %p1922_p8 }
 0x1d5   : > { %p1925_p3 = pnand %p1924_p1, %p1918_p10 }
 0x1d7   : > { %1928 = shalt.err (!%p1925_p3)
}
 0x1d8   : > { %s1981_s18 = smov 64   ;;  %s1982_s20 = smov 4  }
 0x1d9   : > { %1664 = dma.vmem_to_hbm [thread:$0]  (%p2397_p0), %s2331_s11, 448, %s2336_s23, %s1228_s6, %s1981_s18, %s1981_s18, %s1982_s20  }
 0x1da PF: > { %s1256_s24 = sand.u32 1, %s1959_s12   ;;  %p2398_p7 = scmp.ne.s32.totalorder %s2388_s19, 0 }
 0x1db   : > { %p2399_p9 = scmp.ge.s32.totalorder %s1971_s15, 2  ;;  %s1257_s27 = scalar_lea.sflag [#allocation4], %s1256_s24 }
 0x1dd   : > { %p1678_p12 = pnand %p2399_p9, %p2398_p7 }
 0x1df   : > { %1954 = dma.done.wait (!%p1678_p12), %s1257_s27, 448  }
 0x1e0   : > { %1956 = vsyncadd (!%p1678_p12), %s1257_s27, 4294966848  ;;  %p17_p2 = scmp.ge.s32.totalorder %s2114_s5, 4   ;;  %s2400_s12 = smov %s1963_s13 }
 0x1e1   : > { %s2401_s13 = smov %s1967_s14  ;;  %s2402_s14 = smov %s2130_s8 }
 0x1e2   : > { %s2403_s15 = smov %s2114_s5  ;;  %19 = sbr.rel (!%p17_p2) target bundleno = 6 (0x6), region = 85 }
 0x1e9   :  { %1262 = vsyncpa [#allocation3], 1 }
 0x1ea   :  { %1264 = vsyncpa [#allocation3 + $0x1], 1 }
 0x1eb   :  { %1265 = vsyncpa [#allocation6], 1 }
 0x1ec   :  { %1266 = vsyncpa [#allocation4], 1 }
 0x1ed   :  { %1268 = vsyncpa [#allocation4 + $0x1], 1 }

// kernel: prefilter_forward.3
= control target key start
LH: loop header
LB: loop body
LE: loop exit
PB: predicated region body
PF: predicated region fallthrough
CT: control target
= control target key end

     0   :  { %8 = vsyncpa [#allocation3], 0  ;;  %s8211_s0 = inlined_call_operand.hbm [shape: bf16[2,132,64], index: 0, kind: input, shape index: {}]   ;;  %s8212_s1 = inlined_call_operand.hbm [shape: bf16[25,64,256], index: 1, kind: input, shape index: {}]   ;;  %s8213_s2 = inlined_call_operand.hbm [shape: f32[1,256], index: 2, kind: input, shape index: {}]   ;;  %s8214_s3 = inlined_call_operand.hbm [shape: f32[2,77,256], index: 3, kind: output, shape index: {}]  }
   0x1   :  { %10 = vsyncpa [#allocation3 + $0x1], 0 }
   0x2   :  { %11 = vsyncpa [#allocation6], 0 }
   0x3   :  { %12 = vsyncpa [#allocation4], 0 }
   0x4   :  { %14 = vsyncpa [#allocation4 + $0x1], 0  ;;  %s6996_s12 = smov 0   ;;  %s6998_s13 = smov 0  }
   0x5   :  { %s7000_s14 = smov 0   ;;  %s7002_s15 = smov 0  }
   0x6 LB: > { %s7017_s16 = sadd.s32 4294967295, %s6963_s15   ;;  %s5460_s17 = sadd.s32 4294967294, %s6963_s15   ;;  %s6963_s15 = sphi %s7002_s15, %s8234_s15   ;;  %s6959_s14 = sphi %s7000_s14, %s8233_s14   ;;  %s6955_s13 = sphi %s6998_s13, %s8232_s13   ;;  %s6951_s12 = sphi %s6996_s12, %s8231_s12  }
   0x7   : > { %p40_p0 = scmp.ne.s32.totalorder %s6955_s13, %s6951_s12  ;;  %p8215_p1 = scmp.eq.s32.totalorder %s7017_s16, 0 }
   0x8   : > { %p112_p3 = scmp.eq.s32.totalorder %s5460_s17, 1  ;;  %p5461_p5 = scmp.ge.s32.totalorder %s6963_s15, 1 }
   0x9   : > { %p7026_p4 = por %p8215_p1, %p40_p0  ;;  %p119_p7 = scmp.lt.s32.totalorder %s6963_s15, 3 }
   0xa   : > { %p7031_p6 = por %p112_p3, %p40_p0  ;;  %s6965_s21 = smov [#allocation5]  }
   0xb   : > { %s8218_s18 = scalar_select %p7026_p4, 1, 0 }
   0xc   : > { %s8219_s19 = scalar_select %p7031_p6, 1, 0 }
   0xd   : > { %p7036_p8 = pnand %p5461_p5, %p119_p7  ;;  %s131_s22 = sshll.u32 %s6965_s21, 4  ;;  %s7040_s22 = int_to_ptr.vmem [resolvable:$true] %s131_s22 }
   0xe   : > { %s6966_s24 = smov [#allocation7]   ;;  %s6807_s28 = scalar_lea.hbm %s8212_s1, 25600 }
   0xf   : > { %p6367_p9 = pneg %p7036_p8  ;;  %s145_s25 = sshll.u32 %s6966_s24, 4  ;;  %s7051_s25 = int_to_ptr.vmem [resolvable:$true] %s145_s25 }
  0x10   : > { %p6808_p12 = scmp.ne.s32.totalorder %s8212_s1, %s6807_s28  ;;  %p6814_p5 = scmp.lt.u32.totalorder %s6807_s28, %s8212_s1 }
  0x11   : > { %p7047_p11 = pnand %p6367_p9, %p8215_p1 }
  0x13   : > { %p6809_p13 = pneg %p7047_p11 }
  0x15   : > { %p6810_p0 = pnand %p6809_p13, %p6808_p12 }
  0x17   : > { %p6811_p3 = pneg %p6810_p0 }
  0x19   : > { %p6816_p7 = pnand %p6814_p5, %p6811_p3 }
  0x1b   : > { %6819 = shalt.err (!%p6816_p7)
}
  0x1c   : > { %s6820_s6 = scalar_lea.vmem %s7040_s22, 25600  ;;  %p6828_p2 = scmp.lt.s32.totalorder %s7040_s22, %s7040_s22 }
  0x1d   : > { %p6821_p9 = scmp.ne.s32.totalorder %s7040_s22, %s6820_s6  ;;  %p6829_p12 = scmp.lt.s32.totalorder %s6820_s6, %s6820_s6 }
  0x1f   : > { %p6823_p10 = pnand %p6821_p9, %p6809_p13  ;;  %p6830_p0 = por %p6829_p12, %p6828_p2 }
  0x21   : > { %p6824_p1 = pneg %p6823_p10 }
  0x23   : > { %p6831_p6 = pnand %p6830_p0, %p6824_p1 }
  0x25   : > { %6834 = shalt.err (!%p6831_p6)
}
  0x26   : > { %s6967_s7 = smov 128   ;;  %s6968_s8 = smov 8  }
  0x27   : > { %6370 = dma.hbm_to_vmem [thread:$0]  (!%p7047_p11), %s8212_s1, 25600, %s7040_s22, [#allocation6], %s6967_s7, %s6967_s7, %s6968_s8  }
  0x28   : > { %s6835_s21 = scalar_lea.hbm %s8213_s2, 32 }
  0x29   : > { %p6836_p2 = scmp.ne.s32.totalorder %s8213_s2, %s6835_s21  ;;  %p6842_p10 = scmp.lt.u32.totalorder %s6835_s21, %s8213_s2 }
  0x2b   : > { %p6838_p1 = pnand %p6836_p2, %p6809_p13 }
  0x2d   : > { %p6839_p6 = pneg %p6838_p1 }
  0x2f   : > { %p6844_p3 = pnand %p6842_p10, %p6839_p6 }
  0x31   : > { %6847 = shalt.err (!%p6844_p3)
}
  0x32   : > { %s6848_s22 = scalar_lea.vmem %s7051_s25, 32  ;;  %p6856_p12 = scmp.lt.s32.totalorder %s7051_s25, %s7051_s25 }
  0x33   : > { %p6849_p5 = scmp.ne.s32.totalorder %s7051_s25, %s6848_s22  ;;  %p6857_p0 = scmp.lt.s32.totalorder %s6848_s22, %s6848_s22 }
  0x35   : > { %p6851_p7 = pnand %p6849_p5, %p6809_p13  ;;  %p6858_p2 = por %p6857_p0, %p6856_p12 }
  0x37   : > { %p6852_p9 = pneg %p6851_p7 }
  0x39   : > { %p6859_p1 = pnand %p6858_p2, %p6852_p9 }
  0x3b   : > { %6862 = shalt.err (!%p6859_p1)
}
  0x3c   : > { %6373 = dma.hbm_to_vmem [thread:$0]  (!%p7047_p11), %s8213_s2, 32, %s7051_s25, [#allocation6]  }
  0x3d   : > { %s7106_s4 = sadd.s32 1, %s6963_s15   ;;  %s27_s23 = sadd.s32 1, %s6959_s14 }
  0x3e   : > { %s24_s5 = ssub.s32 %s6963_s15, %s7106_s4  ;;  %p34_p13 = scmp.ne.s32.totalorder %s6959_s14, %s6955_s13 }
  0x3f   : > { %p25_p6 = scmp.eq.s32.totalorder %s24_s5, 0  ;;  %p35_p10 = scmp.eq.s32.totalorder %s6963_s15, 0 }
  0x40   : > { %p8222_p3 = scmp.eq.s32.totalorder %s7017_s16, 1  ;;  %p6384_p7 = scmp.lt.s32.totalorder %s6963_s15, 2 }
  0x41   : > { %s7122_s7 = scalar_select %p25_p6, %s6959_s14, %s27_s23  }
  0x42   : > { %p7116_p5 = por %p8222_p3, %p34_p13  ;;  %p36_p9 = por %p35_p10, %p34_p13 }
  0x43   : > { %s156_s8 = sand.u32 1, %s6959_s14   ;;  %s6351_s25 = smul.u32 1088, %s6963_s15 }
  0x44   : > { %s8223_s6 = scalar_select %p7116_p5, 1, 0 }
  0x45   : > { %s6350_s9 = smul.u32 68, %s156_s8  ;;  %p7126_p11 = pnand %p6384_p7, %p36_p9 }
  0x46   : > { %s7133_s21 = scalar_lea.hbm %s8211_s0, %s6351_s25  ;;  %s7137_s27 = scalar_lea.sflag [#allocation3], %s156_s8 }
  0x47   : > { %s160_s24 = scalar_lea.vmem [#allocation2], %s6350_s9  ;;  %s6863_s28 = scalar_lea.hbm %s7133_s21, 1088 }
  0x48   : > { %s167_s26 = sshll.u32 %s160_s24, 4  ;;  %p6864_p12 = scmp.ne.s32.totalorder %s7133_s21, %s6863_s28  ;;  %s7135_s26 = int_to_ptr.vmem [resolvable:$true] %s167_s26 }
  0x49   : > { %p6865_p0 = pneg %p7126_p11  ;;  %s6868_s30 = scalar_lea.hbm %s8211_s0, 2176 }
  0x4a   : > { %p6869_p13 = scmp.lt.u32.totalorder %s7133_s21, %s8211_s0  ;;  %p6870_p6 = scmp.lt.u32.totalorder %s6868_s30, %s6863_s28 }
  0x4b   : > { %p6866_p2 = pnand %p6865_p0, %p6864_p12  ;;  %p6872_p3 = scmp.lt.u32.totalorder %s6863_s28, %s7133_s21 }
  0x4c   : > { %p6871_p10 = por %p6870_p6, %p6869_p13 }
  0x4d   : > { %p6867_p1 = pneg %p6866_p2 }
  0x4e   : > { %p6873_p7 = por %p6872_p3, %p6871_p10 }
  0x50   : > { %p6874_p9 = pnand %p6873_p7, %p6867_p1 }
  0x52   : > { %6877 = shalt.err (!%p6874_p9)
}
  0x53   : > { %s6878_s8 = scalar_lea.vmem %s7135_s26, 1088  ;;  %s6969_s9 = smov [#allocation2]  }
  0x54   : > { %p6879_p12 = scmp.ne.s32.totalorder %s7135_s26, %s6878_s8  ;;  %s6883_s25 = sshll.u32 %s6969_s9, 4  ;;  %s6884_s25 = int_to_ptr.vmem [resolvable:$false] %s6883_s25 }
  0x55   : > { %s6885_s11 = scalar_lea.vmem %s6884_s25, 2176  ;;  %p6886_p4 = scmp.lt.s32.totalorder %s7135_s26, %s6884_s25 }
  0x56   : > { %p6881_p2 = pnand %p6879_p12, %p6865_p0  ;;  %p6887_p13 = scmp.lt.s32.totalorder %s6885_s11, %s6878_s8 }
  0x58   : > { %p6882_p5 = pneg %p6881_p2  ;;  %p6888_p6 = por %p6887_p13, %p6886_p4 }
  0x5a   : > { %p6889_p10 = pnand %p6888_p6, %p6882_p5 }
  0x5c   : > { %6892 = shalt.err (!%p6889_p10)
}
  0x5d   : > { %s6970_s17 = smov 64   ;;  %s6971_s24 = smov 4  }
  0x5e   : > { %6377 = dma.hbm_to_vmem [thread:$0]  (!%p7126_p11), %s7133_s21, 1088, %s7135_s26, %s7137_s27, %s6970_s17, %s6970_s17, %s6971_s24  }
  0x5f   : > { %179 = sbr.rel (%p7036_p8) target bundleno = 856 (0x358), region = 32  ;;  %s7168_s28 = sand.u32 (!%p7036_p8), 1, %s6955_s13  }
  0x60   : > { %s6352_s22 = smul.u32 (!%p7036_p8), 68, %s7168_s28  ;;  %s182_s29 = scalar_lea.sflag (!%p7036_p8), [#allocation3], %s7168_s28 }
  0x61   : > { %p8225_p4 = scmp.ne.s32.totalorder (!%p7036_p8), %s8218_s18, 0 }
  0x62   : > { %s7172_s30 = scalar_lea.vmem (!%p7036_p8), [#allocation2], %s6352_s22 }
  0x66   : > { %6938 = dma.done.wait (%p8225_p4), %s182_s29, 1088  }
  0x67   : > { %6940 = vsyncadd (%p8225_p4), %s182_s29, 4294966208  ;;  %p8226_p5 = scmp.eq.s32.totalorder %s7017_s16, 0 }
  0x69   : > { %6942 = dma.done.wait (%p8226_p5), [#allocation6], 25632   ;;  %p8227_p8 = pmov %p8226_p5 }
  0x6a   : > { %v6972_v0 = vmov 0   ;;  %v6429_v1 = vld [vmem:[#allocation5 + $0x44] ss:$8 sps:$4 sm:$0xff]   ;;  %v6433_v3 = vld [vmem:[#allocation5 + $0x40] ss:$8 sps:$4 sm:$0xff]   ;;  %vm349_vm0 = vcmask 523264  }
  0x6b   : > { %6944 = vsyncadd (%p8227_p8), [#allocation6], 4294941664  ;;  %397 = vmatprep.mubr.bf16.mxu1 %v6972_v0  ;;  %2770 = vmatprep.mubr.bf16.mxu0 %v6972_v0  ;;  %v6431_v2 = vld [vmem:[#allocation5 + $0x304] ss:$8 sps:$4 sm:$0xff]   ;;  %v6434_v4 = vld [vmem:[#allocation5 + $0x300] ss:$8 sps:$4 sm:$0xff]  }
  0x6c   : > { %365 = vmatprep.subr.bf16.mxu1 %v6429_v1  ;;  %2738 = vmatprep.subr.bf16.mxu0 %v6431_v2  ;;  %v6435_v5 = vld [vmem:[#allocation5 + $0x54] ss:$8 sps:$4 sm:$0xff]   ;;  %v6439_v7 = vld [vmem:[#allocation5 + $0x50] ss:$8 sps:$4 sm:$0xff]   ;;  %v6441_v9 = vld [vmem:[#allocation5 + $0x64] ss:$8 sps:$4 sm:$0xff]  }
  0x6d   : > { %366 = vmatpush1.bf16.msra.mxu1 %v6433_v3  ;;  %2739 = vmatpush1.bf16.msra.mxu0 %v6434_v4  ;;  %v6437_v6 = vld [vmem:[#allocation5 + $0x314] ss:$8 sps:$4 sm:$0xff]   ;;  %v6440_v8 = vld [vmem:[#allocation5 + $0x310] ss:$8 sps:$4 sm:$0xff]   ;;  %v6443_v10 = vld [vmem:[#allocation5 + $0x324] ss:$8 sps:$4 sm:$0xff]  }
  0x6e   : > { %367 = vmatprep.subr.bf16.mxu1 %v6435_v5  ;;  %2740 = vmatprep.subr.bf16.mxu0 %v6437_v6  ;;  %v6445_v11 = vld [vmem:[#allocation5 + $0x60] ss:$8 sps:$4 sm:$0xff]   ;;  %v6447_v13 = vld [vmem:[#allocation5 + $0x74] ss:$8 sps:$4 sm:$0xff]   ;;  %v6451_v15 = vld [vmem:[#allocation5 + $0x70] ss:$8 sps:$4 sm:$0xff]  }
  0x6f   : > { %v6446_v12 = vld [vmem:[#allocation5 + $0x320] ss:$8 sps:$4 sm:$0xff]   ;;  %v6449_v14 = vld [vmem:[#allocation5 + $0x334] ss:$8 sps:$4 sm:$0xff]   ;;  %v6452_v18 = vld [vmem:[#allocation5 + $0x330] ss:$8 sps:$4 sm:$0xff]  }
  0x70   : > { %v217_v16 = vld [vmem:[%s7172_s30] sm:$0xf]  ;;  %v7186_v17 = vld [vmem:[%s7172_s30 + $0x4] sm:$0xf]  ;;  %v7192_v20 = vld [vmem:[%s7172_s30 + $0x8] sm:$0xff]   ;;  %vm598_vm2 = vcmask 1046528  }
  0x71   : > { %368 = vmatpush1.bf16.msra.mxu1 %v6439_v7  ;;  %2741 = vmatpush1.bf16.msra.mxu0 %v6440_v8  ;;  %v7189_v19 = vcombine.low %v217_v16, %v7186_v17  ;;  %v6458_v21 = vld [vmem:[#allocation5 + $0x4] ss:$8 sps:$4 sm:$0xff]   ;;  %v278_v24 = vshll.u32 %v7192_v20, 16  ;;  %v6462_v29 = vld [vmem:[#allocation5 + $0x340] ss:$8 sps:$4 sm:$0xff]   ;;  %v282_v36 = vshrl.u32 %v7192_v20, 16 }
  0x72   : > { %369 = vmatprep.subr.bf16.mxu1 %v6441_v9  ;;  %2742 = vmatprep.subr.bf16.mxu0 %v6443_v10  ;;  %v2230_v25 = vld [vmem:[%s7172_s30 + $0xc] sm:$0xf]  ;;  %v7199_v26 = vld [vmem:[%s7172_s30 + $0x10] sm:$0xf]  ;;  %vm269_vm1 = vsmask.f32 7424 }
  0x73   : > { %v271_v22 = vshrl.u32 %v7189_v19, 16  ;;  %v273_v23 = vshll.u32 %v7189_v19, 16  ;;  %v280_v28 = vrot.slane %v278_v24, 1  ;;  %v5657_v30 = vcombine.low %v2230_v25, %v7199_v26  ;;  %v6464_v31 = vld [vmem:[#allocation5 + $0x344] ss:$8 sps:$4 sm:$0xff]   ;;  %v7237_v3 = vld [vmem:[%s7172_s30 + $0x18] sm:$0xff]  }
  0x74   : > { %v785_v33 = vrot.slane %v278_v24, 2  ;;  %v6456_v34 = vld [vmem:[#allocation5] ss:$8 sps:$4 sm:$0xff]   ;;  %v6467_v35 = vld [vmem:[#allocation5 + $0x354] ss:$8 sps:$4 sm:$0xff]   ;;  %v784_v41 = vrot.slane %v282_v36, 1 }
  0x75   : > { %370 = vmatpush1.bf16.msra.mxu1 %v6445_v11  ;;  %2743 = vmatpush1.bf16.msra.mxu0 %v6446_v12  ;;  %v275_v27 = vrot.slane %v273_v23, 1  ;;  %v6465_v37 = vld [vmem:[#allocation5 + $0x350] ss:$8 sps:$4 sm:$0xff]   ;;  %v2852_v40 = vshll.u32 %v5657_v30, 16  ;;  %v284_v46 = vor.u32 %v282_v36, %v280_v28  ;;  %v6473_v54 = vld [vmem:[#allocation5 + $0x360] ss:$8 sps:$4 sm:$0xff]  }
  0x76   : > { %371 = vmatprep.subr.bf16.mxu1 %v6447_v13  ;;  %2744 = vmatprep.subr.bf16.mxu0 %v6449_v14  ;;  %v7205_v38 = vld [vmem:[%s7172_s30 + $0x10] sm:$0xff]   ;;  %v2233_v44 = vld [vmem:[%s7172_s30 + $0x18] sm:$0xf]  ;;  %v581_v45 = vld [vmem:[%s7172_s30] sm:$0xe]  ;;  %v7219_v49 = vor.u32 %v785_v33, %v784_v41  ;;  %v2850_v56 = vshrl.u32 %v5657_v30, 16 }
  0x77   : > { %v276_v32 = vor.u32 %v275_v27, %v271_v22  ;;  %v286_v42 = vshll.u32 %v7205_v38, 16  ;;  %v2232_v43 = vld [vmem:[%s7172_s30 + $0x14] sm:$0xf]  ;;  %v2234_v47 = vld [vmem:[%s7172_s30 + $0x1c] sm:$0xf]  ;;  %v2854_v57 = vrot.slane %v2852_v40, 1  ;;  %v7232_v2 = vcombine.low %v581_v45, %v7186_v17 }
  0x78   : > { %v7217_v48 = vcombine.low %v7199_v26, %v2232_v43  ;;  %v2235_v51 = vld [vmem:[%s7172_s30 + $0x20] sm:$0xf]  ;;  %v7224_v52 = vcombine.low %v2233_v44, %v2234_v47  ;;  %v7226_v53 = vcombine.low %v2232_v43, %v2233_v44  ;;  %v6475_v55 = vld [vmem:[#allocation5 + $0x364] ss:$8 sps:$4 sm:$0xff]   ;;  %v290_v60 = vshrl.u32 %v7205_v38, 16  ;;  %s6353_s18 = smul.u32 160, %s7168_s28 }
  0x79   : > { %372 = vmatpush1.bf16.msra.mxu1 %v6451_v15  ;;  %2745 = vmatpush1.bf16.msra.mxu0 %v6452_v18  ;;  %v281_v39 = vsel %vm269_vm1, %v276_v32, %v280_v28  ;;  %v288_v50 = vrot.slane %v286_v42, 1  ;;  %v6476_v58 = vld [vmem:[#allocation5 + $0x10] ss:$8 sps:$4 sm:$0xff]   ;;  %v6478_v59 = vld [vmem:[#allocation5 + $0x14] ss:$8 sps:$4 sm:$0xff]   ;;  %v7239_v4 = vcombine.low %v2234_v47, %v2235_v51  ;;  %v2855_v5 = vor.u32 %v2854_v57, %v2850_v56  ;;  %s6354_s10 = smul.u32 2560, %s7017_s16 }
  0x7a   : > { %498 = vmatprep.subr.bf16.mxu1 %v6458_v21  ;;  %2939 = vmatprep.subr.bf16.mxu0 %v6464_v31  ;;  %v2856_v61 = vshll.u32 %v7226_v53, 16  ;;  %v6479_v63 = vld [vmem:[#allocation5 + $0x370] ss:$8 sps:$4 sm:$0xff]   ;;  %v6481_v1 = vld [vmem:[#allocation5 + $0x374] ss:$8 sps:$4 sm:$0xff]   ;;  %v294_v9 = vshll.u32 %v7237_v3, 16 }
  0x7b   : > { %v289_v62 = vsel %vm269_vm1, %v284_v46, %v288_v50  ;;  %v6483_v7 = vld [vmem:[#allocation5 + $0x20] ss:$8 sps:$4 sm:$0xff]   ;;  %v6485_v8 = vld [vmem:[#allocation5 + $0x24] ss:$8 sps:$4 sm:$0xff]   ;;  %v7244_v10 = vld [vmem:[%s7172_s30 + $0x20] sm:$0xf]  ;;  %v292_v12 = vor.u32 %v290_v60, %v288_v50  ;;  %s8162_s23 = scalar_lea.hbm %s8214_s3, %s6354_s10 }
  0x7c   : > { %5670 = vmatmul.mubr.msk.bf16.vlgmr.msra.gmra.mrb[0].mxu0 %vm349_vm0, %v5657_v30  ;;  %5482 = vmatmul.mubr.msk.bf16.vlgmr.msra.gmra.mrb[0].mxu1 %vm349_vm0, %v281_v39  ;;  %v2858_v6 = vrot.slane %v2856_v61, 1  ;;  %v226_v11 = vld [vmem:[%s7172_s30 + $0x24] sm:$0x7]  ;;  %v296_v14 = vrot.slane %v294_v9, 1  ;;  %v6489_v15 = vld [vmem:[#allocation5 + $0x384] ss:$8 sps:$4 sm:$0xff]  }
  0x7d   : > { %2940 = vmatpush1.bf16.msra.mxu0 %v6462_v29  ;;  %2780 = vmatprep.mubr.bf16.mxu0 %v6972_v0  ;;  %v7252_v13 = vcombine.low %v7244_v10, %v226_v11  ;;  %v599_v16 = vrot.slane %v7232_v2, 1  ;;  %v2860_v18 = vshrl.u32 %v7226_v53, 16  ;;  %v2863_v21 = vshll.u32 %v7239_v4, 16  ;;  %v6487_v22 = vld [vmem:[#allocation5 + $0x380] ss:$8 sps:$4 sm:$0xff]   ;;  %s8122_s20 = scalar_lea.vmem [#allocation8], %s6353_s18 }
  0x7e   : > { %2941 = vmatprep.subr.bf16.mxu0 %v6467_v35  ;;  %499 = vmatpush1.bf16.msra.mxu1 %v6456_v34  ;;  %v2859_v17 = vsel %vm269_vm1, %v2855_v5, %v2858_v6  ;;  %v6492_v23 = vld [vmem:[#allocation5 + $0x34] ss:$8 sps:$4 sm:$0xff]   ;;  %v298_v24 = vshrl.u32 %v7237_v3, 16  ;;  %v2237_v27 = vld [vmem:[%s7172_s30 + $0x28] sm:$0xf]  ;;  %v297_v28 = vsel %vm269_vm1, %v292_v12, %v296_v14  ;;  %v600_v33 = vrot.slane %v7192_v20, 1 }
  0x7f   : > { %407 = vmatprep.mubr.bf16.mxu1 %v6972_v0  ;;  %500 = vmatprep.subr.bf16.mxu1 %v6478_v59  ;;  %v2236_v25 = vld [vmem:[%s7172_s30 + $0x24] sm:$0xf]  ;;  %v302_v29 = vshll.u32 %v7252_v13, 16  ;;  %v6490_v30 = vld [vmem:[#allocation5 + $0x30] ss:$8 sps:$4 sm:$0xff]   ;;  %v602_v34 = vrot.slane %v7205_v38, 1  ;;  %v2862_v35 = vor.u32 %v2860_v18, %v2858_v6 }
  0x80   : > { %v7265_v31 = vcombine.low %v2236_v25, %v2237_v27  ;;  %v6496_v32 = vld [vmem:[#allocation5 + $0x394] ss:$8 sps:$4 sm:$0xff]   ;;  %v2865_v36 = vrot.slane %v2863_v21, 1  ;;  %v6499_v39 = vld [vmem:[#allocation5 + $0x84] ss:$8 sps:$4 sm:$0xff]   ;;  %v7273_v40 = vsel %vm598_vm2, %v599_v16, %v600_v33  ;;  %v604_v43 = vrot.slane %v7237_v3, 1 }
  0x81   : > { %2942 = vmatpush1.bf16.msra.mxu0 %v6465_v37  ;;  %v6494_v37 = vld [vmem:[#allocation5 + $0x390] ss:$8 sps:$4 sm:$0xff]   ;;  %v7276_v41 = vsel %vm598_vm2, %v600_v33, %v602_v34  ;;  %v300_v44 = vor.u32 %v298_v24, %v296_v14  ;;  %v304_v45 = vrot.slane %v302_v29, 1  ;;  %v6503_v47 = vld [vmem:[#allocation5 + $0x3a4] ss:$8 sps:$4 sm:$0xff]   ;;  %v2867_v57 = vshrl.u32 %v7239_v4, 16 }
  0x82   : > { %2943 = vmatprep.subr.bf16.mxu0 %v6475_v55  ;;  %501 = vmatpush1.bf16.msra.mxu1 %v6476_v58  ;;  %v2870_v46 = vshll.u32 %v7265_v31, 16  ;;  %v7282_v50 = vld [vmem:[%s7172_s30 + $0x2c] sm:$0xf]  ;;  %v2666_v51 = vld [vmem:[%s7172_s30 + $0x30] sm:$0x7]  ;;  %v777_v55 = vshrl.u32 %v7232_v2, 16  ;;  %v2866_v56 = vsel %vm269_vm1, %v2862_v35, %v2865_v36 }
  0x83   : > { %502 = vmatprep.subr.bf16.mxu1 %v6485_v8  ;;  %v6501_v58 = vld [vmem:[#allocation5 + $0x3a0] ss:$8 sps:$4 sm:$0xff]   ;;  %v6509_v59 = vld [vmem:[#allocation5 + $0x3b4] ss:$8 sps:$4 sm:$0xff]   ;;  %vm775_vm3 = vsmask.f32 6400  ;;  %v7299_v8 = vcombine.low %v7282_v50, %v2666_v51 }
  0x84   : > { %5671 = vmatmul.mubr.msk.bf16.gmra.mrb[4].mxu0 %vm349_vm0, %v7226_v53  ;;  %5483 = vmatmul.mubr.msk.bf16.gmra.mrb[4].mxu1 %vm349_vm0, %v289_v62  ;;  %v779_v61 = vrot.slane %v777_v55, 1  ;;  %v780_v62 = vshll.u32 %v7232_v2, 16  ;;  %v2872_v5 = vrot.slane %v2870_v46, 1  ;;  %v6507_v11 = vld [vmem:[#allocation5 + $0x3b0] ss:$8 sps:$4 sm:$0xff]   ;;  %v788_v2 = vrot.slane %v290_v60, 1 }
  0x85   : > { %2944 = vmatpush1.bf16.msra.mxu0 %v6473_v54  ;;  %417 = vmatprep.mubr.bf16.mxu1 %v6972_v0  ;;  %v7288_v54 = vsel %vm598_vm2, %v602_v34, %v604_v43  ;;  %v789_v12 = vrot.slane %v286_v42, 2  ;;  %v6515_v14 = vld [vmem:[#allocation5 + $0x3c4] ss:$8 sps:$4 sm:$0xff]   ;;  %v792_v16 = vrot.slane %v298_v24, 1  ;;  %v2881_v33 = vshrl.u32 %v7299_v8, 16  ;;  %s5368_s21 = sshll.u32 %s8122_s20, 4  ;;  %s8164_s21 = int_to_ptr.vmem [resolvable:$true] %s5368_s21 }
  0x86   : > { %2945 = vmatprep.subr.bf16.mxu0 %v6481_v1  ;;  %2971 = vmatprep.mubr.bf16.mxu0 %v6972_v0  ;;  %v306_v1 = vshrl.u32 %v7252_v13, 16  ;;  %v782_v6 = vrot.slane %v780_v62, 2  ;;  %v6506_v34 = vld [vmem:[#allocation5 + $0x94] ss:$8 sps:$4 sm:$0xff]   ;;  %vm1011_vm4 = vcmask 1045504   ;;  %vm1858_vm6 = vcmask 1044480  }
  0x87   : > { %503 = vmatpush1.bf16.msra.mxu1 %v6483_v7  ;;  %v2869_v7 = vor.u32 %v2867_v57, %v2865_v36  ;;  %v790_v18 = vor.u32 %v789_v12, %v788_v2  ;;  %v3042_v36 = vld [vmem:[%s7172_s30 + $0xc] sm:$0xe]  ;;  %v6519_v2 = vld [vmem:[#allocation5 + $0x3d0] ss:$8 sps:$4 sm:$0xff]   ;;  %vm1629_vm5 = vsmask.f32 5376 }
  0x88   : > { %504 = vmatprep.subr.bf16.mxu1 %v6492_v23  ;;  %v2877_v23 = vshll.u32 %v7299_v8, 16  ;;  %vm2037_vm7 = vsmask.f32 4352  ;;  %s5355_s16 = scalar_lea.sflag [#allocation4], %s7168_s28  ;;  %s6893_s5 = scalar_lea.vmem %s8164_s21, 2560 }
  0x89   : > { %2946 = vmatpush1.bf16.msra.mxu0 %v6479_v63  ;;  %v305_v63 = vsel %vm269_vm1, %v300_v44, %v304_v45  ;;  %v2873_v42 = vsel %vm269_vm1, %v2869_v7, %v2872_v5  ;;  %v7318_v24 = vsel %vm775_vm3, %v7219_v49, %v790_v18  ;;  %v6512_v44 = vld [vmem:[#allocation5 + $0xa4] ss:$8 sps:$4 sm:$0xff]   ;;  %v7372_v7 = vld [vmem:[%s7172_s30 + $0x20] sm:$0xff]   ;;  %p6894_p11 = scmp.ne.s32.totalorder %s8164_s21, %s6893_s5  ;;  %p8228_p0 = scmp.ne.s32.totalorder %s8223_s6, 0 }
  0x8a   : > { %3123 = vmatprep.subr.bf16.mxu0 %v6489_v15  ;;  %v783_v15 = vor.u32 %v782_v6, %v779_v61  ;;  %v6524_v61 = vld [vmem:[#allocation5 + $0xc4] ss:$8 sps:$4 sm:$0xff]   ;;  %s6973_s8 = smov [#allocation8]  }
  0x8b   : > { %505 = vmatpush1.bf16.msra.mxu1 %v6490_v30  ;;  %p6895_p1 = pnand %p6894_p11, %p8228_p0  ;;  %s6897_s9 = sshll.u32 %s6973_s8, 4  ;;  %s6898_s9 = int_to_ptr.vmem [resolvable:$false] %s6897_s9 }
  0x8c   : > { %5683 = vmatmul.mubr.msk.bf16.vlgmr.msra.gmra.mrb[0].mxu0 %vm349_vm0, %v2859_v17  ;;  %5484 = vmatmul.mubr.msk.bf16.gmra.mrb[8].mxu1 %vm349_vm0, %v297_v28  ;;  %v793_v17 = vrot.slane %v294_v9, 2  ;;  %v7311_v21 = vsel %vm775_vm3, %v783_v15, %v7219_v49  ;;  %v308_v9 = vor.u32 %v306_v1, %v304_v45  ;;  %v2879_v28 = vrot.slane %v2877_v23, 1  ;;  %v582_v49 = vld [vmem:[%s7172_s30 + $0x24] sm:$0xf]  ;;  %v7381_v15 = vld [vmem:[%s7172_s30 + $0x28] sm:$0xff]   ;;  %s6899_s25 = scalar_lea.vmem %s6898_s9, 5120  ;;  %p6900_p7 = scmp.lt.s32.totalorder %s8164_s21, %s6898_s9 }
  0x8d   : > { %2981 = vmatprep.mubr.bf16.mxu0 %v6972_v0  ;;  %3124 = vmatpush1.bf16.msra.mxu0 %v6487_v22  ;;  %v2874_v22 = vshrl.u32 %v7265_v31, 16  ;;  %v7330_v30 = vcombine.low %v7244_v10, %v582_v49  ;;  %v5688_v45 = vcombine.low %v3042_v36, %v7199_v26  ;;  %v6516_v26 = vld [vmem:[#allocation5 + $0xb0] ss:$8 sps:$4 sm:$0xff]   ;;  %v6534_v23 = vld [vmem:[#allocation5 + $0x3f4] ss:$8 sps:$4 sm:$0xff]   ;;  %p6896_p3 = pneg %p6895_p1  ;;  %p6901_p9 = scmp.lt.s32.totalorder %s6899_s25, %s6893_s5 }
  0x8e   : > { %3125 = vmatprep.subr.bf16.mxu0 %v6496_v32  ;;  %427 = vmatprep.mubr.bf16.mxu1 %v6972_v0  ;;  %v794_v60 = vor.u32 %v793_v17, %v792_v16  ;;  %v6497_v32 = vld [vmem:[#allocation5 + $0x80] ss:$8 sps:$4 sm:$0xff]   ;;  %v3290_v16 = vshrl.u32 %v7372_v7, 16  ;;  %v6544_v36 = vld [vmem:[#allocation5 + $0x404] ss:$8 sps:$4 sm:$0xff]  }
  0x8f   : > { %663 = vmatprep.subr.bf16.mxu1 %v6499_v39  ;;  %v2876_v27 = vor.u32 %v2874_v22, %v2872_v5  ;;  %v606_v35 = vrot.slane %v7330_v30, 1  ;;  %v2883_v39 = vor.u32 %v2881_v33, %v2879_v28  ;;  %v797_v46 = vshrl.u32 %v7330_v30, 16  ;;  %v6532_v33 = vld [vmem:[#allocation5 + $0x3f0] ss:$8 sps:$4 sm:$0xff]   ;;  %p6902_p12 = por %p6901_p9, %p6900_p7 }
  0x90   : > { %v7321_v25 = vsel %vm775_vm3, %v790_v18, %v794_v60  ;;  %v3059_v55 = vrot.slane %v5688_v45, 1  ;;  %v3286_v18 = vshll.u32 %v7372_v7, 16 }
  0x91   : > { %3126 = vmatpush1.bf16.msra.mxu0 %v6494_v37  ;;  %v2880_v29 = vsel %vm269_vm1, %v2876_v27, %v2879_v28  ;;  %v7344_v10 = vsel %vm598_vm2, %v604_v43, %v606_v35  ;;  %v6504_v37 = vld [vmem:[#allocation5 + $0x90] ss:$8 sps:$4 sm:$0xff]   ;;  %v799_v51 = vrot.slane %v797_v46, 1  ;;  %v6518_v43 = vld [vmem:[#allocation5 + $0xb4] ss:$8 sps:$4 sm:$0xff]   ;;  %p6903_p2 = pnand %p6902_p12, %p6896_p3 }
  0x92   : > { %3127 = vmatprep.subr.bf16.mxu0 %v6503_v47  ;;  %v6510_v47 = vld [vmem:[#allocation5 + $0xa0] ss:$8 sps:$4 sm:$0xff]   ;;  %v3673_v27 = vrot.slane %v3286_v18, 2 }
  0x94   : > { %5684 = vmatmul.mubr.msk.bf16.gmra.mrb[4].mxu0 %vm349_vm0, %v2866_v56  ;;  %5485 = vmatmul.mubr.msk.bf16.gmra.mrb[12].mxu1 %vm349_vm0, %v305_v63  ;;  %v3060_v56 = vrot.slane %v7226_v53, 1  ;;  %v6513_v63 = vld [vmem:[#allocation5 + $0x3c0] ss:$8 sps:$4 sm:$0xff]  }
  0x95   : > { %2991 = vmatprep.mubr.bf16.mxu0 %v6972_v0  ;;  %3128 = vmatpush1.bf16.msra.mxu0 %v6501_v58  ;;  %v7357_v58 = vld [vmem:[%s7172_s30 + $0x18] sm:$0xff]  }
  0x96   : > { %3129 = vmatprep.subr.bf16.mxu0 %v6509_v59  ;;  %437 = vmatprep.mubr.bf16.mxu1 %v6972_v0  ;;  %v3061_v62 = vsel %vm598_vm2, %v3059_v55, %v3060_v56  ;;  %v3282_v53 = vshrl.u32 %v7357_v58, 16  ;;  %v3278_v5 = vshll.u32 %v7357_v58, 16  ;;  %v6531_v55 = vld [vmem:[#allocation5 + $0xd4] ss:$8 sps:$4 sm:$0xff]  }
  0x98   : > { %v3668_v6 = vrot.slane %v3282_v53, 1  ;;  %v3669_v12 = vrot.slane %v3278_v5, 2 }
  0x99   : > { %3130 = vmatpush1.bf16.msra.mxu0 %v6507_v11  ;;  %v3062_v11 = vrot.slane %v7239_v4, 1 }
  0x9a   : > { %3364 = vmatprep.subr.bf16.mxu0 %v6515_v14  ;;  %v6528_v14 = vld [vmem:[#allocation5 + $0x3e4] ss:$8 sps:$4 sm:$0xff]   ;;  %v7385_v17 = vor.u32 %v3669_v12, %v3668_v6  ;;  %v6545_v6 = vld [vmem:[#allocation5 + $0xf0] ss:$8 sps:$4 sm:$0xff]  }
  0x9b   : > { %v3063_v22 = vsel %vm598_vm2, %v3060_v56, %v3062_v11 }
  0x9c   : > { %5685 = vmatmul.mubr.msk.bf16.gmra.mrb[8].mxu0 %vm349_vm0, %v2873_v42  ;;  %5486 = vmatmul.mubr.msk.bf16.gmra.mrb[16].mxu1 %vm349_vm0, %v308_v9  ;;  %v3672_v42 = vrot.slane %v3290_v16, 1  ;;  %v3294_v9 = vshll.u32 %v7381_v15, 16 }
  0x9d   : > { %3001 = vmatprep.mubr.bf16.mxu0 %v6972_v0  ;;  %530 = vmatprep.mubr.bf16.mxu1 %v6972_v0 }
  0x9e   : > { %v3677_v49 = vrot.slane %v3294_v9, 2 }
  0xa4   : > { %5686 = vmatmul.mubr.msk.bf16.gmra.mrb[12].mxu0 %vm349_vm0, %v2880_v29  ;;  %5495 = vmatmul.mubr.msk.bf16.vlgmr.msra.gmra.mrb[0].mxu1 %vm349_vm0, %v7189_v19  ;;  %v800_v19 = vshll.u32 %v7330_v30, 16  ;;  %v3674_v29 = vor.u32 %v3673_v27, %v3672_v42  ;;  %v6549_v42 = vld [vmem:[#allocation5 + $0x410] ss:$8 sps:$4 sm:$0xff]  }
  0xa5   : > { %3011 = vmatprep.mubr.bf16.mxu0 %v6972_v0  ;;  %664 = vmatpush1.bf16.msra.mxu1 %v6497_v32  ;;  %v3064_v32 = vrot.slane %v7265_v31, 1  ;;  %v3235_v27 = vld [vmem:[%s7172_s30 + $0x34] sm:$0x7] }
  0xa6   : > { %540 = vmatprep.mubr.bf16.mxu1 %v6972_v0  ;;  %665 = vmatprep.subr.bf16.mxu1 %v6506_v34  ;;  %v802_v57 = vrot.slane %v800_v19, 2  ;;  %v3043_v34 = vld [vmem:[%s7172_s30 + $0x30] sm:$0xf]  ;;  %v6559_v30 = vld [vmem:[#allocation5 + $0x110] ss:$8 sps:$4 sm:$0xff]  }
  0xa7   : > { %v3065_v45 = vsel %vm598_vm2, %v3062_v11, %v3064_v32  ;;  %v3226_v19 = vld [vmem:[%s7172_s30 + $0x10] sm:$0xf] }
  0xa8   : > { %v7359_v59 = vor.u32 %v802_v57, %v799_v51  ;;  %v6522_v51 = vld [vmem:[#allocation5 + $0xc0] ss:$8 sps:$4 sm:$0xff]   ;;  %v6539_v57 = vld [vmem:[#allocation5 + $0xe4] ss:$8 sps:$4 sm:$0xff]  }
  0xa9   : > { %666 = vmatpush1.bf16.msra.mxu1 %v6504_v37  ;;  %v7407_v37 = vsel %vm775_vm3, %v7385_v17, %v3674_v29  ;;  %v6554_v11 = vld [vmem:[#allocation5 + $0x104] ss:$8 sps:$4 sm:$0xff]  }
  0xaa   : > { %667 = vmatprep.subr.bf16.mxu1 %v6512_v44  ;;  %v7365_v1 = vsel %vm775_vm3, %v794_v60, %v7359_v59  ;;  %v3298_v60 = vshrl.u32 %v7381_v15, 16 }
  0xac   : > { %5687 = vmatmul.mubr.msk.bf16.gmra.mrb[16].mxu0 %vm349_vm0, %v2883_v39  ;;  %5496 = vmatmul.mubr.msk.bf16.gmra.mrb[4].mxu1 %vm349_vm0, %v7192_v20  ;;  %v6521_v20 = vld [vmem:[#allocation5 + $0x3d4] ss:$8 sps:$4 sm:$0xff]   ;;  %v3676_v28 = vrot.slane %v3298_v60, 1 }
  0xad   : > { %3155 = vmatprep.mubr.bf16.mxu0 %v6972_v0  ;;  %550 = vmatprep.mubr.bf16.mxu1 %v6972_v0 }
  0xae   : > { %668 = vmatpush1.bf16.msra.mxu1 %v6510_v47  ;;  %v7409_v39 = vor.u32 %v3677_v49, %v3676_v28  ;;  %v7424_v47 = vld [vmem:[%s7172_s30 + $0x14] sm:$0xf] }
  0xaf   : > { %669 = vmatprep.subr.bf16.mxu1 %v6518_v43 }
  0xb0   : > { %v7414_v44 = vsel %vm775_vm3, %v3674_v29, %v7409_v39  ;;  %v6564_v29 = vld [vmem:[#allocation5 + $0x434] ss:$8 sps:$4 sm:$0xff]  }
  0xb2   : > { %670 = vmatpush1.bf16.msra.mxu1 %v6516_v26 }
  0xb3   : > { %860 = vmatprep.subr.bf16.mxu1 %v6524_v61 }
  0xb4   : > { %5698 = vmatmul.mubr.msk.bf16.vlgmr.msra.gmra.mrb[0].mxu0 %vm349_vm0, %v3061_v62  ;;  %5497 = vmatmul.mubr.msk.bf16.gmra.mrb[8].mxu1 %vm349_vm0, %v7205_v38  ;;  %v6526_v38 = vld [vmem:[#allocation5 + $0x3e0] ss:$8 sps:$4 sm:$0xff]  }
  0xb5   : > { %3165 = vmatprep.mubr.bf16.mxu0 %v6972_v0  ;;  %3365 = vmatpush1.bf16.msra.mxu0 %v6513_v63  ;;  %v6537_v62 = vld [vmem:[#allocation5 + $0xe0] ss:$8 sps:$4 sm:$0xff]   ;;  %v6547_v63 = vld [vmem:[#allocation5 + $0xf4] ss:$8 sps:$4 sm:$0xff]  }
  0xb6   : > { %3366 = vmatprep.subr.bf16.mxu0 %v6521_v20  ;;  %560 = vmatprep.mubr.bf16.mxu1 %v6972_v0 }
  0xb9   : > { %3367 = vmatpush1.bf16.msra.mxu0 %v6519_v2  ;;  %v6542_v2 = vld [vmem:[#allocation5 + $0x400] ss:$8 sps:$4 sm:$0xff]  }
  0xba   : > { %3368 = vmatprep.subr.bf16.mxu0 %v6528_v14  ;;  %v6551_v14 = vld [vmem:[#allocation5 + $0x414] ss:$8 sps:$4 sm:$0xff]  }
  0xbc   : > { %5699 = vmatmul.mubr.msk.bf16.gmra.mrb[4].mxu0 %vm349_vm0, %v3063_v22  ;;  %5498 = vmatmul.mubr.msk.bf16.gmra.mrb[12].mxu1 %vm349_vm0, %v7237_v3  ;;  %v5689_v3 = vcombine.low %v7282_v50, %v3043_v34  ;;  %v5703_v50 = vcombine.low %v3226_v19, %v7424_v47  ;;  %v6558_v22 = vld [vmem:[#allocation5 + $0x424] ss:$8 sps:$4 sm:$0xff]  }
  0xbd   : > { %3175 = vmatprep.mubr.bf16.mxu0 %v6972_v0  ;;  %3369 = vmatpush1.bf16.msra.mxu0 %v6526_v38  ;;  %v6556_v38 = vld [vmem:[#allocation5 + $0x420] ss:$8 sps:$4 sm:$0xff]  }
  0xbe   : > { %3370 = vmatprep.subr.bf16.mxu0 %v6534_v23  ;;  %570 = vmatprep.mubr.bf16.mxu1 %v6972_v0  ;;  %v3066_v46 = vrot.slane %v5689_v3, 1  ;;  %v3273_v56 = vshll.u32 %v5703_v50, 16  ;;  %v3271_v26 = vshrl.u32 %v5703_v50, 16  ;;  %v7452_v23 = vld [vmem:[%s7172_s30 + $0x30] sm:$0xf]  ;;  %v3485_v50 = vrot.slane %v7357_v58, 1 }
  0xbf   : > { %v5707_v49 = vcombine.low %v7452_v23, %v3235_v27  ;;  %v3487_v58 = vrot.slane %v7372_v7, 1  ;;  %v3489_v7 = vrot.slane %v7381_v15, 1  ;;  %v6581_v27 = vld [vmem:[#allocation5 + $0x140] ss:$8 sps:$4 sm:$0xff]  }
  0xc0   : > { %v3067_v43 = vsel %vm598_vm2, %v3064_v32, %v3066_v46  ;;  %v3275_v61 = vrot.slane %v3273_v56, 1  ;;  %v6571_v32 = vld [vmem:[#allocation5 + $0x444] ss:$8 sps:$4 sm:$0xff]  }
  0xc1   : > { %3371 = vmatpush1.bf16.msra.mxu0 %v6532_v33  ;;  %v3302_v34 = vshll.u32 %v5707_v49, 16  ;;  %v3306_v3 = vshrl.u32 %v5707_v49, 16  ;;  %v7540_v49 = vld [vmem:[%s7172_s30 + $0x18] sm:$0xf] }
  0xc2   : > { %3548 = vmatprep.subr.bf16.mxu0 %v6544_v36  ;;  %v3276_v20 = vor.u32 %v3275_v61, %v3271_v26  ;;  %v6587_v26 = vld [vmem:[#allocation5 + $0x464] ss:$8 sps:$4 sm:$0xff]   ;;  %v3488_v61 = vsel %vm598_vm2, %v3485_v50, %v3487_v58 }
  0xc4   : > { %5700 = vmatmul.mubr.msk.bf16.gmra.mrb[8].mxu0 %vm349_vm0, %v3065_v45  ;;  %5499 = vmatmul.mubr.msk.bf16.gmra.mrb[16].mxu1 %vm349_vm0, %v7252_v13  ;;  %v6529_v13 = vld [vmem:[#allocation5 + $0xd0] ss:$8 sps:$4 sm:$0xff]   ;;  %v6561_v45 = vld [vmem:[#allocation5 + $0x114] ss:$8 sps:$4 sm:$0xff]  }
  0xc5   : > { %3185 = vmatprep.mubr.bf16.mxu0 %v6972_v0  ;;  %695 = vmatprep.mubr.bf16.mxu1 %v6972_v0 }
  0xcc   : > { %5701 = vmatmul.mubr.msk.bf16.gmra.mrb[12].mxu0 %vm349_vm0, %v3067_v43  ;;  %5510 = vmatmul.mubr.msk.bf16.vlgmr.msra.gmra.mrb[0].mxu1 %vm349_vm0, %v7273_v40  ;;  %v3280_v40 = vrot.slane %v3278_v5, 1  ;;  %v3288_v5 = vrot.slane %v3286_v18, 1  ;;  %v3296_v18 = vrot.slane %v3294_v9, 1  ;;  %v3304_v9 = vrot.slane %v3302_v34, 1  ;;  %v6574_v43 = vld [vmem:[#allocation5 + $0x134] ss:$8 sps:$4 sm:$0xff]  }
  0xcd   : > { %3195 = vmatprep.mubr.bf16.mxu0 %v6972_v0  ;;  %861 = vmatpush1.bf16.msra.mxu1 %v6522_v51  ;;  %v6566_v51 = vld [vmem:[#allocation5 + $0x120] ss:$8 sps:$4 sm:$0xff]  }
  0xce   : > { %705 = vmatprep.mubr.bf16.mxu1 %v6972_v0  ;;  %862 = vmatprep.subr.bf16.mxu1 %v6531_v55  ;;  %v3281_v12 = vsel %vm269_vm1, %v3276_v20, %v3280_v40  ;;  %v6583_v55 = vld [vmem:[#allocation5 + $0x144] ss:$8 sps:$4 sm:$0xff]  }
  0xcf   : > { %v3468_v20 = vld [vmem:[%s7172_s30 + $0x34] sm:$0xf] }
  0xd0   : > { %v7515_v15 = vcombine.low %v7452_v23, %v3468_v20 }
  0xd1   : > { %863 = vmatpush1.bf16.msra.mxu1 %v6529_v13  ;;  %v6569_v13 = vld [vmem:[#allocation5 + $0x440] ss:$8 sps:$4 sm:$0xff]  }
  0xd2   : > { %864 = vmatprep.subr.bf16.mxu1 %v6539_v57  ;;  %v6577_v57 = vld [vmem:[#allocation5 + $0x454] ss:$8 sps:$4 sm:$0xff]  }
  0xd4   : > { %5702 = vmatmul.mubr.msk.bf16.gmra.mrb[16].mxu0 %vm349_vm0, %v3066_v46  ;;  %5511 = vmatmul.mubr.msk.bf16.gmra.mrb[4].mxu1 %vm349_vm0, %v7276_v41  ;;  %v3284_v41 = vor.u32 %v3282_v53, %v3280_v40  ;;  %v6562_v53 = vld [vmem:[#allocation5 + $0x430] ss:$8 sps:$4 sm:$0xff]   ;;  %v3308_v46 = vor.u32 %v3306_v3, %v3304_v9  ;;  %v6606_v40 = vld [vmem:[#allocation5 + $0x484] ss:$8 sps:$4 sm:$0xff]  }
  0xd5   : > { %3396 = vmatprep.mubr.bf16.mxu0 %v6972_v0  ;;  %715 = vmatprep.mubr.bf16.mxu1 %v6972_v0 }
  0xd6   : > { %865 = vmatpush1.bf16.msra.mxu1 %v6537_v62  ;;  %v3289_v28 = vsel %vm269_vm1, %v3284_v41, %v3288_v5  ;;  %v6585_v62 = vld [vmem:[#allocation5 + $0x460] ss:$8 sps:$4 sm:$0xff]  }
  0xd7   : > { %866 = vmatprep.subr.bf16.mxu1 %v6547_v63  ;;  %v6595_v63 = vld [vmem:[#allocation5 + $0x474] ss:$8 sps:$4 sm:$0xff]  }
  0xda   : > { %867 = vmatpush1.bf16.msra.mxu1 %v6545_v6  ;;  %v7508_v6 = vld [vmem:[%s7172_s30 + $0x8] sm:$0xf] }
  0xdb   : > { %1078 = vmatprep.subr.bf16.mxu1 %v6554_v11  ;;  %v7511_v11 = vld [vmem:[%s7172_s30 + $0xc] sm:$0xf] }
  0xdc   : > { %5716 = vmatmul.mubr.msk.bf16.vlgmr.msra.gmra.mrb[0].mxu0 %vm349_vm0, %v3281_v12  ;;  %5512 = vmatmul.mubr.msk.bf16.gmra.mrb[8].mxu1 %vm349_vm0, %v7288_v54  ;;  %v3292_v54 = vor.u32 %v3290_v16, %v3288_v5  ;;  %v3300_v16 = vor.u32 %v3298_v60, %v3296_v18  ;;  %v3467_v60 = vld [vmem:[%s7172_s30 + $0x10] sm:$0xe]  ;;  %v6578_v12 = vld [vmem:[%s7172_s30] sm:$0xfc]  }
  0xdd   : > { %3406 = vmatprep.mubr.bf16.mxu0 %v6972_v0  ;;  %3549 = vmatpush1.bf16.msra.mxu0 %v6542_v2  ;;  %v7483_v19 = vcombine.low %v3467_v60, %v7424_v47  ;;  %v6572_v47 = vld [vmem:[#allocation5 + $0x130] ss:$8 sps:$4 sm:$0xff]   ;;  %v3490_v2 = vsel %vm598_vm2, %v3487_v58, %v3489_v7  ;;  %v967_v5 = vld [vmem:[%s7172_s30 + $0x10] sm:$0xf] }
  0xde   : > { %3550 = vmatprep.subr.bf16.mxu0 %v6551_v14  ;;  %725 = vmatprep.mubr.bf16.mxu1 %v6972_v0  ;;  %v3297_v33 = vsel %vm269_vm1, %v3292_v54, %v3296_v18  ;;  %v3305_v36 = vsel %vm269_vm1, %v3300_v16, %v3304_v9  ;;  %v3491_v14 = vrot.slane %v7515_v15, 1  ;;  %v6590_v18 = vld [vmem:[#allocation5 + $0x150] ss:$8 sps:$4 sm:$0xff]   ;;  %v5548_v58 = vcombine.low %v7511_v11, %v967_v5 }
  0xe0   : > { %v1210_v20 = vshrl.u32 %v5548_v58, 16 }
  0xe1   : > { %3551 = vmatpush1.bf16.msra.mxu0 %v6549_v42  ;;  %v1012_v42 = vrot.slane %v6578_v12, 2 }
  0xe2   : > { %3552 = vmatprep.subr.bf16.mxu0 %v6558_v22  ;;  %v7528_v22 = vld [vmem:[%s7172_s30 + $0x14] sm:$0xf] }
  0xe4   : > { %5717 = vmatmul.mubr.msk.bf16.gmra.mrb[4].mxu0 %vm349_vm0, %v3289_v28  ;;  %5513 = vmatmul.mubr.msk.bf16.gmra.mrb[12].mxu1 %vm349_vm0, %v7344_v10  ;;  %v6552_v10 = vld [vmem:[#allocation5 + $0x100] ss:$8 sps:$4 sm:$0xff]   ;;  %v5530_v28 = vcombine.low %v967_v5, %v7528_v22 }
  0xe5   : > { %3416 = vmatprep.mubr.bf16.mxu0 %v6972_v0  ;;  %3553 = vmatpush1.bf16.msra.mxu0 %v6556_v38  ;;  %v3492_v38 = vsel %vm598_vm2, %v3489_v7, %v3491_v14  ;;  %v3684_v7 = vshll.u32 %v7515_v15, 16 }
  0xe6   : > { %3554 = vmatprep.subr.bf16.mxu0 %v6564_v29  ;;  %735 = vmatprep.mubr.bf16.mxu1 %v6972_v0  ;;  %v3661_v29 = vshrl.u32 %v7483_v19, 16  ;;  %v1015_v54 = vrot.slane %v5530_v28, 2 }
  0xe8   : > { %v3663_v34 = vrot.slane %v3661_v29, 1 }
  0xe9   : > { %3555 = vmatpush1.bf16.msra.mxu0 %v6562_v53  ;;  %v3664_v53 = vshll.u32 %v7483_v19, 16 }
  0xea   : > { %3744 = vmatprep.subr.bf16.mxu0 %v6571_v32  ;;  %v7543_v32 = vld [vmem:[%s7172_s30 + $0x1c] sm:$0xf] }
  0xeb   : > { %v3666_v16 = vrot.slane %v3664_v53, 2 }
  0xec   : > { %5718 = vmatmul.mubr.msk.bf16.gmra.mrb[8].mxu0 %vm349_vm0, %v3297_v33  ;;  %5514 = vmatmul.mubr.msk.bf16.gmra.mrb[16].mxu1 %vm349_vm0, %v606_v35  ;;  %v6568_v35 = vld [vmem:[#allocation5 + $0x124] ss:$8 sps:$4 sm:$0xff]  }
  0xed   : > { %3426 = vmatprep.mubr.bf16.mxu0 %v6972_v0  ;;  %892 = vmatprep.mubr.bf16.mxu1 %v6972_v0  ;;  %v6600_v33 = vld [vmem:[#allocation5 + $0x164] ss:$8 sps:$4 sm:$0xff]   ;;  %v3667_v3 = vor.u32 %v3666_v16, %v3663_v34  ;;  %v6620_v34 = vld [vmem:[#allocation5 + $0x190] ss:$8 sps:$4 sm:$0xff]  }
  0xf4   : > { %5719 = vmatmul.mubr.msk.bf16.gmra.mrb[12].mxu0 %vm349_vm0, %v3305_v36  ;;  %5523 = vmatmul.mubr.msk.bf16.vlgmr.msra.gmra.mrb[0].mxu1 %vm349_vm0, %v7311_v21  ;;  %v3484_v21 = vrot.slane %v7483_v19, 1  ;;  %v6598_v36 = vld [vmem:[#allocation5 + $0x160] ss:$8 sps:$4 sm:$0xff]   ;;  %v6616_v19 = vld [vmem:[#allocation5 + $0x184] ss:$8 sps:$4 sm:$0xff]  }
  0xf5   : > { %3436 = vmatprep.mubr.bf16.mxu0 %v6972_v0  ;;  %1079 = vmatpush1.bf16.msra.mxu1 %v6552_v10  ;;  %v5531_v10 = vcombine.low %v7540_v49, %v7543_v32 }
  0xf6   : > { %902 = vmatprep.mubr.bf16.mxu1 %v6972_v0  ;;  %1080 = vmatprep.subr.bf16.mxu1 %v6561_v45  ;;  %v3486_v56 = vsel %vm598_vm2, %v3484_v21, %v3485_v50  ;;  %v6609_v45 = vld [vmem:[#allocation5 + $0x174] ss:$8 sps:$4 sm:$0xff]  }
  0xf7   : > { %v1017_v60 = vrot.slane %v5531_v10, 2  ;;  %v6613_v21 = vld [vmem:[#allocation5 + $0x494] ss:$8 sps:$4 sm:$0xff]   ;;  %v6630_v10 = vld [vmem:[#allocation5 + $0x1a4] ss:$8 sps:$4 sm:$0xff]  }
  0xf9   : > { %1081 = vmatpush1.bf16.msra.mxu1 %v6559_v30  ;;  %v6607_v30 = vld [vmem:[#allocation5 + $0x170] ss:$8 sps:$4 sm:$0xff]   ;;  %v1018_v50 = vsel %vm1011_vm4, %v1015_v54, %v1017_v60 }
  0xfa   : > { %1082 = vmatprep.subr.bf16.mxu1 %v6568_v35  ;;  %v7553_v35 = vld [vmem:[%s7172_s30 + $0x20] sm:$0xf] }
  0xfb   : > { %v5550_v53 = vcombine.low %v7543_v32, %v7553_v35 }
  0xfc   : > { %5720 = vmatmul.mubr.msk.bf16.gmra.mrb[16].mxu0 %vm349_vm0, %v3308_v46  ;;  %5524 = vmatmul.mubr.msk.bf16.gmra.mrb[4].mxu1 %vm349_vm0, %v7318_v24  ;;  %v6575_v24 = vld [vmem:[#allocation5 + $0x450] ss:$8 sps:$4 sm:$0xff]   ;;  %v7556_v46 = vld [vmem:[%s7172_s30 + $0x24] sm:$0xf] }
  0xfd   : > { %3580 = vmatprep.mubr.bf16.mxu0 %v6972_v0  ;;  %912 = vmatprep.mubr.bf16.mxu1 %v6972_v0  ;;  %v1228_v32 = vshrl.u32 %v5550_v53, 16  ;;  %v1231_v16 = vshll.u32 %v5550_v53, 16  ;;  %v6644_v53 = vld [vmem:[#allocation5 + $0x1c0] ss:$8 sps:$4 sm:$0xff]  }
  0xfe   : > { %1083 = vmatpush1.bf16.msra.mxu1 %v6566_v51  ;;  %v3671_v51 = vsel %vm775_vm3, %v3667_v3, %v7385_v17  ;;  %v6619_v17 = vld [vmem:[#allocation5 + $0x4a4] ss:$8 sps:$4 sm:$0xff]  }
  0xff   : > { %1084 = vmatprep.subr.bf16.mxu1 %v6574_v43  ;;  %v6604_v43 = vld [vmem:[#allocation5 + $0x480] ss:$8 sps:$4 sm:$0xff]  }
 0x102   : > { %1085 = vmatpush1.bf16.msra.mxu1 %v6572_v47  ;;  %v5532_v47 = vcombine.low %v7553_v35, %v7556_v46  ;;  %v1233_v35 = vrot.slane %v1231_v16, 2  ;;  %v6653_v16 = vld [vmem:[#allocation5 + $0x1d0] ss:$8 sps:$4 sm:$0xff]  }
 0x103   : > { %1300 = vmatprep.subr.bf16.mxu1 %v6583_v55  ;;  %v6611_v55 = vld [vmem:[#allocation5 + $0x490] ss:$8 sps:$4 sm:$0xff]  }
 0x104   : > { %5731 = vmatmul.mubr.msk.bf16.vlgmr.msra.gmra.mrb[0].mxu0 %vm349_vm0, %v3486_v56  ;;  %5525 = vmatmul.mubr.msk.bf16.gmra.mrb[8].mxu1 %vm349_vm0, %v7321_v25  ;;  %v6593_v25 = vld [vmem:[#allocation5 + $0x470] ss:$8 sps:$4 sm:$0xff]   ;;  %v1019_v56 = vrot.slane %v5532_v47, 2 }
 0x105   : > { %3590 = vmatprep.mubr.bf16.mxu0 %v6972_v0  ;;  %3745 = vmatpush1.bf16.msra.mxu0 %v6569_v13  ;;  %v1181_v13 = vld [vmem:[%s7172_s30 + $0x4] sm:$0xe] }
 0x106   : > { %3746 = vmatprep.subr.bf16.mxu0 %v6577_v57  ;;  %922 = vmatprep.mubr.bf16.mxu1 %v6972_v0  ;;  %v6617_v57 = vld [vmem:[#allocation5 + $0x4a0] ss:$8 sps:$4 sm:$0xff]  }
 0x109   : > { %3747 = vmatpush1.bf16.msra.mxu0 %v6575_v24  ;;  %v6625_v24 = vld [vmem:[#allocation5 + $0x4b4] ss:$8 sps:$4 sm:$0xff]  }
 0x10a   : > { %3748 = vmatprep.subr.bf16.mxu0 %v6587_v26  ;;  %v5547_v26 = vcombine.low %v1181_v13, %v7508_v6  ;;  %v7613_v13 = vld [vmem:[%s7172_s30 + $0x20] sm:$0xff]  }
 0x10c   : > { %5732 = vmatmul.mubr.msk.bf16.gmra.mrb[4].mxu0 %vm349_vm0, %v3488_v61  ;;  %5526 = vmatmul.mubr.msk.bf16.gmra.mrb[12].mxu1 %vm349_vm0, %v7365_v1  ;;  %v5529_v1 = vcombine.low %v7508_v6, %v7511_v11  ;;  %v1020_v61 = vsel %vm1011_vm4, %v1017_v60, %v1019_v56  ;;  %v6634_v6 = vld [vmem:[#allocation5 + $0x4c4] ss:$8 sps:$4 sm:$0xff]   ;;  %v1205_v12 = vshll.u32 %v5547_v26, 16 }
 0x10d   : > { %3600 = vmatprep.mubr.bf16.mxu0 %v6972_v0  ;;  %3749 = vmatpush1.bf16.msra.mxu0 %v6585_v62  ;;  %v6610_v62 = vld [vmem:[%s7172_s30 + $0x28] ss:$0 sps:$4 sm:$0x11]  }
 0x10e   : > { %3750 = vmatprep.subr.bf16.mxu0 %v6595_v63  ;;  %932 = vmatprep.mubr.bf16.mxu1 %v6972_v0  ;;  %v1013_v41 = vrot.slane %v5529_v1, 2  ;;  %v3681_v63 = vshrl.u32 %v7515_v15, 16  ;;  %v1021_v11 = vrot.slane %v6610_v62, 2  ;;  %v3686_v1 = vrot.slane %v3684_v7, 2  ;;  %v6650_v7 = vld [vmem:[#allocation5 + $0x4e4] ss:$8 sps:$4 sm:$0xff]  }
 0x10f   : > { %v5549_v15 = vcombine.low %v7528_v22, %v7540_v49  ;;  %v3898_v62 = vrot.slane %v7613_v13, 2 }
 0x110   : > { %v1014_v23 = vsel %vm1011_vm4, %v1012_v42, %v1013_v41  ;;  %v1016_v9 = vsel %vm1011_vm4, %v1013_v41, %v1015_v54  ;;  %v1022_v41 = vsel %vm1011_vm4, %v1019_v56, %v1021_v11  ;;  %v6614_v54 = vld [vmem:[#allocation5 + $0x180] ss:$8 sps:$4 sm:$0xff]   ;;  %v6658_v11 = vld [vmem:[#allocation5 + $0x4f4] ss:$8 sps:$4 sm:$0xff]  }
 0x111   : > { %3751 = vmatpush1.bf16.msra.mxu0 %v6593_v25  ;;  %v6623_v25 = vld [vmem:[#allocation5 + $0x4b0] ss:$8 sps:$4 sm:$0xff]   ;;  %v1222_v29 = vshll.u32 %v5549_v15, 16 }
 0x112   : > { %3961 = vmatprep.subr.bf16.mxu0 %v6606_v40  ;;  %v1213_v40 = vshll.u32 %v5548_v58, 16  ;;  %v6641_v58 = vld [vmem:[#allocation5 + $0x4d4] ss:$8 sps:$4 sm:$0xff]  }
 0x113   : > { %v1224_v49 = vrot.slane %v1222_v29, 2 }
 0x114   : > { %5733 = vmatmul.mubr.msk.bf16.gmra.mrb[8].mxu0 %vm349_vm0, %v3490_v2  ;;  %5527 = vmatmul.mubr.msk.bf16.gmra.mrb[16].mxu1 %vm349_vm0, %v7359_v59  ;;  %v6592_v59 = vld [vmem:[#allocation5 + $0x154] ss:$8 sps:$4 sm:$0xff]   ;;  %v1202_v2 = vshrl.u32 %v5547_v26, 16  ;;  %v1215_v42 = vrot.slane %v1213_v40, 2  ;;  %v7623_v40 = vld [vmem:[%s7172_s30 + $0x28] sm:$0xff]  }
 0x115   : > { %3610 = vmatprep.mubr.bf16.mxu0 %v6972_v0  ;;  %1110 = vmatprep.mubr.bf16.mxu1 %v6972_v0 }
 0x116   : > { %v1204_v5 = vrot.slane %v1202_v2, 1 }
 0x11c   : > { %5734 = vmatmul.mubr.msk.bf16.gmra.mrb[12].mxu0 %vm349_vm0, %v3492_v38  ;;  %5542 = vmatmul.mubr.msk.bf16.vlgmr.msra.gmra.mrb[0].mxu1 %vm349_vm0, %v1014_v23  ;;  %v1207_v38 = vrot.slane %v1205_v12, 2  ;;  %v3900_v12 = vrot.slane %v7623_v40, 2 }
 0x11d   : > { %3620 = vmatprep.mubr.bf16.mxu0 %v6972_v0  ;;  %1301 = vmatpush1.bf16.msra.mxu1 %v6581_v27 }
 0x11e   : > { %1120 = vmatprep.mubr.bf16.mxu1 %v6972_v0  ;;  %1302 = vmatprep.subr.bf16.mxu1 %v6592_v59  ;;  %v1208_v27 = vor.u32 %v1207_v38, %v1204_v5  ;;  %v1219_v59 = vshrl.u32 %v5549_v15, 16  ;;  %v3901_v15 = vsel %vm1011_vm4, %v3898_v62, %v3900_v12  ;;  %v7643_v38 = vld [vmem:[%s7172_s30 + $0xc] sm:$0xff]  }
 0x121   : > { %1303 = vmatpush1.bf16.msra.mxu1 %v6590_v18  ;;  %v1221_v18 = vrot.slane %v1219_v59, 1  ;;  %v7653_v59 = vld [vmem:[%s7172_s30 + $0x38] ss:$0 sps:$4 sm:$0x11]  }
 0x122   : > { %1304 = vmatprep.subr.bf16.mxu1 %v6600_v33  ;;  %v6622_v33 = vld [vmem:[#allocation5 + $0x194] ss:$8 sps:$4 sm:$0xff]  }
 0x124   : > { %5735 = vmatmul.mubr.msk.bf16.gmra.mrb[16].mxu0 %vm349_vm0, %v3491_v14  ;;  %5543 = vmatmul.mubr.msk.bf16.gmra.mrb[4].mxu1 %vm349_vm0, %v1016_v9  ;;  %v1212_v14 = vrot.slane %v1210_v20, 1  ;;  %v1182_v9 = vld [vmem:[%s7172_s30 + $0x28] sm:$0xf] }
 0x125   : > { %3776 = vmatprep.mubr.bf16.mxu0 %v6972_v0  ;;  %1130 = vmatprep.mubr.bf16.mxu1 %v6972_v0  ;;  %v5551_v3 = vcombine.low %v7556_v46, %v1182_v9 }
 0x126   : > { %1305 = vmatpush1.bf16.msra.mxu1 %v6598_v36  ;;  %v1216_v28 = vor.u32 %v1215_v42, %v1212_v14  ;;  %v7598_v36 = vld [vmem:[%s7172_s30 + $0x10] sm:$0xfc]   ;;  %v1403_v14 = vld [vmem:[%s7172_s30 + $0x4] sm:$0xc]  ;;  %v7633_v42 = vld [vmem:[%s7172_s30 + $0x8] sm:$0xf] }
 0x127   : > { %1306 = vmatprep.subr.bf16.mxu1 %v6609_v45  ;;  %v7601_v45 = vld [vmem:[%s7172_s30 + $0x18] sm:$0xff]   ;;  %v1240_v47 = vshll.u32 %v5551_v3, 16  ;;  %v7640_v5 = vcombine.low %v1403_v14, %v7633_v42  ;;  %v7697_v14 = vld [vmem:[%s7172_s30 + $0x2c] ss:$0 sps:$4 sm:$0x11]  }
 0x12a   : > { %1307 = vmatpush1.bf16.msra.mxu1 %v6607_v30  ;;  %v1230_v30 = vrot.slane %v1228_v32, 1 }
 0x12b   : > { %1517 = vmatprep.subr.bf16.mxu1 %v6616_v19  ;;  %v6628_v19 = vld [vmem:[#allocation5 + $0x1a0] ss:$8 sps:$4 sm:$0xff]  }
 0x12c   : > { %5744 = vmatmul.mubr.msk.bf16.vlgmr.msra.gmra.mrb[0].mxu0 %vm349_vm0, %v3671_v51  ;;  %5544 = vmatmul.mubr.msk.bf16.gmra.mrb[8].mxu1 %vm349_vm0, %v1018_v50  ;;  %v6637_v51 = vld [vmem:[#allocation5 + $0x1b4] ss:$8 sps:$4 sm:$0xff]   ;;  %v1234_v46 = vor.u32 %v1233_v35, %v1230_v30  ;;  %v1237_v50 = vshrl.u32 %v5551_v3, 16 }
 0x12d   : > { %3786 = vmatprep.mubr.bf16.mxu0 %v6972_v0  ;;  %3962 = vmatpush1.bf16.msra.mxu0 %v6604_v43  ;;  %v3895_v43 = vrot.slane %v7598_v36, 2 }
 0x12e   : > { %3963 = vmatprep.subr.bf16.mxu0 %v6613_v21  ;;  %1140 = vmatprep.mubr.bf16.mxu1 %v6972_v0  ;;  %v3896_v21 = vrot.slane %v7601_v45, 2  ;;  %v1239_v26 = vrot.slane %v1237_v50, 1  ;;  %v4094_v50 = vshll.u32 %v7613_v13, 16 }
 0x130   : > { %v3897_v56 = vsel %vm1011_vm4, %v3895_v43, %v3896_v21  ;;  %v3899_v20 = vsel %vm1011_vm4, %v3896_v21, %v3898_v62 }
 0x131   : > { %3964 = vmatpush1.bf16.msra.mxu0 %v6611_v55  ;;  %v6635_v55 = vld [vmem:[#allocation5 + $0x1b0] ss:$8 sps:$4 sm:$0xff]  }
 0x132   : > { %3965 = vmatprep.subr.bf16.mxu0 %v6619_v17  ;;  %v6646_v17 = vld [vmem:[#allocation5 + $0x1c4] ss:$8 sps:$4 sm:$0xff]  }
 0x134   : > { %5745 = vmatmul.mubr.msk.bf16.gmra.mrb[4].mxu0 %vm349_vm0, %v7407_v37  ;;  %5545 = vmatmul.mubr.msk.bf16.gmra.mrb[12].mxu1 %vm349_vm0, %v1020_v61  ;;  %v3683_v37 = vrot.slane %v3681_v63, 1  ;;  %v1242_v61 = vrot.slane %v1240_v47, 2  ;;  %v6639_v63 = vld [vmem:[#allocation5 + $0x4d0] ss:$8 sps:$4 sm:$0xff]  }
 0x135   : > { %3796 = vmatprep.mubr.bf16.mxu0 %v6972_v0  ;;  %3966 = vmatpush1.bf16.msra.mxu0 %v6617_v57  ;;  %v6632_v57 = vld [vmem:[#allocation5 + $0x4c0] ss:$8 sps:$4 sm:$0xff]  }
 0x136   : > { %3967 = vmatprep.subr.bf16.mxu0 %v6625_v24  ;;  %1150 = vmatprep.mubr.bf16.mxu1 %v6972_v0  ;;  %v3687_v23 = vor.u32 %v3686_v1, %v3683_v37  ;;  %v6656_v37 = vld [vmem:[#allocation5 + $0x4f0] ss:$8 sps:$4 sm:$0xff]   ;;  %v6666_v1 = vld [vmem:[#allocation5 + $0x504] ss:$8 sps:$4 sm:$0xff]  }
 0x138   : > { %v3688_v22 = vsel %vm775_vm3, %v7409_v39, %v3687_v23  ;;  %v1225_v39 = vor.u32 %v1224_v49, %v1221_v18  ;;  %v6655_v18 = vld [vmem:[#allocation5 + $0x1d4] ss:$8 sps:$4 sm:$0xff]   ;;  %v4074_v49 = vshrl.u32 %v7598_v36, 16 }
 0x139   : > { %3968 = vmatpush1.bf16.msra.mxu0 %v6623_v25  ;;  %v1243_v25 = vor.u32 %v1242_v61, %v1239_v26  ;;  %v6673_v26 = vld [vmem:[#allocation5 + $0x514] ss:$8 sps:$4 sm:$0xff]  }
 0x13a   : > { %4181 = vmatprep.subr.bf16.mxu0 %v6634_v6  ;;  %v1226_v60 = vsel %vm775_vm3, %v1216_v28, %v1225_v39  ;;  %v1235_v24 = vsel %vm775_vm3, %v1225_v39, %v1234_v46  ;;  %v6648_v6 = vld [vmem:[#allocation5 + $0x4e0] ss:$8 sps:$4 sm:$0xff]   ;;  %v4082_v39 = vshrl.u32 %v7601_v45, 16  ;;  %v4076_v3 = vrot.slane %v4074_v49, 2 }
 0x13b   : > { %v1244_v2 = vsel %vm775_vm3, %v1234_v46, %v1243_v25  ;;  %v4091_v46 = vshrl.u32 %v7613_v13, 16  ;;  %v7685_v13 = vld [vmem:[%s7172_s30 + $0x24] sm:$0xff]   ;;  %v1634_v49 = vshll.u32 %v7640_v5, 16 }
 0x13c   : > { %5746 = vmatmul.mubr.msk.bf16.gmra.mrb[8].mxu0 %vm349_vm0, %v7414_v44  ;;  %5546 = vmatmul.mubr.msk.bf16.gmra.mrb[16].mxu1 %vm349_vm0, %v1022_v41  ;;  %v1217_v44 = vsel %vm775_vm3, %v1208_v27, %v1216_v28  ;;  %v7637_v41 = vld [vmem:[%s7172_s30 + $0x30] sm:$0xff]   ;;  %v1451_v27 = vrot.slane %v7640_v5, 2  ;;  %v1452_v28 = vrot.slane %v7643_v38, 2 }
 0x13d   : > { %3806 = vmatprep.mubr.bf16.mxu0 %v6972_v0  ;;  %1332 = vmatprep.mubr.bf16.mxu1 %v6972_v0 }
 0x144   : > { %5747 = vmatmul.mubr.msk.bf16.gmra.mrb[12].mxu0 %vm349_vm0, %v3688_v22  ;;  %5560 = vmatmul.mubr.msk.bf16.vlgmr.msra.gmra.mrb[0].mxu1 %vm349_vm0, %v1217_v44  ;;  %v1453_v22 = vsel %vm1011_vm4, %v1451_v27, %v1452_v28  ;;  %v7658_v44 = vld [vmem:[%s7172_s30 + $0x14] sm:$0xff]  }
 0x145   : > { %3816 = vmatprep.mubr.bf16.mxu0 %v6972_v0  ;;  %1518 = vmatpush1.bf16.msra.mxu1 %v6614_v54  ;;  %v3904_v54 = vrot.slane %v7653_v59, 2  ;;  %v1454_v32 = vrot.slane %v7658_v44, 2 }
 0x146   : > { %1342 = vmatprep.mubr.bf16.mxu1 %v6972_v0  ;;  %1519 = vmatprep.subr.bf16.mxu1 %v6622_v33  ;;  %v4077_v33 = vshll.u32 %v7598_v36, 16  ;;  %v4084_v36 = vrot.slane %v4082_v39, 2  ;;  %v1639_v39 = vshrl.u32 %v7643_v38, 16 }
 0x147   : > { %v1455_v35 = vsel %vm1011_vm4, %v1452_v28, %v1454_v32 }
 0x149   : > { %1520 = vmatpush1.bf16.msra.mxu1 %v6620_v34  ;;  %v4085_v34 = vshll.u32 %v7601_v45, 16  ;;  %v7673_v45 = vld [vmem:[%s7172_s30 + $0x1c] sm:$0xff]  }
 0x14a   : > { %1521 = vmatprep.subr.bf16.mxu1 %v6630_v10  ;;  %v6662_v10 = vld [vmem:[#allocation5 + $0x1e4] ss:$8 sps:$4 sm:$0xff]   ;;  %v1456_v47 = vrot.slane %v7673_v45, 2 }
 0x14b   : > { %v4087_v30 = vrot.slane %v4085_v34, 3  ;;  %v1642_v34 = vshll.u32 %v7643_v38, 16 }
 0x14c   : > { %5748 = vmatmul.mubr.msk.bf16.gmra.mrb[16].mxu0 %vm349_vm0, %v3687_v23  ;;  %5561 = vmatmul.mubr.msk.bf16.gmra.mrb[4].mxu1 %vm349_vm0, %v1226_v60  ;;  %v3902_v23 = vrot.slane %v7637_v41, 2  ;;  %v4079_v60 = vrot.slane %v4077_v33, 3  ;;  %v1457_v61 = vsel %vm1011_vm4, %v1454_v32, %v1456_v47  ;;  %v6694_v33 = vld [vmem:[#allocation5 + $0x544] ss:$8 sps:$4 sm:$0xff]   ;;  %v2278_v32 = vrot.slane %v7217_v48, 3 }
 0x14d   : > { %3993 = vmatprep.mubr.bf16.mxu0 %v6972_v0  ;;  %1352 = vmatprep.mubr.bf16.mxu1 %v6972_v0  ;;  %v4088_v21 = vor.u32 %v4087_v30, %v4084_v36  ;;  %v1641_v30 = vrot.slane %v1639_v39, 2 }
 0x14e   : > { %1522 = vmatpush1.bf16.msra.mxu1 %v6628_v19  ;;  %v3903_v29 = vsel %vm1011_vm4, %v3900_v12, %v3902_v23  ;;  %v3905_v9 = vsel %vm1011_vm4, %v3902_v23, %v3904_v54  ;;  %v6660_v19 = vld [vmem:[#allocation5 + $0x1e0] ss:$8 sps:$4 sm:$0xff]   ;;  %v4080_v43 = vor.u32 %v4079_v60, %v4076_v3  ;;  %v1460_v54 = vrot.slane %v7697_v14, 2 }
 0x14f   : > { %1523 = vmatprep.subr.bf16.mxu1 %v6637_v51  ;;  %v6669_v51 = vld [vmem:[#allocation5 + $0x1f4] ss:$8 sps:$4 sm:$0xff]   ;;  %v1636_v60 = vrot.slane %v1634_v49, 3 }
 0x152   : > { %1524 = vmatpush1.bf16.msra.mxu1 %v6635_v55  ;;  %v6667_v55 = vld [vmem:[#allocation5 + $0x1f0] ss:$8 sps:$4 sm:$0xff]  }
 0x153   : > { %1738 = vmatprep.subr.bf16.mxu1 %v6646_v17  ;;  %v6676_v17 = vld [vmem:[#allocation5 + $0x204] ss:$8 sps:$4 sm:$0xff]  }
 0x154   : > { %5763 = vmatmul.mubr.msk.bf16.vlgmr.msra.gmra.mrb[0].mxu0 %vm349_vm0, %v3897_v56  ;;  %5562 = vmatmul.mubr.msk.bf16.gmra.mrb[8].mxu1 %vm349_vm0, %v1235_v24  ;;  %v4089_v56 = vsel %vm1629_vm5, %v4080_v43, %v4088_v21  ;;  %v6664_v24 = vld [vmem:[#allocation5 + $0x500] ss:$8 sps:$4 sm:$0xff]   ;;  %v4121_v43 = vshll.u32 %v7653_v59, 16 }
 0x155   : > { %4003 = vmatprep.mubr.bf16.mxu0 %v6972_v0  ;;  %4182 = vmatpush1.bf16.msra.mxu0 %v6632_v57  ;;  %v4093_v57 = vrot.slane %v4091_v46, 2 }
 0x156   : > { %4183 = vmatprep.subr.bf16.mxu0 %v6641_v58  ;;  %1362 = vmatprep.mubr.bf16.mxu1 %v6972_v0  ;;  %v4096_v58 = vrot.slane %v4094_v50, 3  ;;  %v1648_v50 = vshrl.u32 %v7658_v44, 16 }
 0x158   : > { %v4097_v62 = vor.u32 %v4096_v58, %v4093_v57 }
 0x159   : > { %4184 = vmatpush1.bf16.msra.mxu0 %v6639_v63  ;;  %v4100_v63 = vshrl.u32 %v7623_v40, 16 }
 0x15a   : > { %4185 = vmatprep.subr.bf16.mxu0 %v6650_v7  ;;  %v4103_v7 = vshll.u32 %v7623_v40, 16  ;;  %v6685_v40 = vld [vmem:[#allocation5 + $0x534] ss:$8 sps:$4 sm:$0xff]  }
 0x15b   : > { %v4102_v12 = vrot.slane %v4100_v63, 2 }
 0x15c   : > { %5764 = vmatmul.mubr.msk.bf16.gmra.mrb[4].mxu0 %vm349_vm0, %v3899_v20  ;;  %5563 = vmatmul.mubr.msk.bf16.gmra.mrb[12].mxu1 %vm349_vm0, %v1244_v2  ;;  %v6679_v20 = vld [vmem:[#allocation5 + $0x524] ss:$8 sps:$4 sm:$0xff]   ;;  %v4098_v2 = vsel %vm1629_vm5, %v4088_v21, %v4097_v62 }
 0x15d   : > { %4013 = vmatprep.mubr.bf16.mxu0 %v6972_v0  ;;  %4186 = vmatpush1.bf16.msra.mxu0 %v6648_v6  ;;  %v1458_v6 = vrot.slane %v7685_v13, 2 }
 0x15e   : > { %4187 = vmatprep.subr.bf16.mxu0 %v6658_v11  ;;  %1372 = vmatprep.mubr.bf16.mxu1 %v6972_v0  ;;  %v2229_v11 = vld [vmem:[%s7172_s30 + $0x8] sm:$0x8] }
 0x15f   : > { %v1459_v27 = vsel %vm1011_vm4, %v1456_v47, %v1458_v6  ;;  %v1461_v36 = vsel %vm1011_vm4, %v1458_v6, %v1460_v54  ;;  %v1651_v47 = vshll.u32 %v7658_v44, 16  ;;  %v7756_v6 = vld [vmem:[%s7172_s30 + $0x20] sm:$0xf] }
 0x160   : > { %v6697_v54 = vld [vmem:[#allocation5 + $0x234] ss:$8 sps:$4 sm:$0xff]  }
 0x161   : > { %4188 = vmatpush1.bf16.msra.mxu0 %v6656_v37  ;;  %v4105_v37 = vrot.slane %v4103_v7, 3  ;;  %v4284_v7 = vld [vmem:[%s7172_s30 + $0x14] sm:$0xc] }
 0x162   : > { %4398 = vmatprep.subr.bf16.mxu0 %v6666_v1  ;;  %v6677_v1 = vld [vmem:[#allocation5 + $0x520] ss:$8 sps:$4 sm:$0xff]  }
 0x163   : > { %v4106_v28 = vor.u32 %v4105_v37, %v4102_v12  ;;  %v1657_v12 = vshrl.u32 %v7673_v45, 16  ;;  %v1660_v37 = vshll.u32 %v7673_v45, 16 }
 0x164   : > { %5765 = vmatmul.mubr.msk.bf16.gmra.mrb[8].mxu0 %vm349_vm0, %v3901_v15  ;;  %5564 = vmatmul.mubr.msk.bf16.gmra.mrb[16].mxu1 %vm349_vm0, %v1243_v25  ;;  %v6671_v25 = vld [vmem:[#allocation5 + $0x510] ss:$8 sps:$4 sm:$0xff]   ;;  %v6794_v15 = vld [vmem:[%s7172_s30 + $0xc] sm:$0xf] }
 0x165   : > { %4023 = vmatprep.mubr.bf16.mxu0 %v6972_v0  ;;  %1549 = vmatprep.mubr.bf16.mxu1 %v6972_v0  ;;  %v7700_v23 = vcombine.low %v2229_v11, %v6794_v15 }
 0x16c   : > { %5766 = vmatmul.mubr.msk.bf16.gmra.mrb[12].mxu0 %vm349_vm0, %v3903_v29  ;;  %5579 = vmatmul.mubr.msk.bf16.vlgmr.msra.gmra.mrb[0].mxu1 %vm349_vm0, %v1453_v22  ;;  %v4109_v29 = vshrl.u32 %v7637_v41, 16  ;;  %v4112_v22 = vshll.u32 %v7637_v41, 16  ;;  %v2277_v41 = vrot.slane %v7700_v23, 3 }
 0x16d   : > { %4033 = vmatprep.mubr.bf16.mxu0 %v6972_v0  ;;  %1739 = vmatpush1.bf16.msra.mxu1 %v6644_v53  ;;  %v6683_v53 = vld [vmem:[#allocation5 + $0x530] ss:$8 sps:$4 sm:$0xff]  }
 0x16e   : > { %1559 = vmatprep.mubr.bf16.mxu1 %v6972_v0  ;;  %1740 = vmatprep.subr.bf16.mxu1 %v6655_v18  ;;  %v1631_v18 = vshrl.u32 %v7640_v5, 16  ;;  %v7718_v5 = vsel %vm1858_vm6, %v2277_v41, %v2278_v32  ;;  %v7783_v41 = vld [vmem:[%s7172_s30 + $0x28] sm:$0xf] }
 0x170   : > { %v1633_v3 = vrot.slane %v1631_v18, 2 }
 0x171   : > { %1741 = vmatpush1.bf16.msra.mxu1 %v6653_v16  ;;  %v4107_v16 = vsel %vm1629_vm5, %v4097_v62, %v4106_v28  ;;  %v6682_v62 = vld [vmem:[#allocation5 + $0x214] ss:$8 sps:$4 sm:$0xff]  }
 0x172   : > { %1742 = vmatprep.subr.bf16.mxu1 %v6662_v10  ;;  %v4114_v10 = vrot.slane %v4112_v22, 3  ;;  %v1637_v21 = vor.u32 %v1636_v60, %v1633_v3  ;;  %v1662_v22 = vrot.slane %v1660_v37, 3  ;;  %v6705_v3 = vld [vmem:[#allocation5 + $0x244] ss:$8 sps:$4 sm:$0xff]  }
 0x174   : > { %5767 = vmatmul.mubr.msk.bf16.gmra.mrb[16].mxu0 %vm349_vm0, %v3905_v9  ;;  %5580 = vmatmul.mubr.msk.bf16.gmra.mrb[4].mxu1 %vm349_vm0, %v1455_v35  ;;  %v4111_v9 = vrot.slane %v4109_v29, 2  ;;  %v1644_v35 = vrot.slane %v1642_v34, 3  ;;  %v1659_v29 = vrot.slane %v1657_v12, 2 }
 0x175   : > { %4213 = vmatprep.mubr.bf16.mxu0 %v6972_v0  ;;  %1569 = vmatprep.mubr.bf16.mxu1 %v6972_v0 }
 0x176   : > { %1743 = vmatpush1.bf16.msra.mxu1 %v6660_v19  ;;  %v4115_v19 = vor.u32 %v4114_v10, %v4111_v9  ;;  %v1645_v46 = vor.u32 %v1644_v35, %v1641_v30  ;;  %v1669_v9 = vshll.u32 %v7685_v13, 16  ;;  %v6695_v10 = vld [vmem:[#allocation5 + $0x230] ss:$8 sps:$4 sm:$0xff]   ;;  %v6692_v30 = vld [vmem:[#allocation5 + $0x540] ss:$8 sps:$4 sm:$0xff]  }
 0x177   : > { %1744 = vmatprep.subr.bf16.mxu1 %v6669_v51  ;;  %v4118_v51 = vshrl.u32 %v7653_v59, 16  ;;  %v4123_v59 = vrot.slane %v4121_v43, 3  ;;  %v6701_v35 = vld [vmem:[#allocation5 + $0x554] ss:$8 sps:$4 sm:$0xff]  }
 0x178   : > { %v1646_v58 = vsel %vm1629_vm5, %v1637_v21, %v1645_v46  ;;  %v1671_v43 = vrot.slane %v1669_v9, 3  ;;  %v2456_v21 = vshrl.u32 %v7700_v23, 16 }
 0x17a   : > { %1745 = vmatpush1.bf16.msra.mxu1 %v6667_v55  ;;  %v2280_v55 = vrot.slane %v7224_v52, 3 }
 0x17b   : > { %1925 = vmatprep.subr.bf16.mxu1 %v6676_v17  ;;  %v4116_v17 = vsel %vm1629_vm5, %v4106_v28, %v4115_v19 }
 0x17c   : > { %5776 = vmatmul.mubr.msk.bf16.vlgmr.msra.gmra.mrb[0].mxu0 %vm349_vm0, %v4089_v56  ;;  %5581 = vmatmul.mubr.msk.bf16.gmra.mrb[8].mxu1 %vm349_vm0, %v1457_v61  ;;  %v4120_v56 = vrot.slane %v4118_v51, 2  ;;  %v7738_v57 = vsel %vm1858_vm6, %v2278_v32, %v2280_v55  ;;  %v1653_v61 = vrot.slane %v1651_v47, 3  ;;  %v1663_v32 = vor.u32 %v1662_v22, %v1659_v29 }
 0x17d   : > { %4223 = vmatprep.mubr.bf16.mxu0 %v6972_v0  ;;  %4399 = vmatpush1.bf16.msra.mxu0 %v6664_v24  ;;  %v6674_v24 = vld [vmem:[#allocation5 + $0x200] ss:$8 sps:$4 sm:$0xff]  }
 0x17e   : > { %4400 = vmatprep.subr.bf16.mxu0 %v6673_v26  ;;  %1579 = vmatprep.mubr.bf16.mxu1 %v6972_v0  ;;  %v1650_v26 = vrot.slane %v1648_v50, 2  ;;  %v4124_v63 = vor.u32 %v4123_v59, %v4120_v56  ;;  %v6699_v59 = vld [vmem:[#allocation5 + $0x550] ss:$8 sps:$4 sm:$0xff]  }
 0x180   : > { %v1654_v11 = vor.u32 %v1653_v61, %v1650_v26  ;;  %v6709_v26 = vld [vmem:[#allocation5 + $0x564] ss:$8 sps:$4 sm:$0xff]   ;;  %v2467_v61 = vshll.u32 %v7217_v48, 16 }
 0x181   : > { %4401 = vmatpush1.bf16.msra.mxu0 %v6671_v25  ;;  %v7750_v25 = vld [vmem:[%s7172_s30 + $0x18] sm:$0xf] }
 0x182   : > { %4402 = vmatprep.subr.bf16.mxu0 %v6679_v20  ;;  %v7753_v20 = vld [vmem:[%s7172_s30 + $0x1c] sm:$0xf]  ;;  %v7763_v15 = vcombine.low %v4284_v7, %v7750_v25  ;;  %v1655_v28 = vsel %vm1629_vm5, %v1645_v46, %v1654_v11  ;;  %v2459_v46 = vshll.u32 %v7700_v23, 16  ;;  %v2469_v29 = vrot.slane %v2467_v61, 4 }
 0x183   : > { %v2476_v61 = vshll.u32 %v7224_v52, 16 }
 0x184   : > { %5777 = vmatmul.mubr.msk.bf16.gmra.mrb[4].mxu0 %vm349_vm0, %v4098_v2  ;;  %5582 = vmatmul.mubr.msk.bf16.gmra.mrb[12].mxu1 %vm349_vm0, %v1459_v27  ;;  %v6680_v2 = vld [vmem:[#allocation5 + $0x210] ss:$8 sps:$4 sm:$0xff]   ;;  %v7767_v27 = vcombine.low %v7753_v20, %v7756_v6  ;;  %v4332_v18 = vrot.slane %v7763_v15, 2 }
 0x185   : > { %4233 = vmatprep.mubr.bf16.mxu0 %v6972_v0  ;;  %4403 = vmatpush1.bf16.msra.mxu0 %v6677_v1  ;;  %v6690_v1 = vld [vmem:[#allocation5 + $0x224] ss:$8 sps:$4 sm:$0xff]  }
 0x186   : > { %4404 = vmatprep.subr.bf16.mxu0 %v6685_v40  ;;  %1589 = vmatprep.mubr.bf16.mxu1 %v6972_v0  ;;  %v4125_v40 = vsel %vm1629_vm5, %v4115_v19, %v4124_v63  ;;  %v4333_v49 = vrot.slane %v7767_v27, 2  ;;  %v1664_v19 = vsel %vm1629_vm5, %v1654_v11, %v1663_v32  ;;  %v1678_v63 = vshll.u32 %v7697_v14, 16 }
 0x188   : > { %v4334_v60 = vsel %vm1011_vm4, %v4332_v18, %v4333_v49  ;;  %v6714_v18 = vld [vmem:[#allocation5 + $0x570] ss:$8 sps:$4 sm:$0xff]  }
 0x189   : > { %4405 = vmatpush1.bf16.msra.mxu0 %v6683_v53  ;;  %v6688_v53 = vld [vmem:[#allocation5 + $0x220] ss:$8 sps:$4 sm:$0xff]  }
 0x18a   : > { %4618 = vmatprep.subr.bf16.mxu0 %v6694_v33  ;;  %v7780_v33 = vld [vmem:[%s7172_s30 + $0x24] sm:$0xf] }
 0x18c   : > { %5778 = vmatmul.mubr.msk.bf16.gmra.mrb[8].mxu0 %vm349_vm0, %v4107_v16  ;;  %5583 = vmatmul.mubr.msk.bf16.gmra.mrb[16].mxu1 %vm349_vm0, %v1461_v36  ;;  %v1666_v16 = vshrl.u32 %v7685_v13, 16  ;;  %v7791_v36 = vcombine.low %v7780_v33, %v7783_v41 }
 0x18d   : > { %4243 = vmatprep.mubr.bf16.mxu0 %v6972_v0  ;;  %1770 = vmatprep.mubr.bf16.mxu1 %v6972_v0 }
 0x18e   : > { %v1668_v51 = vrot.slane %v1666_v16, 2  ;;  %v4335_v56 = vrot.slane %v7791_v36, 2 }
 0x190   : > { %v1672_v23 = vor.u32 %v1671_v43, %v1668_v51  ;;  %v4336_v7 = vsel %vm1011_vm4, %v4333_v49, %v4335_v56  ;;  %v7826_v49 = vld [vmem:[%s7172_s30 + $0x34] sm:$0xf] }
 0x192   : > { %v1673_v22 = vsel %vm1629_vm5, %v1663_v32, %v1672_v23 }
 0x194   : > { %5779 = vmatmul.mubr.msk.bf16.gmra.mrb[12].mxu0 %vm349_vm0, %v4116_v17  ;;  %5592 = vmatmul.mubr.msk.bf16.vlgmr.msra.gmra.mrb[0].mxu1 %vm349_vm0, %v1646_v58  ;;  %v2464_v17 = vshrl.u32 %v7217_v48, 16  ;;  %v7806_v58 = vld [vmem:[%s7172_s30 + $0x2c] sm:$0xf] }
 0x195   : > { %4253 = vmatprep.mubr.bf16.mxu0 %v6972_v0  ;;  %1926 = vmatpush1.bf16.msra.mxu1 %v6674_v24  ;;  %v7809_v24 = vld [vmem:[%s7172_s30 + $0x30] sm:$0xf] }
 0x196   : > { %1780 = vmatprep.mubr.bf16.mxu1 %v6972_v0  ;;  %1927 = vmatprep.subr.bf16.mxu1 %v6682_v62  ;;  %v1675_v62 = vshrl.u32 %v7697_v14, 16  ;;  %v7818_v11 = vcombine.low %v7806_v58, %v7809_v24  ;;  %v2466_v48 = vrot.slane %v2464_v17, 3  ;;  %v1680_v14 = vrot.slane %v1678_v63, 3 }
 0x197   : > { %v2478_v63 = vrot.slane %v2476_v61, 4  ;;  %v4528_v61 = vshrl.u32 %v7791_v36, 16 }
 0x199   : > { %1928 = vmatpush1.bf16.msra.mxu1 %v6680_v2  ;;  %v6707_v2 = vld [vmem:[#allocation5 + $0x560] ss:$8 sps:$4 sm:$0xff]  }
 0x19a   : > { %1929 = vmatprep.subr.bf16.mxu1 %v6690_v1  ;;  %v2458_v1 = vrot.slane %v2456_v21, 3 }
 0x19c   : > { %5780 = vmatmul.mubr.msk.bf16.gmra.mrb[16].mxu0 %vm349_vm0, %v4125_v40  ;;  %5593 = vmatmul.mubr.msk.bf16.gmra.mrb[4].mxu1 %vm349_vm0, %v1655_v28  ;;  %v2461_v40 = vrot.slane %v2459_v46, 4  ;;  %v6716_v28 = vld [vmem:[#allocation5 + $0x574] ss:$8 sps:$4 sm:$0xff]  }
 0x19d   : > { %4430 = vmatprep.mubr.bf16.mxu0 %v6972_v0  ;;  %1790 = vmatprep.mubr.bf16.mxu1 %v6972_v0 }
 0x19e   : > { %1930 = vmatpush1.bf16.msra.mxu1 %v6688_v53  ;;  %v1677_v53 = vrot.slane %v1675_v62, 2 }
 0x19f   : > { %1931 = vmatprep.subr.bf16.mxu1 %v6697_v54  ;;  %v4337_v54 = vrot.slane %v7818_v11, 2 }
 0x1a0   : > { %v1681_v32 = vor.u32 %v1680_v14, %v1677_v53  ;;  %v4522_v53 = vshll.u32 %v7767_v27, 16 }
 0x1a2   : > { %1932 = vmatpush1.bf16.msra.mxu1 %v6695_v10  ;;  %v7829_v10 = vld [vmem:[%s7172_s30 + $0x38] sm:$0xf]  ;;  %v1682_v21 = vsel %vm1629_vm5, %v1672_v23, %v1681_v32 }
 0x1a3   : > { %2126 = vmatprep.subr.bf16.mxu1 %v6705_v3  ;;  %v6722_v3 = vld [vmem:[#allocation5 + $0x584] ss:$8 sps:$4 sm:$0xff]   ;;  %v7836_v51 = vcombine.low %v7826_v49, %v7829_v10 }
 0x1a4   : > { %5795 = vmatmul.mubr.msk.bf16.vlgmr.msra.gmra.mrb[0].mxu0 %vm349_vm0, %v4334_v60  ;;  %5594 = vmatmul.mubr.msk.bf16.gmra.mrb[8].mxu1 %vm349_vm0, %v1664_v19  ;;  %v2462_v60 = vor.u32 %v2461_v40, %v2458_v1  ;;  %v4338_v19 = vsel %vm1011_vm4, %v4335_v56, %v4337_v54 }
 0x1a5   : > { %4440 = vmatprep.mubr.bf16.mxu0 %v6972_v0  ;;  %4619 = vmatpush1.bf16.msra.mxu0 %v6692_v30  ;;  %v2470_v30 = vor.u32 %v2469_v29, %v2466_v48  ;;  %v4339_v17 = vrot.slane %v7836_v51, 2  ;;  %v6713_v48 = vld [vmem:[#allocation5 + $0x254] ss:$8 sps:$4 sm:$0xff]   ;;  %v4514_v29 = vshll.u32 %v7763_v15, 16 }
 0x1a6   : > { %4620 = vmatprep.subr.bf16.mxu0 %v6701_v35  ;;  %1800 = vmatprep.mubr.bf16.mxu1 %v6972_v0  ;;  %v1841_v35 = vld [vmem:[%s7172_s30 + $0x4] sm:$0x8] }
 0x1a7   : > { %v7839_v43 = vsel %vm2037_vm7, %v2462_v60, %v2470_v30  ;;  %v7843_v46 = vcombine.low %v1841_v35, %v7633_v42  ;;  %v7855_v42 = vld [vmem:[%s7172_s30 + $0x3c] ss:$0 sps:$4 sm:$0x11]   ;;  %v4340_v23 = vsel %vm1011_vm4, %v4337_v54, %v4339_v17  ;;  %v1862_v54 = vrot.slane %v7658_v44, 3 }
 0x1a8   : > { %v4341_v40 = vrot.slane %v7855_v42, 2  ;;  %v4516_v60 = vrot.slane %v4514_v29, 3 }
 0x1a9   : > { %4621 = vmatpush1.bf16.msra.mxu0 %v6699_v59  ;;  %v1859_v56 = vrot.slane %v7843_v46, 3  ;;  %v1860_v59 = vrot.slane %v7643_v38, 3 }
 0x1aa   : > { %4622 = vmatprep.subr.bf16.mxu0 %v6709_v26  ;;  %v2473_v26 = vshrl.u32 %v7224_v52, 16  ;;  %v6785_v52 = vld [vmem:[#allocation5 + $0x624] ss:$8 sps:$4 sm:$0xff]  }
 0x1ac   : > { %5796 = vmatmul.mubr.msk.bf16.gmra.mrb[4].mxu0 %vm349_vm0, %v4336_v7  ;;  %5595 = vmatmul.mubr.msk.bf16.gmra.mrb[12].mxu1 %vm349_vm0, %v1673_v22  ;;  %v2475_v62 = vrot.slane %v2473_v26, 3  ;;  %v1861_v7 = vsel %vm1858_vm6, %v1859_v56, %v1860_v59  ;;  %v4519_v22 = vshrl.u32 %v7767_v27, 16  ;;  %v6725_v56 = vld [vmem:[#allocation5 + $0x274] ss:$8 sps:$4 sm:$0xff]  }
 0x1ad   : > { %4450 = vmatprep.mubr.bf16.mxu0 %v6972_v0  ;;  %4623 = vmatpush1.bf16.msra.mxu0 %v6707_v2  ;;  %v6703_v2 = vld [vmem:[#allocation5 + $0x240] ss:$8 sps:$4 sm:$0xff]  }
 0x1ae   : > { %4624 = vmatprep.subr.bf16.mxu0 %v6716_v28  ;;  %1810 = vmatprep.mubr.bf16.mxu1 %v6972_v0  ;;  %v7859_v1 = vor.u32 %v2478_v63, %v2475_v62  ;;  %v4511_v28 = vshrl.u32 %v7763_v15, 16  ;;  %v6719_v15 = vld [vmem:[#allocation5 + $0x264] ss:$8 sps:$4 sm:$0xff]   ;;  %v4521_v35 = vrot.slane %v4519_v22, 2  ;;  %v6723_v62 = vld [vmem:[#allocation5 + $0x270] ss:$8 sps:$4 sm:$0xff]  }
 0x1af   : > { %v6732_v63 = vld [vmem:[#allocation5 + $0x284] ss:$8 sps:$4 sm:$0xff]  }
 0x1b0   : > { %v7870_v14 = vsel %vm2037_vm7, %v2470_v30, %v7859_v1  ;;  %v4513_v32 = vrot.slane %v4511_v28, 2  ;;  %v4524_v30 = vrot.slane %v4522_v53, 3  ;;  %v6729_v28 = vld [vmem:[#allocation5 + $0x594] ss:$8 sps:$4 sm:$0xff]  }
 0x1b1   : > { %4625 = vmatpush1.bf16.msra.mxu0 %v6714_v18  ;;  %v6711_v18 = vld [vmem:[#allocation5 + $0x250] ss:$8 sps:$4 sm:$0xff]  }
 0x1b2   : > { %4804 = vmatprep.subr.bf16.mxu0 %v6722_v3  ;;  %v4342_v3 = vsel %vm1011_vm4, %v4339_v17, %v4341_v40  ;;  %v4517_v17 = vor.u32 %v4516_v60, %v4513_v32  ;;  %v4525_v26 = vor.u32 %v4524_v30, %v4521_v35  ;;  %v6727_v32 = vld [vmem:[#allocation5 + $0x590] ss:$8 sps:$4 sm:$0xff]   ;;  %v6735_v60 = vld [vmem:[#allocation5 + $0x5a4] ss:$8 sps:$4 sm:$0xff]  }
 0x1b4   : > { %5797 = vmatmul.mubr.msk.bf16.gmra.mrb[8].mxu0 %vm349_vm0, %v4338_v19  ;;  %5596 = vmatmul.mubr.msk.bf16.gmra.mrb[16].mxu1 %vm349_vm0, %v1682_v21  ;;  %v1863_v19 = vsel %vm1858_vm6, %v1860_v59, %v1862_v54  ;;  %v6717_v21 = vld [vmem:[#allocation5 + $0x260] ss:$8 sps:$4 sm:$0xff]   ;;  %v1864_v59 = vrot.slane %v7673_v45, 3  ;;  %v6757_v45 = vld [vmem:[#allocation5 + $0x2c4] ss:$8 sps:$4 sm:$0xff]  }
 0x1b5   : > { %4460 = vmatprep.mubr.bf16.mxu0 %v6972_v0  ;;  %1957 = vmatprep.mubr.bf16.mxu1 %v6972_v0 }
 0x1b6   : > { %v1865_v29 = vsel %vm1858_vm6, %v1862_v54, %v1864_v59  ;;  %v1866_v54 = vrot.slane %v7685_v13, 3 }
 0x1bc   : > { %5798 = vmatmul.mubr.msk.bf16.gmra.mrb[12].mxu0 %vm349_vm0, %v4340_v23  ;;  %5607 = vmatmul.mubr.msk.bf16.vlgmr.msra.gmra.mrb[0].mxu1 %vm349_vm0, %v1861_v7  ;;  %v4531_v23 = vshll.u32 %v7791_v36, 16  ;;  %v4526_v7 = vsel %vm1629_vm5, %v4517_v17, %v4525_v26  ;;  %v6741_v17 = vld [vmem:[#allocation5 + $0x5b4] ss:$8 sps:$4 sm:$0xff]  }
 0x1bd   : > { %4470 = vmatprep.mubr.bf16.mxu0 %v6972_v0  ;;  %2127 = vmatpush1.bf16.msra.mxu1 %v6703_v2  ;;  %v4530_v2 = vrot.slane %v4528_v61, 2 }
 0x1be   : > { %1967 = vmatprep.mubr.bf16.mxu1 %v6972_v0  ;;  %2128 = vmatprep.subr.bf16.mxu1 %v6713_v48  ;;  %v4533_v40 = vrot.slane %v4531_v23, 3  ;;  %v6720_v48 = vld [vmem:[#allocation5 + $0x580] ss:$8 sps:$4 sm:$0xff]  }
 0x1c1   : > { %2129 = vmatpush1.bf16.msra.mxu1 %v6711_v18  ;;  %v4534_v18 = vor.u32 %v4533_v40, %v4530_v2  ;;  %v6739_v2 = vld [vmem:[#allocation5 + $0x5b0] ss:$8 sps:$4 sm:$0xff]  }
 0x1c2   : > { %2130 = vmatprep.subr.bf16.mxu1 %v6719_v15  ;;  %v4540_v15 = vshll.u32 %v7818_v11, 16 }
 0x1c3   : > { %v4535_v35 = vsel %vm1629_vm5, %v4525_v26, %v4534_v18  ;;  %v4546_v26 = vshrl.u32 %v7836_v51, 16 }
 0x1c4   : > { %5799 = vmatmul.mubr.msk.bf16.gmra.mrb[16].mxu0 %vm349_vm0, %v4342_v3  ;;  %5608 = vmatmul.mubr.msk.bf16.gmra.mrb[4].mxu1 %vm349_vm0, %v1863_v19  ;;  %v4537_v3 = vshrl.u32 %v7818_v11, 16  ;;  %v4542_v19 = vrot.slane %v4540_v15, 3 }
 0x1c5   : > { %4650 = vmatprep.mubr.bf16.mxu0 %v6972_v0  ;;  %1977 = vmatprep.mubr.bf16.mxu1 %v6972_v0 }
 0x1c6   : > { %2131 = vmatpush1.bf16.msra.mxu1 %v6717_v21  ;;  %v4539_v30 = vrot.slane %v4537_v3, 2  ;;  %v6733_v21 = vld [vmem:[#allocation5 + $0x5a0] ss:$8 sps:$4 sm:$0xff]  }
 0x1c7   : > { %2132 = vmatprep.subr.bf16.mxu1 %v6725_v56  ;;  %v7907_v56 = vld [vmem:[%s7172_s30 + $0x2c] ss:$0 sps:$4 sm:$0x33]  }
 0x1c8   : > { %v1868_v40 = vrot.slane %v7907_v56, 3  ;;  %v2063_v13 = vshrl.u32 %v7907_v56, 16 }
 0x1ca   : > { %2133 = vmatpush1.bf16.msra.mxu1 %v6723_v62  ;;  %v1867_v62 = vsel %vm1858_vm6, %v1864_v59, %v1866_v54  ;;  %v2039_v59 = vshrl.u32 %v7843_v46, 16 }
 0x1cb   : > { %2343 = vmatprep.subr.bf16.mxu1 %v6732_v63  ;;  %v4543_v63 = vor.u32 %v4542_v19, %v4539_v30 }
 0x1cc   : > { %5808 = vmatmul.mubr.msk.bf16.vlgmr.msra.gmra.mrb[0].mxu0 %vm349_vm0, %v4526_v7  ;;  %5609 = vmatmul.mubr.msk.bf16.gmra.mrb[8].mxu1 %vm349_vm0, %v1865_v29  ;;  %v4549_v7 = vshll.u32 %v7836_v51, 16  ;;  %v2041_v30 = vrot.slane %v2039_v59, 3  ;;  %v2050_v59 = vrot.slane %v1648_v50, 3 }
 0x1cd   : > { %4660 = vmatprep.mubr.bf16.mxu0 %v6972_v0  ;;  %4805 = vmatpush1.bf16.msra.mxu0 %v6720_v48  ;;  %v6748_v48 = vld [vmem:[#allocation5 + $0x5c4] ss:$8 sps:$4 sm:$0xff]   ;;  %v4544_v29 = vsel %vm1629_vm5, %v4534_v18, %v4543_v63 }
 0x1ce   : > { %4806 = vmatprep.subr.bf16.mxu0 %v6729_v28  ;;  %1987 = vmatprep.mubr.bf16.mxu1 %v6972_v0  ;;  %v2042_v28 = vshll.u32 %v7843_v46, 16  ;;  %v2047_v46 = vrot.slane %v1642_v34, 4 }
 0x1d0   : > { %v2044_v19 = vrot.slane %v2042_v28, 4  ;;  %v6738_v28 = vld [vmem:[#allocation5 + $0x294] ss:$8 sps:$4 sm:$0xff]  }
 0x1d1   : > { %4807 = vmatpush1.bf16.msra.mxu0 %v6727_v32  ;;  %v4548_v32 = vrot.slane %v4546_v26, 2 }
 0x1d2   : > { %4808 = vmatprep.subr.bf16.mxu0 %v6735_v60  ;;  %v4551_v60 = vrot.slane %v4549_v7, 3 }
 0x1d4   : > { %5809 = vmatmul.mubr.msk.bf16.gmra.mrb[4].mxu0 %vm349_vm0, %v4535_v35  ;;  %5610 = vmatmul.mubr.msk.bf16.gmra.mrb[12].mxu1 %vm349_vm0, %v1867_v62  ;;  %v1869_v35 = vsel %vm1858_vm6, %v1866_v54, %v1868_v40  ;;  %v4552_v18 = vor.u32 %v4551_v60, %v4548_v32  ;;  %v4558_v62 = vshll.u32 %v7855_v42, 16  ;;  %v2045_v54 = vor.u32 %v2044_v19, %v2041_v30  ;;  %v6736_v60 = vld [vmem:[#allocation5 + $0x290] ss:$8 sps:$4 sm:$0xff]  }
 0x1d5   : > { %4670 = vmatprep.mubr.bf16.mxu0 %v6972_v0  ;;  %4809 = vmatpush1.bf16.msra.mxu0 %v6733_v21  ;;  %v2046_v21 = vrot.slane %v1639_v39, 3  ;;  %v2054_v30 = vrot.slane %v1657_v12, 3  ;;  %v2055_v19 = vrot.slane %v1660_v37, 4  ;;  %v6749_v12 = vld [vmem:[#allocation5 + $0x2b0] ss:$8 sps:$4 sm:$0xff]  }
 0x1d6   : > { %4810 = vmatprep.subr.bf16.mxu0 %v6741_v17  ;;  %1997 = vmatprep.mubr.bf16.mxu1 %v6972_v0  ;;  %v4555_v17 = vshrl.u32 %v7855_v42, 16  ;;  %v4553_v39 = vsel %vm1629_vm5, %v4543_v63, %v4552_v18  ;;  %v4560_v34 = vrot.slane %v4558_v62, 3  ;;  %v2051_v42 = vrot.slane %v1651_v47, 4  ;;  %v4721_v63 = vld [vmem:[%s7172_s30 + $0x14] sm:$0x8] }
 0x1d7   : > { %v7948_v44 = vcombine.low %v4721_v63, %v7750_v25  ;;  %v2056_v62 = vor.u32 %v2055_v19, %v2054_v30 }
 0x1d8   : > { %v4557_v38 = vrot.slane %v4555_v17, 2  ;;  %v2052_v32 = vor.u32 %v2051_v42, %v2050_v59  ;;  %v4739_v17 = vrot.slane %v7767_v27, 3  ;;  %v6760_v59 = vld [vmem:[#allocation5 + $0x5e4] ss:$8 sps:$4 sm:$0xff]  }
 0x1d9   : > { %4811 = vmatpush1.bf16.msra.mxu0 %v6739_v2  ;;  %v2048_v2 = vor.u32 %v2047_v46, %v2046_v21  ;;  %v6743_v21 = vld [vmem:[#allocation5 + $0x2a0] ss:$8 sps:$4 sm:$0xff]   ;;  %v6751_v46 = vld [vmem:[#allocation5 + $0x2b4] ss:$8 sps:$4 sm:$0xff]  }
 0x1da   : > { %5004 = vmatprep.subr.bf16.mxu0 %v6748_v48  ;;  %v6730_v48 = vld [vmem:[#allocation5 + $0x280] ss:$8 sps:$4 sm:$0xff]  }
 0x1db   : > { %v2049_v40 = vsel %vm2037_vm7, %v2045_v54, %v2048_v2  ;;  %v2053_v47 = vsel %vm2037_vm7, %v2048_v2, %v2052_v32  ;;  %v6746_v54 = vld [vmem:[#allocation5 + $0x5c0] ss:$8 sps:$4 sm:$0xff]   ;;  %v6754_v2 = vld [vmem:[#allocation5 + $0x5d4] ss:$8 sps:$4 sm:$0xff]  }
 0x1dc   : > { %5810 = vmatmul.mubr.msk.bf16.gmra.mrb[8].mxu0 %vm349_vm0, %v4544_v29  ;;  %5611 = vmatmul.mubr.msk.bf16.gmra.mrb[16].mxu1 %vm349_vm0, %v1869_v35  ;;  %v4561_v29 = vor.u32 %v4560_v34, %v4557_v38  ;;  %v6745_v35 = vld [vmem:[#allocation5 + $0x2a4] ss:$8 sps:$4 sm:$0xff]   ;;  %v2058_v38 = vrot.slane %v1666_v16, 3  ;;  %v2059_v34 = vrot.slane %v1669_v9, 4  ;;  %v2066_v9 = vshll.u32 %v7907_v56, 16 }
 0x1dd   : > { %4680 = vmatprep.mubr.bf16.mxu0 %v6972_v0  ;;  %2158 = vmatprep.mubr.bf16.mxu1 %v6972_v0  ;;  %v6775_v56 = vld [vmem:[#allocation5 + $0x604] ss:$8 sps:$4 sm:$0xff]  }
 0x1de   : > { %v4562_v50 = vsel %vm1629_vm5, %v4552_v18, %v4561_v29  ;;  %v4738_v18 = vrot.slane %v7948_v44, 3  ;;  %v2060_v16 = vor.u32 %v2059_v34, %v2058_v38  ;;  %v6767_v29 = vld [vmem:[#allocation5 + $0x5f4] ss:$8 sps:$4 sm:$0xff]  }
 0x1e0   : > { %v4740_v37 = vsel %vm1858_vm6, %v4738_v18, %v4739_v17  ;;  %v2061_v63 = vsel %vm2037_vm7, %v2056_v62, %v2060_v16 }
 0x1e4   : > { %5811 = vmatmul.mubr.msk.bf16.gmra.mrb[12].mxu0 %vm349_vm0, %v4553_v39  ;;  %5620 = vmatmul.mubr.msk.bf16.vlgmr.msra.gmra.mrb[0].mxu1 %vm349_vm0, %v2049_v40  ;;  %v2057_v39 = vsel %vm2037_vm7, %v2052_v32, %v2056_v62  ;;  %v4741_v40 = vrot.slane %v7791_v36, 3  ;;  %v2065_v32 = vrot.slane %v2063_v13, 3  ;;  %v6778_v13 = vld [vmem:[#allocation5 + $0x2f4] ss:$8 sps:$4 sm:$0xff]   ;;  %v6780_v36 = vld [vmem:[#allocation5 + $0x610] ss:$8 sps:$4 sm:$0xff]  }
 0x1e5   : > { %4690 = vmatprep.mubr.bf16.mxu0 %v6972_v0  ;;  %2344 = vmatpush1.bf16.msra.mxu1 %v6730_v48  ;;  %v6752_v48 = vld [vmem:[#allocation5 + $0x5d0] ss:$8 sps:$4 sm:$0xff]  }
 0x1e6   : > { %2168 = vmatprep.mubr.bf16.mxu1 %v6972_v0  ;;  %2345 = vmatprep.subr.bf16.mxu1 %v6738_v28  ;;  %v4742_v42 = vsel %vm1858_vm6, %v4739_v17, %v4741_v40  ;;  %v6758_v28 = vld [vmem:[#allocation5 + $0x5e0] ss:$8 sps:$4 sm:$0xff]  }
 0x1e7   : > { %v6755_v17 = vld [vmem:[#allocation5 + $0x2c0] ss:$8 sps:$4 sm:$0xff]  }
 0x1e9   : > { %2346 = vmatpush1.bf16.msra.mxu1 %v6736_v60  ;;  %v2068_v60 = vrot.slane %v2066_v9, 4 }
 0x1ea   : > { %2347 = vmatprep.subr.bf16.mxu1 %v6745_v35  ;;  %v4743_v35 = vrot.slane %v7818_v11, 3 }
 0x1ec   : > { %5812 = vmatmul.mubr.msk.bf16.gmra.mrb[16].mxu0 %vm349_vm0, %v4562_v50  ;;  %5621 = vmatmul.mubr.msk.bf16.gmra.mrb[4].mxu1 %vm349_vm0, %v2053_v47  ;;  %v6765_v50 = vld [vmem:[#allocation5 + $0x5f0] ss:$8 sps:$4 sm:$0xff]   ;;  %v2069_v47 = vor.u32 %v2068_v60, %v2065_v32  ;;  %v4744_v30 = vsel %vm1858_vm6, %v4741_v40, %v4743_v35  ;;  %v4924_v40 = vrot.slane %v4519_v22, 3  ;;  %v6782_v32 = vld [vmem:[#allocation5 + $0x614] ss:$8 sps:$4 sm:$0xff]  }
 0x1ed   : > { %4836 = vmatprep.mubr.bf16.mxu0 %v6972_v0  ;;  %2178 = vmatprep.mubr.bf16.mxu1 %v6972_v0  ;;  %v6776_v22 = vld [vmem:[#allocation5 + $0x2f0] ss:$8 sps:$4 sm:$0xff]   ;;  %v6797_v60 = vld [vmem:[%s7172_s30 + $0x28] sm:$0xf] }
 0x1ee   : > { %2348 = vmatpush1.bf16.msra.mxu1 %v6743_v21  ;;  %v2070_v19 = vsel %vm2037_vm7, %v2060_v16, %v2069_v47  ;;  %v4745_v21 = vrot.slane %v7836_v51, 3  ;;  %v6769_v16 = vld [vmem:[#allocation5 + $0x2e0] ss:$8 sps:$4 sm:$0xff]   ;;  %v4932_v47 = vrot.slane %v4537_v3, 3 }
 0x1ef   : > { %2349 = vmatprep.subr.bf16.mxu1 %v6751_v46  ;;  %v7989_v46 = vld [vmem:[%s7172_s30 + $0x3c] ss:$0 sps:$4 sm:$0x33]  }
 0x1f0   : > { %v4746_v18 = vsel %vm1858_vm6, %v4743_v35, %v4745_v21  ;;  %v4747_v62 = vrot.slane %v7989_v46, 3  ;;  %v6798_v35 = vld [vmem:[%s7172_s30 + $0x2c] sm:$0xf] }
 0x1f2   : > { %2350 = vmatpush1.bf16.msra.mxu1 %v6749_v12  ;;  %v6764_v12 = vld [vmem:[#allocation5 + $0x2d4] ss:$8 sps:$4 sm:$0xff]  }
 0x1f3   : > { %2563 = vmatprep.subr.bf16.mxu1 %v6757_v45  ;;  %v4917_v45 = vshrl.u32 %v7948_v44, 16 }
 0x1f4   : > { %5823 = vmatmul.mubr.msk.bf16.vlgmr.msra.gmra.mrb[0].mxu0 %vm349_vm0, %v4740_v37  ;;  %5622 = vmatmul.mubr.msk.bf16.gmra.mrb[8].mxu1 %vm349_vm0, %v2057_v39  ;;  %v4920_v37 = vshll.u32 %v7948_v44, 16  ;;  %v6771_v39 = vld [vmem:[#allocation5 + $0x2e4] ss:$8 sps:$4 sm:$0xff]   ;;  %v6795_v44 = vld [vmem:[%s7172_s30 + $0x20] sm:$0xf] }
 0x1f5   : > { %4846 = vmatprep.mubr.bf16.mxu0 %v6972_v0  ;;  %5005 = vmatpush1.bf16.msra.mxu0 %v6746_v54  ;;  %v6762_v54 = vld [vmem:[#allocation5 + $0x2d0] ss:$8 sps:$4 sm:$0xff]   ;;  %v4919_v38 = vrot.slane %v4917_v45, 3  ;;  %v4937_v45 = vrot.slane %v4549_v7, 4 }
 0x1f6   : > { %5006 = vmatprep.subr.bf16.mxu0 %v6754_v2  ;;  %2188 = vmatprep.mubr.bf16.mxu1 %v6972_v0  ;;  %v4748_v2 = vsel %vm1858_vm6, %v4745_v21, %v4747_v62  ;;  %v4922_v34 = vrot.slane %v4920_v37, 4  ;;  %v6788_v21 = vld [vmem:[#allocation5 + $0x634] ss:$8 sps:$4 sm:$0xff]  }
 0x1f8   : > { %v4923_v9 = vor.u32 %v4922_v34, %v4919_v38  ;;  %v6800_v34 = vld [vmem:[#allocation5 + $0x300] ss:$8 sps:$4 sm:$0xff]  }
 0x1f9   : > { %5007 = vmatpush1.bf16.msra.mxu0 %v6752_v48  ;;  %v4925_v48 = vrot.slane %v4522_v53, 4 }
 0x1fa   : > { %5008 = vmatprep.subr.bf16.mxu0 %v6760_v59  ;;  %v6796_v59 = vld [vmem:[%s7172_s30 + $0x24] sm:$0xf] }
 0x1fc   : > { %5824 = vmatmul.mubr.msk.bf16.gmra.mrb[4].mxu0 %vm349_vm0, %v4742_v42  ;;  %5623 = vmatmul.mubr.msk.bf16.gmra.mrb[12].mxu1 %vm349_vm0, %v2061_v63  ;;  %v4926_v42 = vor.u32 %v4925_v48, %v4924_v40  ;;  %v6773_v63 = vld [vmem:[#allocation5 + $0x600] ss:$8 sps:$4 sm:$0xff]   ;;  %v6801_v48 = vld [vmem:[#allocation5 + $0x314] ss:$8 sps:$4 sm:$0xff]  }
 0x1fd   : > { %4856 = vmatprep.mubr.bf16.mxu0 %v6972_v0  ;;  %5009 = vmatpush1.bf16.msra.mxu0 %v6758_v28  ;;  %v4928_v28 = vrot.slane %v4528_v61, 3 }
 0x1fe   : > { %5010 = vmatprep.subr.bf16.mxu0 %v6767_v29  ;;  %2198 = vmatprep.mubr.bf16.mxu1 %v6972_v0  ;;  %v4927_v53 = vsel %vm2037_vm7, %v4923_v9, %v4926_v42  ;;  %v4929_v29 = vrot.slane %v4531_v23, 4  ;;  %v6803_v9 = vld [vmem:[#allocation5 + $0x324] ss:$8 sps:$4 sm:$0xff]  }
 0x200   : > { %v4930_v61 = vor.u32 %v4929_v29, %v4928_v28 }
 0x201   : > { %5011 = vmatpush1.bf16.msra.mxu0 %v6765_v50  ;;  %v8025_v50 = vcombine.low %v6797_v60, %v6798_v35 }
 0x202   : > { %5179 = vmatprep.subr.bf16.mxu0 %v6775_v56  ;;  %v6799_v56 = vld [vmem:[#allocation5 + $0x304] ss:$8 sps:$4 sm:$0xff]   ;;  %v4931_v23 = vsel %vm2037_vm7, %v4926_v42, %v4930_v61 }
 0x203   : > { %v2491_v42 = vshrl.u32 %v8025_v50, 16 }
 0x204   : > { %5825 = vmatmul.mubr.msk.bf16.gmra.mrb[8].mxu0 %vm349_vm0, %v4744_v30  ;;  %5624 = vmatmul.mubr.msk.bf16.gmra.mrb[16].mxu1 %vm349_vm0, %v2070_v19  ;;  %v4933_v30 = vrot.slane %v4540_v15, 4  ;;  %v6783_v19 = vld [vmem:[#allocation5 + $0x620] ss:$8 sps:$4 sm:$0xff]   ;;  %v4936_v15 = vrot.slane %v4546_v26, 3 }
 0x205   : > { %4866 = vmatprep.mubr.bf16.mxu0 %v6972_v0  ;;  %2375 = vmatprep.mubr.bf16.mxu1 %v6972_v0  ;;  %v2493_v29 = vrot.slane %v2491_v42, 3 }
 0x206   : > { %v4934_v62 = vor.u32 %v4933_v30, %v4932_v47  ;;  %v5282_v30 = vld [vmem:[#allocation7] sm:$0x3] }
 0x208   : > { %v4935_v3 = vsel %vm2037_vm7, %v4930_v61, %v4934_v62 }
 0x20c   : > { %5826 = vmatmul.mubr.msk.bf16.gmra.mrb[12].mxu0 %vm349_vm0, %v4746_v18  ;;  %5639 = vmatmul.mubr.msk.bf16.vlgmr.msra.gmra.mrb[0].mxu1 %vm349_vm0, %v7718_v5  ;;  %v8007_v5 = vcombine.low %v6795_v44, %v6796_v59  ;;  %v6802_v59 = vld [vmem:[#allocation5 + $0x310] ss:$8 sps:$4 sm:$0xff]  }
 0x20d   : > { %4876 = vmatprep.mubr.bf16.mxu0 %v6972_v0  ;;  %2564 = vmatpush1.bf16.msra.mxu1 %v6755_v17  ;;  %v8039_v17 = vld [vmem:[%s7172_s30 + $0x30] ss:$0 sps:$4 sm:$0x33]  }
 0x20e   : > { %2385 = vmatprep.mubr.bf16.mxu1 %v6972_v0  ;;  %2565 = vmatprep.subr.bf16.mxu1 %v6764_v12  ;;  %v2282_v27 = vrot.slane %v8007_v5, 3  ;;  %v6786_v12 = vld [vmem:[#allocation5 + $0x630] ss:$8 sps:$4 sm:$0xff]   ;;  %v2286_v11 = vrot.slane %v8039_v17, 3  ;;  %v2485_v40 = vshll.u32 %v8007_v5, 16 }
 0x211   : > { %2566 = vmatpush1.bf16.msra.mxu1 %v6762_v54  ;;  %v4938_v54 = vor.u32 %v4937_v45, %v4936_v15 }
 0x212   : > { %2567 = vmatprep.subr.bf16.mxu1 %v6771_v39  ;;  %v4944_v39 = vshll.u32 %v7989_v46, 16 }
 0x213   : > { %v4939_v26 = vsel %vm2037_vm7, %v4934_v62, %v4938_v54 }
 0x214   : > { %5827 = vmatmul.mubr.msk.bf16.gmra.mrb[16].mxu0 %vm349_vm0, %v4748_v2  ;;  %5640 = vmatmul.mubr.msk.bf16.gmra.mrb[4].mxu1 %vm349_vm0, %v7738_v57  ;;  %v2283_v57 = vsel %vm1858_vm6, %v2280_v55, %v2282_v27  ;;  %v2284_v55 = vrot.slane %v8025_v50, 3  ;;  %v4941_v2 = vshrl.u32 %v7989_v46, 16  ;;  %v4946_v7 = vrot.slane %v4944_v39, 4 }
 0x215   : > { %5036 = vmatprep.mubr.bf16.mxu0 %v6972_v0  ;;  %2395 = vmatprep.mubr.bf16.mxu1 %v6972_v0  ;;  %v2482_v46 = vshrl.u32 %v8007_v5, 16  ;;  %v6804_v5 = vld [vmem:[#allocation5 + $0x320] ss:$8 sps:$4 sm:$0xff]  }
 0x216   : > { %2568 = vmatpush1.bf16.msra.mxu1 %v6769_v16  ;;  %v2285_v18 = vsel %vm1858_vm6, %v2282_v27, %v2284_v55  ;;  %v2287_v37 = vsel %vm1858_vm6, %v2284_v55, %v2286_v11  ;;  %v4943_v51 = vrot.slane %v4941_v2, 3  ;;  %v2494_v27 = vshll.u32 %v8025_v50, 16 }
 0x217   : > { %2569 = vmatprep.subr.bf16.mxu1 %v6778_v13  ;;  %v2484_v16 = vrot.slane %v2482_v46, 3  ;;  %v2487_v13 = vrot.slane %v2485_v40, 4 }
 0x218   : > { %v4947_v38 = vor.u32 %v4946_v7, %v4943_v51 }
 0x21a   : > { %2570 = vmatpush1.bf16.msra.mxu1 %v6776_v22  ;;  %v4948_v44 = vsel %vm2037_vm7, %v4938_v54, %v4947_v38  ;;  %v5841_v22 = vcombine.low %v7750_v25, %v7753_v20  ;;  %v2500_v25 = vshrl.u32 %v8039_v17, 16  ;;  %v2503_v20 = vshll.u32 %v8039_v17, 16 }
 0x21b   : > { %5862 = vmatprep.subr.bf16.mxu1 %v6799_v56  ;;  %v5843_v56 = vcombine.low %v7783_v41, %v7806_v58 }
 0x21c   : > { %5836 = vmatmul.mubr.msk.bf16.vlgmr.msra.gmra.mrb[0].mxu0 %vm349_vm0, %v4927_v53  ;;  %5641 = vmatmul.mubr.msk.bf16.gmra.mrb[8].mxu1 %vm349_vm0, %v2283_v57  ;;  %v6805_v53 = vld [vmem:[#allocation5 + $0x334] ss:$8 sps:$4 sm:$0xff]   ;;  %v2502_v60 = vrot.slane %v2500_v25, 3  ;;  %v2505_v35 = vrot.slane %v2503_v20, 4 }
 0x21d   : > { %5046 = vmatprep.mubr.bf16.mxu0 %v6972_v0  ;;  %5180 = vmatpush1.bf16.msra.mxu0 %v6773_v63  ;;  %v2496_v63 = vrot.slane %v2494_v27, 4 }
 0x21e   : > { %5181 = vmatprep.subr.bf16.mxu0 %v6782_v32  ;;  %2405 = vmatprep.mubr.bf16.mxu1 %v6972_v0  ;;  %v2506_v50 = vor.u32 %v2505_v35, %v2502_v60 }
 0x21f   : > { %v2497_v32 = vor.u32 %v2496_v63, %v2493_v29 }
 0x221   : > { %5182 = vmatpush1.bf16.msra.mxu0 %v6780_v36  ;;  %v2507_v61 = vsel %vm2037_vm7, %v2497_v32, %v2506_v50 }
 0x222   : > { %5183 = vmatprep.subr.bf16.mxu0 %v6785_v52 }
 0x224   : > { %5837 = vmatmul.mubr.msk.bf16.gmra.mrb[4].mxu0 %vm349_vm0, %v4931_v23  ;;  %5642 = vmatmul.mubr.msk.bf16.gmra.mrb[12].mxu1 %vm349_vm0, %v2285_v18 }
 0x225   : > { %5056 = vmatprep.mubr.bf16.mxu0 %v6972_v0  ;;  %5184 = vmatpush1.bf16.msra.mxu0 %v6783_v19 }
 0x226   : > { %5185 = vmatprep.subr.bf16.mxu0 %v6788_v21  ;;  %2415 = vmatprep.mubr.bf16.mxu1 %v6972_v0 }
 0x229   : > { %5186 = vmatpush1.bf16.msra.mxu0 %v6786_v12 }
 0x22c   : > { %5838 = vmatmul.mubr.msk.bf16.gmra.mrb[8].mxu0 %vm349_vm0, %v4935_v3  ;;  %5643 = vmatmul.mubr.msk.bf16.gmra.mrb[16].mxu1 %vm349_vm0, %v2287_v37 }
 0x22d   : > { %5066 = vmatprep.mubr.bf16.mxu0 %v6972_v0  ;;  %2595 = vmatprep.mubr.bf16.mxu1 %v6972_v0 }
 0x234   : > { %5839 = vmatmul.mubr.msk.bf16.gmra.mrb[12].mxu0 %vm349_vm0, %v4939_v26  ;;  %5652 = vmatmul.mubr.msk.bf16.vlgmr.msra.gmra.mrb[0].mxu1 %vm349_vm0, %v7839_v43  ;;  %v2488_v43 = vor.u32 %v2487_v13, %v2484_v16 }
 0x235   : > { %5076 = vmatprep.mubr.bf16.mxu0 %v6972_v0  ;;  %5866 = vmatpush1.bf16.msra.mxu1 %v6800_v34 }
 0x236   : > { %2605 = vmatprep.mubr.bf16.mxu1 %v6972_v0  ;;  %5863 = vmatprep.subr.bf16.mxu1 %v6801_v48  ;;  %v2489_v28 = vsel %vm2037_vm7, %v7859_v1, %v2488_v43  ;;  %v5842_v1 = vcombine.low %v7756_v6, %v7780_v33  ;;  %v2498_v57 = vsel %vm2037_vm7, %v2488_v43, %v2497_v32  ;;  %v5107_v33 = vld [vmem:[%s7172_s30 + $0x3c] sm:$0x7] }
 0x237   : > { %v5844_v6 = vcombine.low %v7809_v24, %v7826_v49  ;;  %v5845_v41 = vcombine.low %v7829_v10, %v5107_v33  ;;  %v5284_v49 = vlaneseq }
 0x239   : > { %5867 = vmatpush1.bf16.msra.mxu1 %v6802_v59  ;;  %v5285_v52 = vshrl.u32 %v5284_v49, 7 }
 0x23a   : > { %5864 = vmatprep.subr.bf16.mxu1 %v6803_v9 }
 0x23b   : > { %v5286_v10 = vsub.s32 0, %v5285_v52  ;;  %v5290_v19 = vsub.s32 1, %v5285_v52 }
 0x23c   : > { %5840 = vmatmul.mubr.msk.bf16.gmra.mrb[16].mxu0 %vm349_vm0, %v4948_v44  ;;  %5653 = vmatmul.mubr.msk.bf16.gmra.mrb[4].mxu1 %vm349_vm0, %v7870_v14  ;;  %v6806_v14 = vld [vmem:[#allocation5 + $0x330] ss:$8 sps:$4 sm:$0xff]  }
 0x23d   : > { %5211 = vmatprep.mubr.bf16.mxu0 %v6972_v0  ;;  %2615 = vmatprep.mubr.bf16.mxu1 %v6972_v0  ;;  %v8116_v18 = vrot.slane %v5282_v30, %v5290_v19 }
 0x23e   : > { %5868 = vmatpush1.bf16.msra.mxu1 %v6804_v5 }
 0x23f   : > { %5865 = vmatprep.subr.bf16.mxu1 %v6805_v53 }
 0x242   : > { %5869 = vmatpush1.bf16.msra.mxu1 %v6806_v14 }
 0x244   : > { %5854 = vmatmul.mubr.msk.bf16.vlgmr.msra.gmra.mrb[0].mxu0 %vm349_vm0, %v5841_v22  ;;  %5654 = vmatmul.mubr.msk.bf16.gmra.mrb[8].mxu1 %vm349_vm0, %v2489_v28 }
 0x245   : > { %5221 = vmatprep.mubr.bf16.mxu0 %v6972_v0  ;;  %2625 = vmatprep.mubr.bf16.mxu1 %v6972_v0 }
 0x24c   : > { %5855 = vmatmul.mubr.msk.bf16.gmra.mrb[4].mxu0 %vm349_vm0, %v5842_v1  ;;  %5655 = vmatmul.mubr.msk.bf16.gmra.mrb[12].mxu1 %vm349_vm0, %v2498_v57 }
 0x24d   : > { %5231 = vmatprep.mubr.bf16.mxu0 %v6972_v0  ;;  %2635 = vmatprep.mubr.bf16.mxu1 %v6972_v0 }
 0x254   : > { %5856 = vmatmul.mubr.msk.bf16.gmra.mrb[8].mxu0 %vm349_vm0, %v5843_v56  ;;  %5656 = vmatmul.mubr.msk.bf16.gmra.mrb[16].mxu1 %vm349_vm0, %v2507_v61 }
 0x255   : > { %5241 = vmatprep.mubr.bf16.mxu0 %v6972_v0  ;;  %2790 = vmatprep.mubr.bf16.mxu1 %v6972_v0 }
 0x25c   : > { %5857 = vmatmul.mubr.msk.bf16.gmra.mrb[12].mxu0 %vm349_vm0, %v5844_v6  ;;  %5672 = vmatmul.mubr.msk.bf16.vlgmr.msra.gmra.mrb[8].mxu1 %vm349_vm0, %v7239_v4 }
 0x25d   : > { %5251 = vmatprep.mubr.bf16.mxu0 %v6972_v0  ;;  %2800 = vmatprep.mubr.bf16.mxu1 %v6972_v0 }
 0x264   : > { %5858 = vmatmul.mubr.msk.bf16.gmra.mrb[16].mxu0 %vm349_vm0, %v5845_v41  ;;  %5673 = vmatmul.mubr.msk.bf16.gmra.mrb[12].mxu1 %vm349_vm0, %v7265_v31  ;;  %v8113_v31 = vrot.slane %v5282_v30, %v5286_v10 }
 0x265   : > { %2810 = vmatprep.mubr.bf16.mxu1 %v6972_v0 }
 0x26c   : > { %5674 = vmatmul.mubr.msk.bf16.gmra.mrb[16].mxu1 %vm349_vm0, %v7299_v8 }
 0x307   : > { %v2597_v58 = vpop.f32.mrb[0].mxu1 }
 0x308   : > { %v2599_v24 = vpop.f32.mrb[1].mxu1 }
 0x309   : > { %v2601_v36 = vpop.f32.mrb[2].mxu1 }
 0x30a   : > { %v2603_v4 = vpop.f32.mrb[3].mxu1 }
 0x30f   : > { %v2607_v55 = vpop.f32.mrb[4].mxu1 }
 0x310   : > { %v2609_v23 = vpop.f32.mrb[5].mxu1 }
 0x311   : > { %v2611_v47 = vpop.f32.mrb[6].mxu1 }
 0x312   : > { %v2613_v21 = vpop.f32.mrb[7].mxu1 }
 0x317   : > { %v5213_v0 = vpop.f32.mrb[0].mxu0 }
 0x318   : > { %v5870_v8 = vadd.f32 %v5213_v0, %v2597_v58  ;;  %v5215_v17 = vpop.f32.mrb[1].mxu0 }
 0x319   : > { %v5871_v62 = vadd.f32 %v5215_v17, %v2599_v24  ;;  %v5217_v12 = vpop.f32.mrb[2].mxu0 }
 0x31a   : > { %v5294_v11 = vadd.f32 %v5870_v8, %v8113_v31  ;;  %v5872_v3 = vadd.f32 %v5217_v12, %v2601_v36  ;;  %v5219_v15 = vpop.f32.mrb[3].mxu0 }
 0x31b   : > { %v5295_v45 = vadd.f32 %v5871_v62, %v8116_v18  ;;  %v5873_v37 = vadd.f32 %v5219_v15, %v2603_v4 }
 0x31c   : > { %v5314_v54 = vmax.f32 %v5294_v11, 0.0  ;;  %v5296_v2 = vadd.f32 %v5872_v3, %v8113_v31 }
 0x31d   : > { %v5315_v39 = vmax.f32 %v5295_v45, 0.0  ;;  %v5297_v26 = vadd.f32 %v5873_v37, %v8116_v18 }
 0x31e   : > { %5334 = vst [vmem:[%s8122_s20] sm:$0xff] %v5314_v54  ;;  %v5316_v51 = vmax.f32 %v5296_v2, 0.0 }
 0x31f   : > { %5335 = vst [vmem:[%s8122_s20 + $0x8] sm:$0xff] %v5315_v39  ;;  %v5317_v7 = vmax.f32 %v5297_v26, 0.0  ;;  %v5223_v38 = vpop.f32.mrb[4].mxu0 }
 0x320   : > { %5336 = vst [vmem:[%s8122_s20 + $0x10] sm:$0xff] %v5316_v51  ;;  %v5874_v34 = vadd.f32 %v5223_v38, %v2607_v55  ;;  %v5225_v46 = vpop.f32.mrb[5].mxu0 }
 0x321   : > { %5337 = vst [vmem:[%s8122_s20 + $0x18] sm:$0xff] %v5317_v7  ;;  %v5875_v40 = vadd.f32 %v5225_v46, %v2609_v23  ;;  %v5227_v48 = vpop.f32.mrb[6].mxu0 }
 0x322   : > { %v5298_v44 = vadd.f32 %v5874_v34, %v8113_v31  ;;  %v5876_v59 = vadd.f32 %v5227_v48, %v2611_v47  ;;  %v5229_v16 = vpop.f32.mrb[7].mxu0 }
 0x323   : > { %v5299_v13 = vadd.f32 %v5875_v40, %v8116_v18  ;;  %v5877_v9 = vadd.f32 %v5229_v16, %v2613_v21 }
 0x324   : > { %v5318_v43 = vmax.f32 %v5298_v44, 0.0  ;;  %v5300_v5 = vadd.f32 %v5876_v59, %v8113_v31 }
 0x325   : > { %v5319_v42 = vmax.f32 %v5299_v13, 0.0  ;;  %v5301_v27 = vadd.f32 %v5877_v9, %v8116_v18 }
 0x326   : > { %5338 = vst [vmem:[%s8122_s20 + $0x20] sm:$0xff] %v5318_v43  ;;  %v5320_v22 = vmax.f32 %v5300_v5, 0.0 }
 0x327   : > { %5339 = vst [vmem:[%s8122_s20 + $0x28] sm:$0xff] %v5319_v42  ;;  %v5321_v53 = vmax.f32 %v5301_v27, 0.0  ;;  %v5233_v28 = vpop.f32.mrb[8].mxu0 }
 0x328   : > { %5340 = vst [vmem:[%s8122_s20 + $0x30] sm:$0xff] %v5320_v22  ;;  %v5235_v29 = vpop.f32.mrb[9].mxu0 }
 0x329   : > { %5341 = vst [vmem:[%s8122_s20 + $0x38] sm:$0xff] %v5321_v53  ;;  %v5237_v63 = vpop.f32.mrb[10].mxu0 }
 0x32a   : > { %v5239_v14 = vpop.f32.mrb[11].mxu0 }
 0x32f   : > { %v5243_v32 = vpop.f32.mrb[12].mxu0  ;;  %v2792_v20 = vpop.f32.mrb[8].mxu1 }
 0x330   : > { %v5245_v25 = vpop.f32.mrb[13].mxu0  ;;  %v5878_v57 = vadd.f32 %v5233_v28, %v2792_v20  ;;  %v2794_v60 = vpop.f32.mrb[9].mxu1 }
 0x331   : > { %v5247_v1 = vpop.f32.mrb[14].mxu0  ;;  %v5879_v50 = vadd.f32 %v5235_v29, %v2794_v60  ;;  %v2796_v56 = vpop.f32.mrb[10].mxu1 }
 0x332   : > { %v5249_v35 = vpop.f32.mrb[15].mxu0  ;;  %v5302_v61 = vadd.f32 %v5878_v57, %v8113_v31  ;;  %v5880_v6 = vadd.f32 %v5237_v63, %v2796_v56  ;;  %v2798_v33 = vpop.f32.mrb[11].mxu1 }
 0x333   : > { %v5303_v41 = vadd.f32 %v5879_v50, %v8116_v18  ;;  %v5881_v58 = vadd.f32 %v5239_v14, %v2798_v33 }
 0x334   : > { %v5322_v24 = vmax.f32 %v5302_v61, 0.0  ;;  %v5304_v49 = vadd.f32 %v5880_v6, %v8113_v31 }
 0x335   : > { %v5323_v36 = vmax.f32 %v5303_v41, 0.0  ;;  %v5305_v4 = vadd.f32 %v5881_v58, %v8116_v18 }
 0x336   : > { %5342 = vst [vmem:[%s8122_s20 + $0x40] sm:$0xff] %v5322_v24  ;;  %v5324_v55 = vmax.f32 %v5304_v49, 0.0 }
 0x337   : > { %v5253_v52 = vpop.f32.mrb[16].mxu0  ;;  %5343 = vst [vmem:[%s8122_s20 + $0x48] sm:$0xff] %v5323_v36  ;;  %v5325_v10 = vmax.f32 %v5305_v4, 0.0  ;;  %v2802_v47 = vpop.f32.mrb[12].mxu1 }
 0x338   : > { %v5255_v23 = vpop.f32.mrb[17].mxu0  ;;  %5344 = vst [vmem:[%s8122_s20 + $0x50] sm:$0xff] %v5324_v55  ;;  %v5882_v19 = vadd.f32 %v5243_v32, %v2802_v47  ;;  %v2804_v21 = vpop.f32.mrb[13].mxu1 }
 0x339   : > { %v5257_v30 = vpop.f32.mrb[18].mxu0  ;;  %5345 = vst [vmem:[%s8122_s20 + $0x58] sm:$0xff] %v5325_v10  ;;  %v5883_v8 = vadd.f32 %v5245_v25, %v2804_v21  ;;  %v2806_v17 = vpop.f32.mrb[14].mxu1 }
 0x33a   : > { %v5259_v0 = vpop.f32.mrb[19].mxu0  ;;  %v5306_v62 = vadd.f32 %v5882_v19, %v8113_v31  ;;  %v5884_v12 = vadd.f32 %v5247_v1, %v2806_v17  ;;  %v2808_v11 = vpop.f32.mrb[15].mxu1 }
 0x33b   : > { %v5307_v3 = vadd.f32 %v5883_v8, %v8116_v18  ;;  %v5885_v15 = vadd.f32 %v5249_v35, %v2808_v11 }
 0x33c   : > { %v5326_v45 = vmax.f32 %v5306_v62, 0.0  ;;  %v5308_v37 = vadd.f32 %v5884_v12, %v8113_v31 }
 0x33d   : > { %v5327_v54 = vmax.f32 %v5307_v3, 0.0  ;;  %v5309_v2 = vadd.f32 %v5885_v15, %v8116_v18 }
 0x33e   : > { %5346 = vst [vmem:[%s8122_s20 + $0x60] sm:$0xff] %v5326_v45  ;;  %v5328_v39 = vmax.f32 %v5308_v37, 0.0 }
 0x33f   : > { %5347 = vst [vmem:[%s8122_s20 + $0x68] sm:$0xff] %v5327_v54  ;;  %v5329_v26 = vmax.f32 %v5309_v2, 0.0  ;;  %v2812_v51 = vpop.f32.mrb[16].mxu1 }
 0x340   : > { %5348 = vst [vmem:[%s8122_s20 + $0x70] sm:$0xff] %v5328_v39  ;;  %v5886_v7 = vadd.f32 %v5253_v52, %v2812_v51  ;;  %v2814_v38 = vpop.f32.mrb[17].mxu1 }
 0x341   : > { %5349 = vst [vmem:[%s8122_s20 + $0x78] sm:$0xff] %v5329_v26  ;;  %v5887_v34 = vadd.f32 %v5255_v23, %v2814_v38  ;;  %v2816_v46 = vpop.f32.mrb[18].mxu1 }
 0x342   : > { %v5310_v40 = vadd.f32 %v5886_v7, %v8113_v31  ;;  %v5888_v48 = vadd.f32 %v5257_v30, %v2816_v46  ;;  %v2818_v44 = vpop.f32.mrb[19].mxu1 }
 0x343   : > { %v5311_v59 = vadd.f32 %v5887_v34, %v8116_v18  ;;  %v5889_v16 = vadd.f32 %v5259_v0, %v2818_v44 }
 0x344   : > { %v5330_v13 = vmax.f32 %v5310_v40, 0.0  ;;  %v5312_v9 = vadd.f32 %v5888_v48, %v8113_v31 }
 0x345   : > { %v5331_v43 = vmax.f32 %v5311_v59, 0.0  ;;  %v5313_v5 = vadd.f32 %v5889_v16, %v8116_v18 }
 0x346   : > { %5350 = vst [vmem:[%s8122_s20 + $0x80] sm:$0xff] %v5330_v13  ;;  %v5332_v42 = vmax.f32 %v5312_v9, 0.0 }
 0x347   : > { %5351 = vst [vmem:[%s8122_s20 + $0x88] sm:$0xff] %v5331_v43  ;;  %v5333_v27 = vmax.f32 %v5313_v5, 0.0 }
 0x348   : > { %5352 = vst [vmem:[%s8122_s20 + $0x90] sm:$0x1f] %v5332_v42 }
 0x349   : > { %5353 = vst [vmem:[%s8122_s20 + $0x98] sm:$0x1f] %v5333_v27 }
 0x34a   : > { %6906 = shalt.err (!%p6903_p2)
}
 0x34b   : > { %s6907_s11 = scalar_lea.hbm %s8162_s23, 2560  ;;  %s6911_s22 = scalar_lea.hbm %s8214_s3, 5120 }
 0x34c   : > { %p6908_p13 = scmp.ne.s32.totalorder %s8162_s23, %s6907_s11  ;;  %p6912_p4 = scmp.lt.u32.totalorder %s8162_s23, %s8214_s3 }
 0x34d   : > { %p6913_p5 = scmp.lt.u32.totalorder %s6911_s22, %s6907_s11  ;;  %p6915_p11 = scmp.lt.u32.totalorder %s6907_s11, %s8162_s23 }
 0x34e   : > { %p6909_p6 = pnand %p6908_p13, %p8228_p0 }
 0x34f   : > { %p6914_p8 = por %p6913_p5, %p6912_p4 }
 0x350   : > { %p6910_p10 = pneg %p6909_p6 }
 0x351   : > { %p6916_p1 = por %p6915_p11, %p6914_p8 }
 0x353   : > { %p6917_p3 = pnand %p6916_p1, %p6910_p10 }
 0x355   : > { %6920 = shalt.err (!%p6917_p3)
}
 0x356   : > { %s6974_s18 = smov 256   ;;  %s6975_s20 = smov 16  }
 0x357   : > { %6365 = dma.vmem_to_hbm [thread:$0]  (%p8228_p0), %s8164_s21, 2560, %s8162_s23, %s5355_s16, %s6974_s18, %s6974_s18, %s6975_s20  }
 0x358 PF: > { %s5383_s10 = sand.u32 1, %s6951_s12   ;;  %p8229_p7 = scmp.ne.s32.totalorder %s8219_s19, 0 }
 0x359   : > { %p8230_p9 = scmp.ge.s32.totalorder %s6963_s15, 2  ;;  %s5384_s26 = scalar_lea.sflag [#allocation4], %s5383_s10 }
 0x35b   : > { %p6379_p12 = pnand %p8230_p9, %p8229_p7 }
 0x35d   : > { %6946 = dma.done.wait (!%p6379_p12), %s5384_s26, 2560  }
 0x35e   : > { %6948 = vsyncadd (!%p6379_p12), %s5384_s26, 4294964736  ;;  %p17_p2 = scmp.ge.s32.totalorder %s7106_s4, 4   ;;  %s8231_s12 = smov %s6955_s13 }
 0x35f   : > { %s8232_s13 = smov %s6959_s14  ;;  %s8233_s14 = smov %s7122_s7 }
 0x360   : > { %s8234_s15 = smov %s7106_s4  ;;  %19 = sbr.rel (!%p17_p2) target bundleno = 6 (0x6), region = 109 }
 0x367   :  { %5389 = vsyncpa [#allocation3], 1 }
 0x368   :  { %5391 = vsyncpa [#allocation3 + $0x1], 1 }
 0x369   :  { %5392 = vsyncpa [#allocation6], 1 }
 0x36a   :  { %5393 = vsyncpa [#allocation4], 1 }
 0x36b   :  { %5395 = vsyncpa [#allocation4 + $0x1], 1 }

</bundles_post_ra>
